<compile_context>
chip_gen: v7x
topology: tpu7x:2x2x1
jax: 0.10.0
libtpu: 0.0.40
codegen_flags: <defaults>
</compile_context>

<pallas_src>
import jax
import jax.numpy as jnp
from jax.experimental import pallas as pl
from jax.experimental.pallas import tpu as pltpu

Z_DIM = 10
HIDDEN = 512


def _pick_tile(batch):
    """Batch tile: multiple of 128 (v5e MXU geometry), >=2 grid steps when possible."""
    if batch >= 1024:
        return 512
    if batch >= 512:
        return 256
    return 128


def _adversary_kernel(zt_ref,
                      w1_ref, b1_ref,
                      w2_ref, b2_ref,
                      w3_ref, b3_ref,
                      w4_ref, b4_ref,
                      w5_ref, b5_ref,
                      out_ref):
    """One batch tile of the 5-layer MLP.  Activations: (features, TB), batch on lanes."""
    # Layer 1: (512, 10) @ (10, TB) — tiny K, keep f32 end to end.
    h = jnp.dot(w1_ref[...], zt_ref[...], preferred_element_type=jnp.float32)
    h = jnp.maximum(h + b1_ref[...], 0.0)

    # Layers 2-4: bf16 operands on the MXU, f32 accumulate, f32 bias + ReLU.
    for w_ref, b_ref in ((w2_ref, b2_ref), (w3_ref, b3_ref), (w4_ref, b4_ref)):
        h = jnp.dot(w_ref[...], h.astype(jnp.bfloat16),
                    preferred_element_type=jnp.float32)
        h = jnp.maximum(h + b_ref[...], 0.0)

    # Layer 5 (out_features = 1): off the MXU.  VPU multiply against the
    # (512, 1) weight column + sublane reduction -> lane-dense (1, TB) row.
    logits = jnp.sum(h * w5_ref[...], axis=0, keepdims=True) + b5_ref[...]
    out_ref[...] = logits.astype(out_ref.dtype)


@jax.jit
def adversary_forward(z, params):
    """z: (B, z_dim) float32.

    params (kernel layout, see prepare_params):
      w1: (512, 10)  f32,  b1: (512, 1) f32
      w2..w4: (512, 512) bf16, b: (512, 1) f32
      w5: (512, 1) f32,  b5: (1, 1) f32
    Returns (B, 1) float32.
    """
    B, zd = z.shape
    assert zd == Z_DIM

    tb = _pick_tile(B)
    bp = pl.cdiv(B, tb) * tb                       # padded batch
    # Batch on the lane axis: (Z_DIM, Bp).  Pad + transpose is cheap layout plumbing.
    zt = jnp.pad(z, ((0, bp - B), (0, 0))).T

    (w1, b1), (w2, b2), (w3, b3), (w4, b4), (w5, b5) = params

    # Grid-invariant blocks: same (0, 0) block every step -> not re-fetched.
    def rep(shape):
        return pl.BlockSpec(shape, lambda i: (0, 0))

    grid = (bp // tb,)

    flops = 2 * bp * (Z_DIM * HIDDEN + 3 * HIDDEN * HIDDEN + HIDDEN)
    bytes_accessed = (
        4 * Z_DIM * HIDDEN                 # w1 (f32)
        + 2 * 3 * HIDDEN * HIDDEN          # w2..w4 (bf16)
        + 4 * (HIDDEN + 4 * HIDDEN + 1)    # w5 + biases (f32)
        + 4 * bp * Z_DIM                   # input
        + 4 * bp                           # output
    )
    cost = pl.CostEstimate(flops=flops, transcendentals=0,
                           bytes_accessed=bytes_accessed)

    out = pl.pallas_call(
        _adversary_kernel,
        out_shape=jax.ShapeDtypeStruct((1, bp), jnp.float32),
        grid_spec=pltpu.PrefetchScalarGridSpec(
            num_scalar_prefetch=0,
            grid=grid,
            in_specs=[
                pl.BlockSpec((Z_DIM, tb), lambda i: (0, i)),   # z tile (batch on lanes)
                rep((HIDDEN, Z_DIM)), rep((HIDDEN, 1)),        # layer 1
                rep((HIDDEN, HIDDEN)), rep((HIDDEN, 1)),       # layer 2
                rep((HIDDEN, HIDDEN)), rep((HIDDEN, 1)),       # layer 3
                rep((HIDDEN, HIDDEN)), rep((HIDDEN, 1)),       # layer 4
                rep((HIDDEN, 1)), rep((1, 1)),                 # layer 5
            ],
            out_specs=pl.BlockSpec((1, tb), lambda i: (0, i)),  # lane-dense output row
        ),
        compiler_params=pltpu.CompilerParams(
            dimension_semantics=("parallel",),                  # megacore shards batch tiles
        ),
        cost_estimate=cost,
    )(zt, w1, b1, w2, b2, w3, b3, w4, b4, w5, b5)

    # (1, Bp) -> (Bp, 1), drop padding rows.
    return out.reshape(bp, 1)[:B]


def init_params(key):
    """Kaiming-normal weights (fan_in, relu gain), zero biases — matches kaiming_init.

    Weights are produced in PyTorch's native (out_features, in_features) layout.
    """
    dims = [(HIDDEN, Z_DIM), (HIDDEN, HIDDEN), (HIDDEN, HIDDEN),
            (HIDDEN, HIDDEN), (1, HIDDEN)]
    params = []
    for fan_out, fan_in in dims:
        key, sub = jax.random.split(key)
        std = jnp.sqrt(2.0 / fan_in)   # kaiming_normal_, mode='fan_in', a=0
        w = jax.random.normal(sub, (fan_out, fan_in), dtype=jnp.float32) * std
        b = jnp.zeros((fan_out,), dtype=jnp.float32)
        params.append((w, b))
    return tuple(params)


def prepare_params(raw_params):
    """Convert (out, in) f32 PyTorch-layout params to the kernel layout/dtypes."""
    (w1, b1), (w2, b2), (w3, b3), (w4, b4), (w5, b5) = raw_params

    def hidden(w, b, dtype):
        return w.astype(dtype), b.reshape(-1, 1).astype(jnp.float32)

    k1 = hidden(w1, b1, jnp.float32)      # tiny layer, stays f32
    k2 = hidden(w2, b2, jnp.bfloat16)
    k3 = hidden(w3, b3, jnp.bfloat16)
    k4 = hidden(w4, b4, jnp.bfloat16)
    k5 = (w5.reshape(HIDDEN, 1).astype(jnp.float32),   # (1, 512) -> (512, 1) column
          b5.reshape(1, 1).astype(jnp.float32))
    return (k1, k2, k3, k4, k5)


def reference_forward(z, params):
    """Plain-JAX reference mirroring the kernel's dtypes (bf16 weights, f32 accum)."""
    (w1, b1), (w2, b2), (w3, b3), (w4, b4), (w5, b5) = params
    h = jnp.maximum(jnp.dot(z, w1.T) + b1.T, 0.0)
    for w, b in ((w2, b2), (w3, b3), (w4, b4)):
        h = jnp.dot(h.astype(jnp.bfloat16), w.T,
                    preferred_element_type=jnp.float32) + b.T
        h = jnp.maximum(h, 0.0)
    return jnp.dot(h, w5) + b5


if __name__ == "__main__":
    key = jax.random.PRNGKey(0)
    pkey, zkey = jax.random.split(key)

    params = prepare_params(init_params(pkey))

    B = 8  # small demo batch; kernel pads internally to one 128-wide lane tile
    z = jax.random.normal(zkey, (B, Z_DIM), dtype=jnp.float32)

    out = jax.block_until_ready(adversary_forward(z, params))
    ref = jax.block_until_ready(reference_forward(z, params))

    assert out.shape == (B, 1)
    assert jnp.allclose(out, ref, atol=1e-2, rtol=1e-2), (out, ref)

    print("KERNEL_OK")
</pallas_src>

<mosaic_0001>
module attributes {stable_mosaic.version = 11 : i64} {
  func.func @_adversary_kernel(%arg0: i32, %arg1: memref<10x128xf32, #tpu.memory_space<vmem>>, %arg2: memref<512x10xf32, #tpu.memory_space<vmem>>, %arg3: memref<512x1xf32, #tpu.memory_space<vmem>>, %arg4: memref<512x512xbf16, #tpu.memory_space<vmem>>, %arg5: memref<512x1xf32, #tpu.memory_space<vmem>>, %arg6: memref<512x512xbf16, #tpu.memory_space<vmem>>, %arg7: memref<512x1xf32, #tpu.memory_space<vmem>>, %arg8: memref<512x512xbf16, #tpu.memory_space<vmem>>, %arg9: memref<512x1xf32, #tpu.memory_space<vmem>>, %arg10: memref<512x1xf32, #tpu.memory_space<vmem>>, %arg11: memref<1x1xf32, #tpu.memory_space<vmem>>, %arg12: memref<1x128xf32, #tpu.memory_space<vmem>>) attributes {dimension_semantics = [#tpu.dimension_semantics<parallel>], iteration_bounds = array<i64: 1>, scalar_prefetch = 0 : i64, scratch_operands = 0 : i64, tpu.core_type = #tpu.core_type<tc>, window_params = [{transform_indices = @transform_0, window_bounds = array<i64: 10, 128>}, {pipeline_mode = #tpu.pipeline_mode<synchronous>, transform_indices = @transform_1, window_bounds = array<i64: 512, 10>}, {pipeline_mode = #tpu.pipeline_mode<synchronous>, transform_indices = @transform_2, window_bounds = array<i64: 512, 1>}, {pipeline_mode = #tpu.pipeline_mode<synchronous>, transform_indices = @transform_3, window_bounds = array<i64: 512, 512>}, {pipeline_mode = #tpu.pipeline_mode<synchronous>, transform_indices = @transform_4, window_bounds = array<i64: 512, 1>}, {pipeline_mode = #tpu.pipeline_mode<synchronous>, transform_indices = @transform_5, window_bounds = array<i64: 512, 512>}, {pipeline_mode = #tpu.pipeline_mode<synchronous>, transform_indices = @transform_6, window_bounds = array<i64: 512, 1>}, {pipeline_mode = #tpu.pipeline_mode<synchronous>, transform_indices = @transform_7, window_bounds = array<i64: 512, 512>}, {pipeline_mode = #tpu.pipeline_mode<synchronous>, transform_indices = @transform_8, window_bounds = array<i64: 512, 1>}, {pipeline_mode = #tpu.pipeline_mode<synchronous>, transform_indices = @transform_9, window_bounds = array<i64: 512, 1>}, {pipeline_mode = #tpu.pipeline_mode<synchronous>, transform_indices = @transform_10, window_bounds = array<i64: 1, 1>}, {transform_indices = @transform_11, window_bounds = array<i64: 1, 128>}]} {
    %c0 = arith.constant 0 : index
    %c0_0 = arith.constant 0 : index
    %0 = vector.load %arg2[%c0, %c0_0] : memref<512x10xf32, #tpu.memory_space<vmem>>, vector<512x10xf32>
    %c0_1 = arith.constant 0 : index
    %c0_2 = arith.constant 0 : index
    %1 = vector.load %arg1[%c0_1, %c0_2] : memref<10x128xf32, #tpu.memory_space<vmem>>, vector<10x128xf32>
    %cst = arith.constant dense<0.000000e+00> : vector<512x128xf32>
    %2 = tpu.matmul %0, %1, %cst {dimension_numbers = #tpu.dot_dimension_numbers<[1], [0], [0], [1], [0, 0, 1, 1], [], []>} : vector<512x10xf32>, vector<10x128xf32>, vector<512x128xf32> -> vector<512x128xf32>
    %c0_3 = arith.constant 0 : index
    %c0_4 = arith.constant 0 : index
    %3 = vector.load %arg3[%c0_3, %c0_4] : memref<512x1xf32, #tpu.memory_space<vmem>>, vector<512x1xf32>
    %4 = vector.broadcast %3 : vector<512x1xf32> to vector<512x128xf32>
    %5 = arith.addf %2, %4 : vector<512x128xf32>
    %cst_5 = arith.constant 0.000000e+00 : f32
    %6 = vector.broadcast %cst_5 : f32 to vector<512x128xf32>
    %7 = arith.maximumf %5, %6 : vector<512x128xf32>
    %c0_6 = arith.constant 0 : index
    %c0_7 = arith.constant 0 : index
    %8 = vector.load %arg4[%c0_6, %c0_7] : memref<512x512xbf16, #tpu.memory_space<vmem>>, vector<512x512xbf16>
    %9 = arith.truncf %7 : vector<512x128xf32> to vector<512x128xbf16>
    %cst_8 = arith.constant dense<0.000000e+00> : vector<512x128xf32>
    %10 = tpu.matmul %8, %9, %cst_8 {dimension_numbers = #tpu.dot_dimension_numbers<[1], [0], [0], [1], [0, 0, 1, 1], [], []>} : vector<512x512xbf16>, vector<512x128xbf16>, vector<512x128xf32> -> vector<512x128xf32>
    %c0_9 = arith.constant 0 : index
    %c0_10 = arith.constant 0 : index
    %11 = vector.load %arg5[%c0_9, %c0_10] : memref<512x1xf32, #tpu.memory_space<vmem>>, vector<512x1xf32>
    %12 = vector.broadcast %11 : vector<512x1xf32> to vector<512x128xf32>
    %13 = arith.addf %10, %12 : vector<512x128xf32>
    %cst_11 = arith.constant 0.000000e+00 : f32
    %14 = vector.broadcast %cst_11 : f32 to vector<512x128xf32>
    %15 = arith.maximumf %13, %14 : vector<512x128xf32>
    %c0_12 = arith.constant 0 : index
    %c0_13 = arith.constant 0 : index
    %16 = vector.load %arg6[%c0_12, %c0_13] : memref<512x512xbf16, #tpu.memory_space<vmem>>, vector<512x512xbf16>
    %17 = arith.truncf %15 : vector<512x128xf32> to vector<512x128xbf16>
    %cst_14 = arith.constant dense<0.000000e+00> : vector<512x128xf32>
    %18 = tpu.matmul %16, %17, %cst_14 {dimension_numbers = #tpu.dot_dimension_numbers<[1], [0], [0], [1], [0, 0, 1, 1], [], []>} : vector<512x512xbf16>, vector<512x128xbf16>, vector<512x128xf32> -> vector<512x128xf32>
    %c0_15 = arith.constant 0 : index
    %c0_16 = arith.constant 0 : index
    %19 = vector.load %arg7[%c0_15, %c0_16] : memref<512x1xf32, #tpu.memory_space<vmem>>, vector<512x1xf32>
    %20 = vector.broadcast %19 : vector<512x1xf32> to vector<512x128xf32>
    %21 = arith.addf %18, %20 : vector<512x128xf32>
    %cst_17 = arith.constant 0.000000e+00 : f32
    %22 = vector.broadcast %cst_17 : f32 to vector<512x128xf32>
    %23 = arith.maximumf %21, %22 : vector<512x128xf32>
    %c0_18 = arith.constant 0 : index
    %c0_19 = arith.constant 0 : index
    %24 = vector.load %arg8[%c0_18, %c0_19] : memref<512x512xbf16, #tpu.memory_space<vmem>>, vector<512x512xbf16>
    %25 = arith.truncf %23 : vector<512x128xf32> to vector<512x128xbf16>
    %cst_20 = arith.constant dense<0.000000e+00> : vector<512x128xf32>
    %26 = tpu.matmul %24, %25, %cst_20 {dimension_numbers = #tpu.dot_dimension_numbers<[1], [0], [0], [1], [0, 0, 1, 1], [], []>} : vector<512x512xbf16>, vector<512x128xbf16>, vector<512x128xf32> -> vector<512x128xf32>
    %c0_21 = arith.constant 0 : index
    %c0_22 = arith.constant 0 : index
    %27 = vector.load %arg9[%c0_21, %c0_22] : memref<512x1xf32, #tpu.memory_space<vmem>>, vector<512x1xf32>
    %28 = vector.broadcast %27 : vector<512x1xf32> to vector<512x128xf32>
    %29 = arith.addf %26, %28 : vector<512x128xf32>
    %cst_23 = arith.constant 0.000000e+00 : f32
    %30 = vector.broadcast %cst_23 : f32 to vector<512x128xf32>
    %31 = arith.maximumf %29, %30 : vector<512x128xf32>
    %c0_24 = arith.constant 0 : index
    %c0_25 = arith.constant 0 : index
    %32 = vector.load %arg10[%c0_24, %c0_25] : memref<512x1xf32, #tpu.memory_space<vmem>>, vector<512x1xf32>
    %33 = vector.broadcast %32 : vector<512x1xf32> to vector<512x128xf32>
    %34 = arith.mulf %31, %33 : vector<512x128xf32>
    %cst_26 = arith.constant dense<0.000000e+00> : vector<128xf32>
    %35 = vector.multi_reduction <add>, %34, %cst_26 [0] : vector<512x128xf32> to vector<128xf32>
    %36 = vector.shape_cast %35 : vector<128xf32> to vector<1x128xf32>
    %c0_27 = arith.constant 0 : index
    %c0_28 = arith.constant 0 : index
    %37 = vector.load %arg11[%c0_27, %c0_28] : memref<1x1xf32, #tpu.memory_space<vmem>>, vector<1x1xf32>
    %38 = vector.broadcast %37 : vector<1x1xf32> to vector<1x128xf32>
    %39 = arith.addf %36, %38 : vector<1x128xf32>
    %c0_29 = arith.constant 0 : index
    %c0_30 = arith.constant 0 : index
    %40 = vector.load %arg12[%c0_29, %c0_30] : memref<1x128xf32, #tpu.memory_space<vmem>>, vector<1x128xf32>
    tpu.vector_store %arg12[%c0_29, %c0_30], %39 {strides = array<i32>} : memref<1x128xf32, #tpu.memory_space<vmem>>, vector<1x128xf32>,
    return
  }
  func.func @transform_0(%arg0: i32) -> (i32, i32) {
    %c0_i32 = arith.constant 0 : i32
    %c0_i32_0 = arith.constant 0 : i32
    return %c0_i32, %arg0 : i32, i32
  }
  func.func @transform_1(%arg0: i32) -> (i32, i32) {
    %c0_i32 = arith.constant 0 : i32
    %c0_i32_0 = arith.constant 0 : i32
    %c0_i32_1 = arith.constant 0 : i32
    return %c0_i32, %c0_i32_0 : i32, i32
  }
  func.func @transform_2(%arg0: i32) -> (i32, i32) {
    %c0_i32 = arith.constant 0 : i32
    %c0_i32_0 = arith.constant 0 : i32
    %c0_i32_1 = arith.constant 0 : i32
    return %c0_i32, %c0_i32_0 : i32, i32
  }
  func.func @transform_3(%arg0: i32) -> (i32, i32) {
    %c0_i32 = arith.constant 0 : i32
    %c0_i32_0 = arith.constant 0 : i32
    %c0_i32_1 = arith.constant 0 : i32
    return %c0_i32, %c0_i32_0 : i32, i32
  }
  func.func @transform_4(%arg0: i32) -> (i32, i32) {
    %c0_i32 = arith.constant 0 : i32
    %c0_i32_0 = arith.constant 0 : i32
    %c0_i32_1 = arith.constant 0 : i32
    return %c0_i32, %c0_i32_0 : i32, i32
  }
  func.func @transform_5(%arg0: i32) -> (i32, i32) {
    %c0_i32 = arith.constant 0 : i32
    %c0_i32_0 = arith.constant 0 : i32
    %c0_i32_1 = arith.constant 0 : i32
    return %c0_i32, %c0_i32_0 : i32, i32
  }
  func.func @transform_6(%arg0: i32) -> (i32, i32) {
    %c0_i32 = arith.constant 0 : i32
    %c0_i32_0 = arith.constant 0 : i32
    %c0_i32_1 = arith.constant 0 : i32
    return %c0_i32, %c0_i32_0 : i32, i32
  }
  func.func @transform_7(%arg0: i32) -> (i32, i32) {
    %c0_i32 = arith.constant 0 : i32
    %c0_i32_0 = arith.constant 0 : i32
    %c0_i32_1 = arith.constant 0 : i32
    return %c0_i32, %c0_i32_0 : i32, i32
  }
  func.func @transform_8(%arg0: i32) -> (i32, i32) {
    %c0_i32 = arith.constant 0 : i32
    %c0_i32_0 = arith.constant 0 : i32
    %c0_i32_1 = arith.constant 0 : i32
    return %c0_i32, %c0_i32_0 : i32, i32
  }
  func.func @transform_9(%arg0: i32) -> (i32, i32) {
    %c0_i32 = arith.constant 0 : i32
    %c0_i32_0 = arith.constant 0 : i32
    %c0_i32_1 = arith.constant 0 : i32
    return %c0_i32, %c0_i32_0 : i32, i32
  }
  func.func @transform_10(%arg0: i32) -> (i32, i32) {
    %c0_i32 = arith.constant 0 : i32
    %c0_i32_0 = arith.constant 0 : i32
    %c0_i32_1 = arith.constant 0 : i32
    return %c0_i32, %c0_i32_0 : i32, i32
  }
  func.func @transform_11(%arg0: i32) -> (i32, i32) {
    %c0_i32 = arith.constant 0 : i32
    %c0_i32_0 = arith.constant 0 : i32
    return %c0_i32, %arg0 : i32, i32
  }
}

</mosaic_0001>

<bundles_post_ra>
// kernel: adversary_forward.1
= control target key start
LH: loop header
LB: loop body
LE: loop exit
PB: predicated region body
PF: predicated region fallthrough
CT: control target
= control target key end

     0   :  { %vm684_vm0 = vcmask 1041408   ;;  %v12431_v0 = vmov 0   ;;  %vm491_vm1 = vcmask 80896   ;;  %vm8904_vm2 = vmmov 1   ;;  %s12419_s2 = inlined_call_operand.vmem [shape: f32[512,1], index: 2, kind: input, shape index: {}]   ;;  %s12420_s0 = inlined_call_operand.vmem [shape: f32[10,128], index: 0, kind: input, shape index: {}]   ;;  %s12421_s1 = inlined_call_operand.vmem [shape: f32[512,10], index: 1, kind: input, shape index: {}]   ;;  %s12422_s4 = inlined_call_operand.vmem [shape: f32[512,1], index: 4, kind: input, shape index: {}]   ;;  %s12423_s3 = inlined_call_operand.vmem [shape: bf16[512,512], index: 3, kind: input, shape index: {}]   ;;  %s12424_s6 = inlined_call_operand.vmem [shape: f32[512,1], index: 6, kind: input, shape index: {}]   ;;  %s12425_s8 = inlined_call_operand.vmem [shape: f32[512,1], index: 8, kind: input, shape index: {}]   ;;  %s12426_s10 = inlined_call_operand.<no memory space> [shape: f32[1,1], index: 10, kind: input, shape index: {}]   ;;  %s12427_s9 = inlined_call_operand.vmem [shape: f32[512,1], index: 9, kind: input, shape index: {}]   ;;  %s12428_s5 = inlined_call_operand.vmem [shape: bf16[512,512], index: 5, kind: input, shape index: {}]   ;;  %s12429_s7 = inlined_call_operand.vmem [shape: bf16[512,512], index: 7, kind: input, shape index: {}]   ;;  %s12430_s11 = inlined_call_operand.vmem [shape: f32[1,128], index: 11, kind: output, shape index: {}]  }
   0x1   :  { %8326 = vset.pattern.permute.xlu1 %v12431_v0  ;;  %8325 = vset.pattern.permute.xlu0 %v12431_v0  ;;  %v109_v1 = vld [vmem:[%s12419_s2 + $0x10] sm:$0xff]  ;;  %v107_v2 = vld [vmem:[%s12419_s2] sm:$0xff]  ;;  %v106_v4 = vld [vmem:[%s12420_s0 + $0x8] sm:$0x3] }
   0x2   :  { %v105_v3 = vld [vmem:[%s12420_s0] sm:$0xff]  ;;  %183 = vperm.xlu1 %8326, %v109_v1   ;;  %173 = vperm.xlu0 %8325, %v107_v2   ;;  %vm7764_vm3 = vmpackc.low %vm684_vm0, %vm8904_vm2  ;;  %v110_v6 = vld [vmem:[%s12419_s2 + $0x18] sm:$0xff] }
   0x3   :  { %v7763_v5 = vpack.c.bf16 %v106_v4, %v105_v3  ;;  %v41_v7 = vld [vmem:[%s12421_s1] sm:$0xff]  ;;  %2321 = vmatprep.subr.bf16.mxu1 %v12431_v0  ;;  %v108_v8 = vld [vmem:[%s12419_s2 + $0x8] sm:$0xff]  ;;  %v43_v11 = vld [vmem:[%s12421_s1 + $0x10] sm:$0xff] }
   0x4   :  { %7667 = vmatprep.mubr.msk.f32.mxu0 %vm491_vm1, %v41_v7  ;;  %v42_v9 = vld [vmem:[%s12421_s1 + $0x8] sm:$0xff]  ;;  %v111_v12 = vld [vmem:[%s12419_s2 + $0x20] sm:$0xff]  ;;  %v44_v13 = vld [vmem:[%s12421_s1 + $0x18] sm:$0xff] }
   0x5   :  { %7765 = vmatprep.subr.msk.bf16.mxu0 %vm7764_vm3, %v7763_v5  ;;  %v112_v10 = vld [vmem:[%s12419_s2 + $0x28] sm:$0xff]  ;;  %v114_v14 = vld [vmem:[%s12419_s2 + $0x38] sm:$0xff]  ;;  %v45_v15 = vld [vmem:[%s12421_s1 + $0x20] sm:$0xff] }
   0x6   :  { %7768 = vmatpush3.bf16.msk.msra.mxu0 %vm7764_vm3, %v7763_v5  ;;  %188 = vperm.xlu1 %8326, %v110_v6   ;;  %v113_v16 = vld [vmem:[%s12419_s2 + $0x30] sm:$0xff]  ;;  %v46_v17 = vld [vmem:[%s12421_s1 + $0x28] sm:$0xff]  ;;  %v115_v20 = vld [vmem:[%s12419_s2 + $0x40] sm:$0xff] }
   0x7   :  { %178 = vperm.xlu0 %8325, %v108_v8   ;;  %4147 = vmatprep.subr.bf16.mxu0 %v12431_v0  ;;  %v116_v18 = vld [vmem:[%s12419_s2 + $0x48] sm:$0xff]  ;;  %v47_v19 = vld [vmem:[%s12421_s1 + $0x30] sm:$0xff]  ;;  %v48_v21 = vld [vmem:[%s12421_s1 + $0x38] sm:$0xff] }
   0x8   :  { %v118_v22 = vld [vmem:[%s12419_s2 + $0x58] sm:$0xff]  ;;  %v49_v23 = vld [vmem:[%s12421_s1 + $0x40] sm:$0xff]  ;;  %v117_v24 = vld [vmem:[%s12419_s2 + $0x50] sm:$0xff] }
   0x9   :  { %7668 = vmatmul.mubr.msk.f32.vlgmr.msra.gmra.mrb[0].mxu0 %vm491_vm1, %v42_v9  ;;  %v50_v25 = vld [vmem:[%s12421_s1 + $0x48] sm:$0xff]  ;;  %v51_v27 = vld [vmem:[%s12421_s1 + $0x50] sm:$0xff]  ;;  %v119_v28 = vld [vmem:[%s12419_s2 + $0x60] sm:$0xff] }
   0xa   :  { %198 = vperm.xlu1 %8326, %v112_v10   ;;  %7670 = vmatprep.mubr.msk.f32.mxu0 %vm491_vm1, %v43_v11  ;;  %v120_v26 = vld [vmem:[%s12419_s2 + $0x68] sm:$0xff]  ;;  %v52_v29 = vld [vmem:[%s12421_s1 + $0x58] sm:$0xff]  ;;  %v53_v31 = vld [vmem:[%s12421_s1 + $0x60] sm:$0xff] }
   0xb   :  { %193 = vperm.xlu0 %8325, %v111_v12   ;;  %v122_v30 = vld [vmem:[%s12419_s2 + $0x78] sm:$0xff]  ;;  %v121_v32 = vld [vmem:[%s12419_s2 + $0x70] sm:$0xff]  ;;  %v54_v33 = vld [vmem:[%s12421_s1 + $0x68] sm:$0xff] }
   0xc   :  { %v124_v34 = vld [vmem:[%s12419_s2 + $0x88] sm:$0xff]  ;;  %v55_v35 = vld [vmem:[%s12421_s1 + $0x70] sm:$0xff]  ;;  %v123_v36 = vld [vmem:[%s12419_s2 + $0x80] sm:$0xff] }
   0xd   :  { %7671 = vmatmul.mubr.msk.f32.gmra.mrb[2].mxu0 %vm491_vm1, %v44_v13  ;;  %v56_v37 = vld [vmem:[%s12421_s1 + $0x78] sm:$0xff]  ;;  %v57_v39 = vld [vmem:[%s12421_s1 + $0x80] sm:$0xff]  ;;  %v125_v40 = vld [vmem:[%s12419_s2 + $0x90] sm:$0xff] }
   0xe   :  { %208 = vperm.xlu1 %8326, %v114_v14   ;;  %7673 = vmatprep.mubr.msk.f32.mxu0 %vm491_vm1, %v45_v15  ;;  %v126_v38 = vld [vmem:[%s12419_s2 + $0x98] sm:$0xff]  ;;  %v58_v41 = vld [vmem:[%s12421_s1 + $0x88] sm:$0xff]  ;;  %v59_v43 = vld [vmem:[%s12421_s1 + $0x90] sm:$0xff] }
   0xf   :  { %203 = vperm.xlu0 %8325, %v113_v16   ;;  %v128_v42 = vld [vmem:[%s12419_s2 + $0xa8] sm:$0xff]  ;;  %v127_v44 = vld [vmem:[%s12419_s2 + $0xa0] sm:$0xff]  ;;  %v60_v45 = vld [vmem:[%s12421_s1 + $0x98] sm:$0xff] }
  0x10   :  { %v130_v46 = vld [vmem:[%s12419_s2 + $0xb8] sm:$0xff]  ;;  %v61_v47 = vld [vmem:[%s12421_s1 + $0xa0] sm:$0xff]  ;;  %v129_v48 = vld [vmem:[%s12419_s2 + $0xb0] sm:$0xff] }
  0x11   :  { %7674 = vmatmul.mubr.msk.f32.gmra.mrb[4].mxu0 %vm491_vm1, %v46_v17  ;;  %v62_v49 = vld [vmem:[%s12421_s1 + $0xa8] sm:$0xff]  ;;  %v63_v51 = vld [vmem:[%s12421_s1 + $0xb0] sm:$0xff]  ;;  %v131_v52 = vld [vmem:[%s12419_s2 + $0xc0] sm:$0xff] }
  0x12   :  { %218 = vperm.xlu1 %8326, %v116_v18   ;;  %7676 = vmatprep.mubr.msk.f32.mxu0 %vm491_vm1, %v47_v19  ;;  %v132_v50 = vld [vmem:[%s12419_s2 + $0xc8] sm:$0xff]  ;;  %v64_v53 = vld [vmem:[%s12421_s1 + $0xb8] sm:$0xff]  ;;  %v65_v55 = vld [vmem:[%s12421_s1 + $0xc0] sm:$0xff] }
  0x13   :  { %213 = vperm.xlu0 %8325, %v115_v20   ;;  %v134_v54 = vld [vmem:[%s12419_s2 + $0xd8] sm:$0xff]  ;;  %v133_v56 = vld [vmem:[%s12419_s2 + $0xd0] sm:$0xff]  ;;  %v66_v57 = vld [vmem:[%s12421_s1 + $0xc8] sm:$0xff] }
  0x14   :  { %v136_v58 = vld [vmem:[%s12419_s2 + $0xe8] sm:$0xff]  ;;  %v67_v59 = vld [vmem:[%s12421_s1 + $0xd0] sm:$0xff]  ;;  %v135_v60 = vld [vmem:[%s12419_s2 + $0xe0] sm:$0xff] }
  0x15   :  { %7677 = vmatmul.mubr.msk.f32.gmra.mrb[6].mxu0 %vm491_vm1, %v48_v21  ;;  %v68_v61 = vld [vmem:[%s12421_s1 + $0xd8] sm:$0xff]  ;;  %v69_v63 = vld [vmem:[%s12421_s1 + $0xe0] sm:$0xff]  ;;  %v137_v1 = vld [vmem:[%s12419_s2 + $0xf0] sm:$0xff] }
  0x16   :  { %228 = vperm.xlu1 %8326, %v118_v22   ;;  %7679 = vmatprep.mubr.msk.f32.mxu0 %vm491_vm1, %v49_v23  ;;  %v138_v62 = vld [vmem:[%s12419_s2 + $0xf8] sm:$0xff]  ;;  %v70_v2 = vld [vmem:[%s12421_s1 + $0xe8] sm:$0xff]  ;;  %v71_v4 = vld [vmem:[%s12421_s1 + $0xf0] sm:$0xff] }
  0x17   :  { %223 = vperm.xlu0 %8325, %v117_v24   ;;  %v140_v3 = vld [vmem:[%s12419_s2 + $0x108] sm:$0xff]  ;;  %v139_v5 = vld [vmem:[%s12419_s2 + $0x100] sm:$0xff]  ;;  %v72_v6 = vld [vmem:[%s12421_s1 + $0xf8] sm:$0xff] }
  0x18   :  { %v142_v7 = vld [vmem:[%s12419_s2 + $0x118] sm:$0xff]  ;;  %v73_v8 = vld [vmem:[%s12421_s1 + $0x100] sm:$0xff]  ;;  %v141_v9 = vld [vmem:[%s12419_s2 + $0x110] sm:$0xff] }
  0x19   :  { %7680 = vmatmul.mubr.msk.f32.gmra.mrb[8].mxu0 %vm491_vm1, %v50_v25  ;;  %v74_v10 = vld [vmem:[%s12421_s1 + $0x108] sm:$0xff]  ;;  %v75_v12 = vld [vmem:[%s12421_s1 + $0x110] sm:$0xff]  ;;  %v143_v13 = vld [vmem:[%s12419_s2 + $0x120] sm:$0xff] }
  0x1a   :  { %238 = vperm.xlu1 %8326, %v120_v26   ;;  %7682 = vmatprep.mubr.msk.f32.mxu0 %vm491_vm1, %v51_v27  ;;  %v144_v11 = vld [vmem:[%s12419_s2 + $0x128] sm:$0xff]  ;;  %v76_v14 = vld [vmem:[%s12421_s1 + $0x118] sm:$0xff]  ;;  %v77_v16 = vld [vmem:[%s12421_s1 + $0x120] sm:$0xff] }
  0x1b   :  { %233 = vperm.xlu0 %8325, %v119_v28   ;;  %v146_v15 = vld [vmem:[%s12419_s2 + $0x138] sm:$0xff]  ;;  %v145_v17 = vld [vmem:[%s12419_s2 + $0x130] sm:$0xff]  ;;  %v78_v18 = vld [vmem:[%s12421_s1 + $0x128] sm:$0xff] }
  0x1c   :  { %v148_v19 = vld [vmem:[%s12419_s2 + $0x148] sm:$0xff]  ;;  %v79_v20 = vld [vmem:[%s12421_s1 + $0x130] sm:$0xff]  ;;  %v147_v21 = vld [vmem:[%s12419_s2 + $0x140] sm:$0xff] }
  0x1d   :  { %7683 = vmatmul.mubr.msk.f32.gmra.mrb[10].mxu0 %vm491_vm1, %v52_v29  ;;  %v80_v22 = vld [vmem:[%s12421_s1 + $0x138] sm:$0xff]  ;;  %v81_v24 = vld [vmem:[%s12421_s1 + $0x140] sm:$0xff]  ;;  %v149_v25 = vld [vmem:[%s12419_s2 + $0x150] sm:$0xff] }
  0x1e   :  { %248 = vperm.xlu1 %8326, %v122_v30   ;;  %7685 = vmatprep.mubr.msk.f32.mxu0 %vm491_vm1, %v53_v31  ;;  %v150_v23 = vld [vmem:[%s12419_s2 + $0x158] sm:$0xff]  ;;  %v82_v26 = vld [vmem:[%s12421_s1 + $0x148] sm:$0xff]  ;;  %v83_v28 = vld [vmem:[%s12421_s1 + $0x150] sm:$0xff] }
  0x1f   :  { %243 = vperm.xlu0 %8325, %v121_v32   ;;  %v152_v27 = vld [vmem:[%s12419_s2 + $0x168] sm:$0xff]  ;;  %v151_v29 = vld [vmem:[%s12419_s2 + $0x160] sm:$0xff]  ;;  %v84_v30 = vld [vmem:[%s12421_s1 + $0x158] sm:$0xff] }
  0x20   :  { %v154_v31 = vld [vmem:[%s12419_s2 + $0x178] sm:$0xff]  ;;  %v85_v32 = vld [vmem:[%s12421_s1 + $0x160] sm:$0xff] }
  0x21   :  { %7686 = vmatmul.mubr.msk.f32.gmra.mrb[12].mxu0 %vm491_vm1, %v54_v33  ;;  %v153_v33 = vld [vmem:[%s12419_s2 + $0x170] sm:$0xff] }
  0x22   :  { %258 = vperm.xlu1 %8326, %v124_v34   ;;  %7688 = vmatprep.mubr.msk.f32.mxu0 %vm491_vm1, %v55_v35  ;;  %v86_v34 = vld [vmem:[%s12421_s1 + $0x168] sm:$0xff] }
  0x23   :  { %253 = vperm.xlu0 %8325, %v123_v36   ;;  %v156_v35 = vld [vmem:[%s12419_s2 + $0x188] sm:$0xff]  ;;  %v87_v36 = vld [vmem:[%s12421_s1 + $0x170] sm:$0xff] }
  0x25   :  { %7689 = vmatmul.mubr.msk.f32.gmra.mrb[14].mxu0 %vm491_vm1, %v56_v37  ;;  %v155_v37 = vld [vmem:[%s12419_s2 + $0x180] sm:$0xff] }
  0x26   :  { %268 = vperm.xlu1 %8326, %v126_v38   ;;  %7691 = vmatprep.mubr.msk.f32.mxu0 %vm491_vm1, %v57_v39  ;;  %v88_v38 = vld [vmem:[%s12421_s1 + $0x178] sm:$0xff] }
  0x27   :  { %263 = vperm.xlu0 %8325, %v125_v40   ;;  %v158_v39 = vld [vmem:[%s12419_s2 + $0x198] sm:$0xff]  ;;  %v89_v40 = vld [vmem:[%s12421_s1 + $0x180] sm:$0xff] }
  0x29   :  { %7692 = vmatmul.mubr.msk.f32.gmra.mrb[16].mxu0 %vm491_vm1, %v58_v41  ;;  %v157_v41 = vld [vmem:[%s12419_s2 + $0x190] sm:$0xff] }
  0x2a   :  { %278 = vperm.xlu1 %8326, %v128_v42   ;;  %7694 = vmatprep.mubr.msk.f32.mxu0 %vm491_vm1, %v59_v43  ;;  %v90_v42 = vld [vmem:[%s12421_s1 + $0x188] sm:$0xff] }
  0x2b   :  { %273 = vperm.xlu0 %8325, %v127_v44   ;;  %v160_v43 = vld [vmem:[%s12419_s2 + $0x1a8] sm:$0xff]  ;;  %v91_v44 = vld [vmem:[%s12421_s1 + $0x190] sm:$0xff] }
  0x2d   :  { %7695 = vmatmul.mubr.msk.f32.gmra.mrb[18].mxu0 %vm491_vm1, %v60_v45  ;;  %v159_v45 = vld [vmem:[%s12419_s2 + $0x1a0] sm:$0xff] }
  0x2e   :  { %288 = vperm.xlu1 %8326, %v130_v46   ;;  %7697 = vmatprep.mubr.msk.f32.mxu0 %vm491_vm1, %v61_v47  ;;  %v92_v46 = vld [vmem:[%s12421_s1 + $0x198] sm:$0xff] }
  0x2f   :  { %283 = vperm.xlu0 %8325, %v129_v48   ;;  %v162_v47 = vld [vmem:[%s12419_s2 + $0x1b8] sm:$0xff]  ;;  %v93_v48 = vld [vmem:[%s12421_s1 + $0x1a0] sm:$0xff] }
  0x31   :  { %7698 = vmatmul.mubr.msk.f32.gmra.mrb[20].mxu0 %vm491_vm1, %v62_v49  ;;  %v161_v49 = vld [vmem:[%s12419_s2 + $0x1b0] sm:$0xff] }
  0x32   :  { %298 = vperm.xlu1 %8326, %v132_v50   ;;  %7700 = vmatprep.mubr.msk.f32.mxu0 %vm491_vm1, %v63_v51  ;;  %v94_v50 = vld [vmem:[%s12421_s1 + $0x1a8] sm:$0xff] }
  0x33   :  { %293 = vperm.xlu0 %8325, %v131_v52   ;;  %v164_v51 = vld [vmem:[%s12419_s2 + $0x1c8] sm:$0xff]  ;;  %v95_v52 = vld [vmem:[%s12421_s1 + $0x1b0] sm:$0xff] }
  0x35   :  { %7701 = vmatmul.mubr.msk.f32.gmra.mrb[22].mxu0 %vm491_vm1, %v64_v53  ;;  %v163_v53 = vld [vmem:[%s12419_s2 + $0x1c0] sm:$0xff] }
  0x36   :  { %308 = vperm.xlu1 %8326, %v134_v54   ;;  %7703 = vmatprep.mubr.msk.f32.mxu0 %vm491_vm1, %v65_v55  ;;  %v96_v54 = vld [vmem:[%s12421_s1 + $0x1b8] sm:$0xff] }
  0x37   :  { %303 = vperm.xlu0 %8325, %v133_v56   ;;  %v166_v55 = vld [vmem:[%s12419_s2 + $0x1d8] sm:$0xff]  ;;  %v97_v56 = vld [vmem:[%s12421_s1 + $0x1c0] sm:$0xff] }
  0x39   :  { %7704 = vmatmul.mubr.msk.f32.gmra.mrb[24].mxu0 %vm491_vm1, %v66_v57  ;;  %v165_v57 = vld [vmem:[%s12419_s2 + $0x1d0] sm:$0xff] }
  0x3a   :  { %318 = vperm.xlu1 %8326, %v136_v58   ;;  %7706 = vmatprep.mubr.msk.f32.mxu0 %vm491_vm1, %v67_v59  ;;  %v98_v58 = vld [vmem:[%s12421_s1 + $0x1c8] sm:$0xff] }
  0x3b   :  { %313 = vperm.xlu0 %8325, %v135_v60   ;;  %v168_v59 = vld [vmem:[%s12419_s2 + $0x1e8] sm:$0xff]  ;;  %v99_v60 = vld [vmem:[%s12421_s1 + $0x1d0] sm:$0xff] }
  0x3d   :  { %7707 = vmatmul.mubr.msk.f32.gmra.mrb[26].mxu0 %vm491_vm1, %v68_v61  ;;  %v167_v61 = vld [vmem:[%s12419_s2 + $0x1e0] sm:$0xff] }
  0x3e   :  { %328 = vperm.xlu1 %8326, %v138_v62   ;;  %7709 = vmatprep.mubr.msk.f32.mxu0 %vm491_vm1, %v69_v63  ;;  %v100_v62 = vld [vmem:[%s12421_s1 + $0x1d8] sm:$0xff] }
  0x3f   :  { %323 = vperm.xlu0 %8325, %v137_v1   ;;  %v170_v63 = vld [vmem:[%s12419_s2 + $0x1f8] sm:$0xff]  ;;  %v101_v1 = vld [vmem:[%s12421_s1 + $0x1e0] sm:$0xff] }
  0x41   :  { %7710 = vmatmul.mubr.msk.f32.gmra.mrb[28].mxu0 %vm491_vm1, %v70_v2  ;;  %v169_v2 = vld [vmem:[%s12419_s2 + $0x1f0] sm:$0xff] }
  0x42   :  { %338 = vperm.xlu1 %8326, %v140_v3   ;;  %7712 = vmatprep.mubr.msk.f32.mxu0 %vm491_vm1, %v71_v4  ;;  %v102_v3 = vld [vmem:[%s12421_s1 + $0x1e8] sm:$0xff] }
  0x43   :  { %333 = vperm.xlu0 %8325, %v139_v5   ;;  %v1298_v4 = vld [vmem:[%s12422_s4 + $0x8] sm:$0xff]  ;;  %v103_v5 = vld [vmem:[%s12421_s1 + $0x1f0] sm:$0xff] }
  0x45   :  { %7713 = vmatmul.mubr.msk.f32.gmra.mrb[30].mxu0 %vm491_vm1, %v72_v6  ;;  %v1297_v6 = vld [vmem:[%s12422_s4] sm:$0xff] }
  0x46   :  { %348 = vperm.xlu1 %8326, %v142_v7   ;;  %7715 = vmatprep.mubr.msk.f32.mxu0 %vm491_vm1, %v73_v8 }
  0x47   :  { %343 = vperm.xlu0 %8325, %v141_v9   ;;  %v104_v9 = vld [vmem:[%s12421_s1 + $0x1f8] sm:$0xff] }
  0x49   :  { %7716 = vmatmul.mubr.msk.f32.gmra.mrb[32].mxu0 %vm491_vm1, %v74_v10  ;;  %v1300_v10 = vld [vmem:[%s12422_s4 + $0x18] sm:$0xff] }
  0x4a   :  { %358 = vperm.xlu1 %8326, %v144_v11   ;;  %7718 = vmatprep.mubr.msk.f32.mxu0 %vm491_vm1, %v75_v12  ;;  %v1299_v11 = vld [vmem:[%s12422_s4 + $0x10] sm:$0xff] }
  0x4b   :  { %353 = vperm.xlu0 %8325, %v143_v13  }
  0x4d   :  { %7719 = vmatmul.mubr.msk.f32.gmra.mrb[34].mxu0 %vm491_vm1, %v76_v14  ;;  %v1302_v14 = vld [vmem:[%s12422_s4 + $0x28] sm:$0xff] }
  0x4e   :  { %368 = vperm.xlu1 %8326, %v146_v15   ;;  %7721 = vmatprep.mubr.msk.f32.mxu0 %vm491_vm1, %v77_v16  ;;  %v1301_v15 = vld [vmem:[%s12422_s4 + $0x20] sm:$0xff] }
  0x4f   :  { %363 = vperm.xlu0 %8325, %v145_v17  }
  0x51   :  { %7722 = vmatmul.mubr.msk.f32.gmra.mrb[36].mxu0 %vm491_vm1, %v78_v18  ;;  %v1304_v18 = vld [vmem:[%s12422_s4 + $0x38] sm:$0xff] }
  0x52   :  { %378 = vperm.xlu1 %8326, %v148_v19   ;;  %7724 = vmatprep.mubr.msk.f32.mxu0 %vm491_vm1, %v79_v20  ;;  %v1303_v19 = vld [vmem:[%s12422_s4 + $0x30] sm:$0xff] }
  0x53   :  { %373 = vperm.xlu0 %8325, %v147_v21  }
  0x55   :  { %7725 = vmatmul.mubr.msk.f32.gmra.mrb[38].mxu0 %vm491_vm1, %v80_v22  ;;  %v1306_v22 = vld [vmem:[%s12422_s4 + $0x48] sm:$0xff] }
  0x56   :  { %388 = vperm.xlu1 %8326, %v150_v23   ;;  %7727 = vmatprep.mubr.msk.f32.mxu0 %vm491_vm1, %v81_v24  ;;  %v1305_v23 = vld [vmem:[%s12422_s4 + $0x40] sm:$0xff] }
  0x57   :  { %383 = vperm.xlu0 %8325, %v149_v25  }
  0x59   :  { %7728 = vmatmul.mubr.msk.f32.gmra.mrb[40].mxu0 %vm491_vm1, %v82_v26  ;;  %v1308_v26 = vld [vmem:[%s12422_s4 + $0x58] sm:$0xff] }
  0x5a   :  { %398 = vperm.xlu1 %8326, %v152_v27   ;;  %7730 = vmatprep.mubr.msk.f32.mxu0 %vm491_vm1, %v83_v28  ;;  %v1307_v27 = vld [vmem:[%s12422_s4 + $0x50] sm:$0xff] }
  0x5b   :  { %393 = vperm.xlu0 %8325, %v151_v29  }
  0x5d   :  { %7731 = vmatmul.mubr.msk.f32.gmra.mrb[42].mxu0 %vm491_vm1, %v84_v30  ;;  %v1310_v30 = vld [vmem:[%s12422_s4 + $0x68] sm:$0xff] }
  0x5e   :  { %408 = vperm.xlu1 %8326, %v154_v31   ;;  %7733 = vmatprep.mubr.msk.f32.mxu0 %vm491_vm1, %v85_v32  ;;  %v1309_v31 = vld [vmem:[%s12422_s4 + $0x60] sm:$0xff] }
  0x5f   :  { %403 = vperm.xlu0 %8325, %v153_v33  }
  0x61   :  { %7734 = vmatmul.mubr.msk.f32.gmra.mrb[44].mxu0 %vm491_vm1, %v86_v34  ;;  %v1312_v34 = vld [vmem:[%s12422_s4 + $0x78] sm:$0xff] }
  0x62   :  { %418 = vperm.xlu1 %8326, %v156_v35   ;;  %7736 = vmatprep.mubr.msk.f32.mxu0 %vm491_vm1, %v87_v36  ;;  %v1311_v35 = vld [vmem:[%s12422_s4 + $0x70] sm:$0xff] }
  0x63   :  { %413 = vperm.xlu0 %8325, %v155_v37  }
  0x65   :  { %7737 = vmatmul.mubr.msk.f32.gmra.mrb[46].mxu0 %vm491_vm1, %v88_v38  ;;  %v1314_v38 = vld [vmem:[%s12422_s4 + $0x88] sm:$0xff] }
  0x66   :  { %428 = vperm.xlu1 %8326, %v158_v39   ;;  %7739 = vmatprep.mubr.msk.f32.mxu0 %vm491_vm1, %v89_v40  ;;  %v1313_v39 = vld [vmem:[%s12422_s4 + $0x80] sm:$0xff] }
  0x67   :  { %423 = vperm.xlu0 %8325, %v157_v41   ;;  %v8329_v40 = vld [vmem:[%s12423_s3 + $0x4] ss:$16 sps:$4 sm:$0xff]  }
  0x68   :  { %2353 = vmatprep.mubr.bf16.mxu1 %v8329_v40  ;;  %v1338_v40 = vld [vmem:[%s12422_s4 + $0x148] sm:$0xff] }
  0x69   :  { %7740 = vmatmul.mubr.msk.f32.gmra.mrb[48].mxu0 %vm491_vm1, %v90_v42 }
  0x6a   :  { %438 = vperm.xlu1 %8326, %v160_v43   ;;  %7742 = vmatprep.mubr.msk.f32.mxu0 %vm491_vm1, %v91_v44  ;;  %v1316_v43 = vld [vmem:[%s12422_s4 + $0x98] sm:$0xff]  ;;  %v1315_v44 = vld [vmem:[%s12422_s4 + $0x90] sm:$0xff] }
  0x6b   :  { %433 = vperm.xlu0 %8325, %v159_v45  }
  0x6d   :  { %7743 = vmatmul.mubr.msk.f32.gmra.mrb[50].mxu0 %vm491_vm1, %v92_v46 }
  0x6e   :  { %448 = vperm.xlu1 %8326, %v162_v47   ;;  %7745 = vmatprep.mubr.msk.f32.mxu0 %vm491_vm1, %v93_v48  ;;  %v1318_v47 = vld [vmem:[%s12422_s4 + $0xa8] sm:$0xff]  ;;  %v1317_v48 = vld [vmem:[%s12422_s4 + $0xa0] sm:$0xff] }
  0x6f   :  { %443 = vperm.xlu0 %8325, %v161_v49  }
  0x71   :  { %7746 = vmatmul.mubr.msk.f32.gmra.mrb[52].mxu0 %vm491_vm1, %v94_v50 }
  0x72   :  { %458 = vperm.xlu1 %8326, %v164_v51   ;;  %7748 = vmatprep.mubr.msk.f32.mxu0 %vm491_vm1, %v95_v52  ;;  %v1320_v51 = vld [vmem:[%s12422_s4 + $0xb8] sm:$0xff]  ;;  %v1319_v52 = vld [vmem:[%s12422_s4 + $0xb0] sm:$0xff] }
  0x73   :  { %453 = vperm.xlu0 %8325, %v163_v53  }
  0x75   :  { %7749 = vmatmul.mubr.msk.f32.gmra.mrb[54].mxu0 %vm491_vm1, %v96_v54 }
  0x76   :  { %468 = vperm.xlu1 %8326, %v166_v55   ;;  %7751 = vmatprep.mubr.msk.f32.mxu0 %vm491_vm1, %v97_v56  ;;  %v1322_v55 = vld [vmem:[%s12422_s4 + $0xc8] sm:$0xff]  ;;  %v1321_v56 = vld [vmem:[%s12422_s4 + $0xc0] sm:$0xff] }
  0x77   :  { %463 = vperm.xlu0 %8325, %v165_v57  }
  0x79   :  { %7752 = vmatmul.mubr.msk.f32.gmra.mrb[56].mxu0 %vm491_vm1, %v98_v58 }
  0x7a   :  { %478 = vperm.xlu1 %8326, %v168_v59   ;;  %7754 = vmatprep.mubr.msk.f32.mxu0 %vm491_vm1, %v99_v60  ;;  %v1324_v59 = vld [vmem:[%s12422_s4 + $0xd8] sm:$0xff]  ;;  %v1323_v60 = vld [vmem:[%s12422_s4 + $0xd0] sm:$0xff] }
  0x7b   :  { %473 = vperm.xlu0 %8325, %v167_v61  }
  0x7d   :  { %7755 = vmatmul.mubr.msk.f32.gmra.mrb[58].mxu0 %vm491_vm1, %v100_v62 }
  0x7e   :  { %488 = vperm.xlu1 %8326, %v170_v63   ;;  %7757 = vmatprep.mubr.msk.f32.mxu0 %vm491_vm1, %v101_v1  ;;  %v1326_v63 = vld [vmem:[%s12422_s4 + $0xe8] sm:$0xff]  ;;  %v1325_v1 = vld [vmem:[%s12422_s4 + $0xe0] sm:$0xff] }
  0x7f   :  { %483 = vperm.xlu0 %8325, %v169_v2  }
  0x81   :  { %7758 = vmatmul.mubr.msk.f32.gmra.mrb[60].mxu0 %vm491_vm1, %v102_v3  ;;  %v9424_v7 = vpop.permute.xlu1 %183  ;;  %v9426_v8 = vpop.permute.xlu0 %173 }
  0x82   :  { %1368 = vperm.xlu1 %8326, %v1298_v4   ;;  %7760 = vmatprep.mubr.msk.f32.mxu0 %vm491_vm1, %v103_v5  ;;  %v1328_v4 = vld [vmem:[%s12422_s4 + $0xf8] sm:$0xff]  ;;  %v1327_v5 = vld [vmem:[%s12422_s4 + $0xf0] sm:$0xff] }
  0x83   :  { %1363 = vperm.xlu0 %8325, %v1297_v6  }
  0x85   :  { %7761 = vmatmul.mubr.msk.f32.gmra.mrb[62].mxu0 %vm491_vm1, %v104_v9  ;;  %v9439_v12 = vpop.permute.xlu1 %188 }
  0x86   :  { %v9441_v13 = vpop.permute.xlu0 %178  ;;  %1378 = vperm.xlu1 %8326, %v1300_v10   ;;  %v1330_v10 = vld [vmem:[%s12422_s4 + $0x108] sm:$0xff] }
  0x87   :  { %1373 = vperm.xlu0 %8325, %v1299_v11   ;;  %v1329_v11 = vld [vmem:[%s12422_s4 + $0x100] sm:$0xff] }
  0x89   :  { %v9449_v16 = vpop.permute.xlu1 %198 }
  0x8a   :  { %v9451_v17 = vpop.permute.xlu0 %193  ;;  %1388 = vperm.xlu1 %8326, %v1302_v14  }
  0x8b   :  { %1383 = vperm.xlu0 %8325, %v1301_v15  }
  0x8d   :  { %v9459_v20 = vpop.permute.xlu1 %208 }
  0x8e   :  { %v9461_v21 = vpop.permute.xlu0 %203  ;;  %1398 = vperm.xlu1 %8326, %v1304_v18   ;;  %v1332_v18 = vld [vmem:[%s12422_s4 + $0x118] sm:$0xff] }
  0x8f   :  { %1393 = vperm.xlu0 %8325, %v1303_v19   ;;  %v1331_v19 = vld [vmem:[%s12422_s4 + $0x110] sm:$0xff] }
  0x91   :  { %v9469_v24 = vpop.permute.xlu1 %218 }
  0x92   :  { %v9471_v25 = vpop.permute.xlu0 %213  ;;  %1408 = vperm.xlu1 %8326, %v1306_v22  }
  0x93   :  { %1403 = vperm.xlu0 %8325, %v1305_v23  }
  0x95   :  { %v9479_v28 = vpop.permute.xlu1 %228 }
  0x96   :  { %v9481_v29 = vpop.permute.xlu0 %223  ;;  %1418 = vperm.xlu1 %8326, %v1308_v26   ;;  %v1334_v26 = vld [vmem:[%s12422_s4 + $0x128] sm:$0xff] }
  0x97   :  { %1413 = vperm.xlu0 %8325, %v1307_v27   ;;  %v1333_v27 = vld [vmem:[%s12422_s4 + $0x120] sm:$0xff] }
  0x99   :  { %v9489_v32 = vpop.permute.xlu1 %238 }
  0x9a   :  { %v9491_v33 = vpop.permute.xlu0 %233  ;;  %1428 = vperm.xlu1 %8326, %v1310_v30  }
  0x9b   :  { %1423 = vperm.xlu0 %8325, %v1309_v31  }
  0x9d   :  { %v9499_v36 = vpop.permute.xlu1 %248 }
  0x9e   :  { %v9501_v37 = vpop.permute.xlu0 %243  ;;  %1438 = vperm.xlu1 %8326, %v1312_v34   ;;  %v1336_v34 = vld [vmem:[%s12422_s4 + $0x138] sm:$0xff] }
  0x9f   :  { %1433 = vperm.xlu0 %8325, %v1311_v35   ;;  %v1335_v35 = vld [vmem:[%s12422_s4 + $0x130] sm:$0xff] }
  0xa1   :  { %v9512_v41 = vpop.permute.xlu1 %258 }
  0xa2   :  { %v9514_v42 = vpop.permute.xlu0 %253  ;;  %1448 = vperm.xlu1 %8326, %v1314_v38  }
  0xa3   :  { %1443 = vperm.xlu0 %8325, %v1313_v39  }
  0xa5   :  { %v9522_v45 = vpop.permute.xlu1 %268 }
  0xa6   :  { %v9524_v46 = vpop.permute.xlu0 %263  ;;  %1458 = vperm.xlu1 %8326, %v1316_v43   ;;  %v1337_v43 = vld [vmem:[%s12422_s4 + $0x140] sm:$0xff] }
  0xa7   :  { %1453 = vperm.xlu0 %8325, %v1315_v44  }
  0xa9   :  { %v9532_v49 = vpop.permute.xlu1 %278 }
  0xaa   :  { %v9534_v50 = vpop.permute.xlu0 %273  ;;  %1468 = vperm.xlu1 %8326, %v1318_v47  }
  0xab   :  { %1463 = vperm.xlu0 %8325, %v1317_v48   ;;  %v1340_v48 = vld [vmem:[%s12422_s4 + $0x158] sm:$0xff] }
  0xad   :  { %v9542_v53 = vpop.permute.xlu1 %288 }
  0xae   :  { %v9544_v54 = vpop.permute.xlu0 %283  ;;  %1478 = vperm.xlu1 %8326, %v1320_v51   ;;  %v1339_v51 = vld [vmem:[%s12422_s4 + $0x150] sm:$0xff] }
  0xaf   :  { %1473 = vperm.xlu0 %8325, %v1319_v52  }
  0xb1   :  { %v9552_v57 = vpop.permute.xlu1 %298 }
  0xb2   :  { %v9554_v58 = vpop.permute.xlu0 %293  ;;  %1488 = vperm.xlu1 %8326, %v1322_v55  }
  0xb3   :  { %1483 = vperm.xlu0 %8325, %v1321_v56   ;;  %v1342_v56 = vld [vmem:[%s12422_s4 + $0x168] sm:$0xff] }
  0xb5   :  { %v9562_v61 = vpop.permute.xlu1 %308 }
  0xb6   :  { %v9564_v62 = vpop.permute.xlu0 %303  ;;  %1498 = vperm.xlu1 %8326, %v1324_v59   ;;  %v1341_v59 = vld [vmem:[%s12422_s4 + $0x160] sm:$0xff] }
  0xb7   :  { %1493 = vperm.xlu0 %8325, %v1323_v60  }
  0xb9   :  { %v9572_v2 = vpop.permute.xlu1 %318 }
  0xba   :  { %v9574_v3 = vpop.permute.xlu0 %313  ;;  %1508 = vperm.xlu1 %8326, %v1326_v63  }
  0xbb   :  { %1503 = vperm.xlu0 %8325, %v1325_v1   ;;  %v1344_v1 = vld [vmem:[%s12422_s4 + $0x178] sm:$0xff] }
  0xbd   :  { %v9582_v6 = vpop.permute.xlu1 %328 }
  0xbe   :  { %v9584_v9 = vpop.permute.xlu0 %323  ;;  %1518 = vperm.xlu1 %8326, %v1328_v4  }
  0xbf   :  { %1513 = vperm.xlu0 %8325, %v1327_v5   ;;  %v1343_v5 = vld [vmem:[%s12422_s4 + $0x170] sm:$0xff] }
  0xc1   :  { %v9592_v14 = vpop.permute.xlu1 %338 }
  0xc2   :  { %v9594_v15 = vpop.permute.xlu0 %333  ;;  %1528 = vperm.xlu1 %8326, %v1330_v10  }
  0xc3   :  { %1523 = vperm.xlu0 %8325, %v1329_v11  }
  0xc5   :  { %v9602_v22 = vpop.permute.xlu1 %348 }
  0xc6   :  { %v9604_v23 = vpop.permute.xlu0 %343  ;;  %1538 = vperm.xlu1 %8326, %v1332_v18  }
  0xc7   :  { %1533 = vperm.xlu0 %8325, %v1331_v19  }
  0xc9   :  { %v9612_v30 = vpop.permute.xlu1 %358 }
  0xca   :  { %v9614_v31 = vpop.permute.xlu0 %353  ;;  %1548 = vperm.xlu1 %8326, %v1334_v26  }
  0xcb   :  { %1543 = vperm.xlu0 %8325, %v1333_v27   ;;  %v1346_v27 = vld [vmem:[%s12422_s4 + $0x188] sm:$0xff] }
  0xcd   :  { %v9622_v38 = vpop.permute.xlu1 %368 }
  0xce   :  { %v9624_v39 = vpop.permute.xlu0 %363  ;;  %1558 = vperm.xlu1 %8326, %v1336_v34  }
  0xcf   :  { %1553 = vperm.xlu0 %8325, %v1335_v35  }
  0xd1   :  { %v9632_v44 = vpop.permute.xlu1 %378 }
  0xd2   :  { %v9634_v47 = vpop.permute.xlu0 %373  ;;  %1568 = vperm.xlu1 %8326, %v1338_v40   ;;  %v1345_v40 = vld [vmem:[%s12422_s4 + $0x180] sm:$0xff] }
  0xd3   :  { %1563 = vperm.xlu0 %8325, %v1337_v43  }
  0xd5   :  { %v9642_v52 = vpop.permute.xlu1 %388 }
  0xd6   :  { %v9644_v55 = vpop.permute.xlu0 %383  ;;  %1578 = vperm.xlu1 %8326, %v1340_v48  }
  0xd7   :  { %1573 = vperm.xlu0 %8325, %v1339_v51  }
  0xd9   :  { %v9652_v60 = vpop.permute.xlu1 %398 }
  0xda   :  { %v9654_v63 = vpop.permute.xlu0 %393  ;;  %1588 = vperm.xlu1 %8326, %v1342_v56  }
  0xdb   :  { %1583 = vperm.xlu0 %8325, %v1341_v59  }
  0xdc   :  { %v7669_v4 = vpop.f32.mrb[0].mxu0 }
  0xdd   :  { %v760_v10 = vadd.f32 %v7669_v4, %v9441_v13  ;;  %v754_v11 = vpop.f32.mrb[1].mxu0  ;;  %v9663_v18 = vpop.permute.xlu1 %408  ;;  %v1348_v4 = vld [vmem:[%s12422_s4 + $0x198] sm:$0xff] }
  0xde   :  { %v755_v19 = vadd.f32 %v754_v11, %v9426_v8  ;;  %v9666_v26 = vpop.permute.xlu0 %403  ;;  %1598 = vperm.xlu1 %8326, %v1344_v1  }
  0xdf   :  { %1593 = vperm.xlu0 %8325, %v1343_v5   ;;  %v1074_v34 = vmax.f32 %v760_v10, 0.0 }
  0xe0   :  { %v7672_v35 = vpop.f32.mrb[2].mxu0  ;;  %v1073_v13 = vmax.f32 %v755_v19, 0.0 }
  0xe1   :  { %v770_v43 = vadd.f32 %v7672_v35, %v9439_v12  ;;  %v764_v48 = vpop.f32.mrb[3].mxu0  ;;  %v9675_v51 = vpop.permute.xlu1 %418  ;;  %v1347_v12 = vld [vmem:[%s12422_s4 + $0x190] sm:$0xff] }
  0xe2   :  { %v765_v8 = vadd.f32 %v764_v48, %v9424_v7  ;;  %v9678_v56 = vpop.permute.xlu0 %413  ;;  %1608 = vperm.xlu1 %8326, %v1346_v27   ;;  %v1265_v59 = vpack.c.bf16 %v1074_v34, %v1073_v13  ;;  %v1350_v13 = vld [vmem:[%s12422_s4 + $0x1a8] sm:$0xff] }
  0xe3   :  { %v1076_v1 = vmax.f32 %v770_v43, 0.0  ;;  %1603 = vperm.xlu0 %8325, %v1345_v40  }
  0xe4   :  { %v1075_v5 = vmax.f32 %v765_v8, 0.0  ;;  %v7675_v10 = vpop.f32.mrb[4].mxu0  ;;  %2322 = vmatpush1.bf16.msra.mxu1 %v1265_v59 }
  0xe5   :  { %v780_v11 = vadd.f32 %v7675_v10, %v9449_v16  ;;  %v774_v7 = vpop.f32.mrb[5].mxu0  ;;  %v9687_v19 = vpop.permute.xlu1 %428  ;;  %2323 = vmatprep.subr.bf16.mxu1 %v12431_v0  ;;  %v1349_v16 = vld [vmem:[%s12422_s4 + $0x1a0] sm:$0xff] }
  0xe6   :  { %v775_v27 = vadd.f32 %v774_v7, %v9451_v17  ;;  %v9691_v34 = vpop.permute.xlu0 %423  ;;  %1618 = vperm.xlu1 %8326, %v1348_v4   ;;  %v1266_v35 = vpack.c.bf16 %v1076_v1, %v1075_v5 }
  0xe7   :  { %v1078_v40 = vmax.f32 %v780_v11, 0.0  ;;  %1613 = vperm.xlu0 %8325, %v1347_v12   ;;  %v1352_v12 = vld [vmem:[%s12422_s4 + $0x1b8] sm:$0xff] }
  0xe8   :  { %v1077_v43 = vmax.f32 %v775_v27, 0.0  ;;  %v7678_v48 = vpop.f32.mrb[6].mxu0  ;;  %2324 = vmatpush1.bf16.msra.mxu1 %v1266_v35 }
  0xe9   :  { %v790_v8 = vadd.f32 %v7678_v48, %v9459_v20  ;;  %v784_v17 = vpop.f32.mrb[7].mxu0  ;;  %v9700_v59 = vpop.permute.xlu1 %438  ;;  %2325 = vmatprep.subr.bf16.mxu1 %v12431_v0  ;;  %v1351_v20 = vld [vmem:[%s12422_s4 + $0x1b0] sm:$0xff] }
  0xea   :  { %v785_v1 = vadd.f32 %v784_v17, %v9461_v21  ;;  %v9704_v4 = vpop.permute.xlu0 %433  ;;  %1628 = vperm.xlu1 %8326, %v1350_v13   ;;  %v1267_v5 = vpack.c.bf16 %v1078_v40, %v1077_v43 }
  0xeb   :  { %v1080_v10 = vmax.f32 %v790_v8, 0.0  ;;  %1623 = vperm.xlu0 %8325, %v1349_v16   ;;  %v1354_v16 = vld [vmem:[%s12422_s4 + $0x1c8] sm:$0xff] }
  0xec   :  { %v1079_v11 = vmax.f32 %v785_v1, 0.0  ;;  %v7681_v7 = vpop.f32.mrb[8].mxu0  ;;  %2326 = vmatpush1.bf16.msra.mxu1 %v1267_v5 }
  0xed   :  { %v800_v27 = vadd.f32 %v7681_v7, %v9469_v24  ;;  %v794_v21 = vpop.f32.mrb[9].mxu0  ;;  %v9713_v35 = vpop.permute.xlu1 %448  ;;  %2327 = vmatprep.subr.bf16.mxu1 %v12431_v0  ;;  %v1353_v24 = vld [vmem:[%s12422_s4 + $0x1c0] sm:$0xff] }
  0xee   :  { %v795_v40 = vadd.f32 %v794_v21, %v9471_v25  ;;  %v9717_v13 = vpop.permute.xlu0 %443  ;;  %1638 = vperm.xlu1 %8326, %v1352_v12   ;;  %v1268_v43 = vpack.c.bf16 %v1080_v10, %v1079_v11 }
  0xef   :  { %v1082_v48 = vmax.f32 %v800_v27, 0.0  ;;  %1633 = vperm.xlu0 %8325, %v1351_v20   ;;  %v1356_v20 = vld [vmem:[%s12422_s4 + $0x1d8] sm:$0xff] }
  0xf0   :  { %v1081_v8 = vmax.f32 %v795_v40, 0.0  ;;  %v7684_v17 = vpop.f32.mrb[10].mxu0  ;;  %2328 = vmatpush1.bf16.msra.mxu1 %v1268_v43 }
  0xf1   :  { %v810_v1 = vadd.f32 %v7684_v17, %v9479_v28  ;;  %v804_v25 = vpop.f32.mrb[11].mxu0  ;;  %v9726_v5 = vpop.permute.xlu1 %458  ;;  %2329 = vmatprep.subr.bf16.mxu1 %v12431_v0  ;;  %v1355_v28 = vld [vmem:[%s12422_s4 + $0x1d0] sm:$0xff] }
  0xf2   :  { %v805_v10 = vadd.f32 %v804_v25, %v9481_v29  ;;  %v9730_v12 = vpop.permute.xlu0 %453  ;;  %1648 = vperm.xlu1 %8326, %v1354_v16   ;;  %v1269_v11 = vpack.c.bf16 %v1082_v48, %v1081_v8 }
  0xf3   :  { %v1084_v7 = vmax.f32 %v810_v1, 0.0  ;;  %1643 = vperm.xlu0 %8325, %v1353_v24   ;;  %v1358_v24 = vld [vmem:[%s12422_s4 + $0x1e8] sm:$0xff] }
  0xf4   :  { %v1083_v27 = vmax.f32 %v805_v10, 0.0  ;;  %v7687_v21 = vpop.f32.mrb[12].mxu0  ;;  %2330 = vmatpush1.bf16.msra.mxu1 %v1269_v11 }
  0xf5   :  { %v820_v40 = vadd.f32 %v7687_v21, %v9489_v32  ;;  %v814_v29 = vpop.f32.mrb[13].mxu0  ;;  %v9739_v43 = vpop.permute.xlu1 %468  ;;  %2331 = vmatprep.subr.bf16.mxu1 %v12431_v0  ;;  %v1357_v32 = vld [vmem:[%s12422_s4 + $0x1e0] sm:$0xff] }
  0xf6   :  { %v815_v48 = vadd.f32 %v814_v29, %v9491_v33  ;;  %v9743_v16 = vpop.permute.xlu0 %463  ;;  %1658 = vperm.xlu1 %8326, %v1356_v20   ;;  %v1270_v8 = vpack.c.bf16 %v1084_v7, %v1083_v27 }
  0xf7   :  { %v1086_v17 = vmax.f32 %v820_v40, 0.0  ;;  %1653 = vperm.xlu0 %8325, %v1355_v28   ;;  %v1360_v28 = vld [vmem:[%s12422_s4 + $0x1f8] sm:$0xff] }
  0xf8   :  { %v1085_v1 = vmax.f32 %v815_v48, 0.0  ;;  %v7690_v25 = vpop.f32.mrb[14].mxu0  ;;  %2332 = vmatpush1.bf16.msra.mxu1 %v1270_v8 }
  0xf9   :  { %v830_v10 = vadd.f32 %v7690_v25, %v9499_v36  ;;  %v824_v33 = vpop.f32.mrb[15].mxu0  ;;  %v9752_v11 = vpop.permute.xlu1 %478  ;;  %2333 = vmatprep.subr.bf16.mxu1 %v12431_v0  ;;  %v1359_v36 = vld [vmem:[%s12422_s4 + $0x1f0] sm:$0xff] }
  0xfa   :  { %v825_v7 = vadd.f32 %v824_v33, %v9501_v37  ;;  %v9756_v20 = vpop.permute.xlu0 %473  ;;  %1668 = vperm.xlu1 %8326, %v1358_v24   ;;  %v1271_v27 = vpack.c.bf16 %v1086_v17, %v1085_v1 }
  0xfb   :  { %v1088_v21 = vmax.f32 %v830_v10, 0.0  ;;  %1663 = vperm.xlu0 %8325, %v1357_v32   ;;  %v3124_v32 = vld [vmem:[%s12424_s6 + $0x8] sm:$0xff] }
  0xfc   :  { %v1087_v40 = vmax.f32 %v825_v7, 0.0  ;;  %v7693_v29 = vpop.f32.mrb[16].mxu0  ;;  %2334 = vmatpush1.bf16.msra.mxu1 %v1271_v27 }
  0xfd   :  { %v840_v48 = vadd.f32 %v7693_v29, %v9512_v41  ;;  %v834_v37 = vpop.f32.mrb[17].mxu0  ;;  %v9765_v8 = vpop.permute.xlu1 %488  ;;  %2335 = vmatprep.subr.bf16.mxu1 %v12431_v0  ;;  %v3123_v41 = vld [vmem:[%s12424_s6] sm:$0xff] }
  0xfe   :  { %v835_v17 = vadd.f32 %v834_v37, %v9514_v42  ;;  %v9769_v24 = vpop.permute.xlu0 %483  ;;  %1678 = vperm.xlu1 %8326, %v1360_v28   ;;  %v1272_v1 = vpack.c.bf16 %v1088_v21, %v1087_v40 }
  0xff   :  { %v1090_v25 = vmax.f32 %v840_v48, 0.0  ;;  %1673 = vperm.xlu0 %8325, %v1359_v36   ;;  %v3126_v36 = vld [vmem:[%s12424_s6 + $0x18] sm:$0xff] }
 0x100   :  { %v1089_v10 = vmax.f32 %v835_v17, 0.0  ;;  %v7696_v33 = vpop.f32.mrb[18].mxu0  ;;  %2336 = vmatpush1.bf16.msra.mxu1 %v1272_v1 }
 0x101   :  { %v850_v7 = vadd.f32 %v7696_v33, %v9522_v45  ;;  %v844_v42 = vpop.f32.mrb[19].mxu0  ;;  %v9778_v27 = vpop.permute.xlu1 %1368  ;;  %2337 = vmatprep.subr.bf16.mxu1 %v12431_v0  ;;  %v3125_v45 = vld [vmem:[%s12424_s6 + $0x10] sm:$0xff] }
 0x102   :  { %v845_v21 = vadd.f32 %v844_v42, %v9524_v46  ;;  %v9782_v28 = vpop.permute.xlu0 %1363  ;;  %3194 = vperm.xlu1 %8326, %v3124_v32   ;;  %v1273_v40 = vpack.c.bf16 %v1090_v25, %v1089_v10 }
 0x103   :  { %v1092_v29 = vmax.f32 %v850_v7, 0.0  ;;  %3189 = vperm.xlu0 %8325, %v3123_v41   ;;  %v3128_v41 = vld [vmem:[%s12424_s6 + $0x28] sm:$0xff] }
 0x104   :  { %v1091_v48 = vmax.f32 %v845_v21, 0.0  ;;  %v7699_v37 = vpop.f32.mrb[20].mxu0  ;;  %2338 = vmatpush1.bf16.msra.mxu1 %v1273_v40 }
 0x105   :  { %v860_v17 = vadd.f32 %v7699_v37, %v9532_v49  ;;  %v854_v46 = vpop.f32.mrb[21].mxu0  ;;  %v9791_v1 = vpop.permute.xlu1 %1378  ;;  %2339 = vmatprep.subr.bf16.mxu1 %v12431_v0  ;;  %v3127_v49 = vld [vmem:[%s12424_s6 + $0x20] sm:$0xff] }
 0x106   :  { %v855_v25 = vadd.f32 %v854_v46, %v9534_v50  ;;  %v9795_v32 = vpop.permute.xlu0 %1373  ;;  %3204 = vperm.xlu1 %8326, %v3126_v36   ;;  %v1274_v10 = vpack.c.bf16 %v1092_v29, %v1091_v48 }
 0x107   :  { %v1094_v33 = vmax.f32 %v860_v17, 0.0  ;;  %3199 = vperm.xlu0 %8325, %v3125_v45   ;;  %v3130_v45 = vld [vmem:[%s12424_s6 + $0x38] sm:$0xff] }
 0x108   :  { %v1093_v7 = vmax.f32 %v855_v25, 0.0  ;;  %v7702_v42 = vpop.f32.mrb[22].mxu0  ;;  %2340 = vmatpush1.bf16.msra.mxu1 %v1274_v10 }
 0x109   :  { %v870_v21 = vadd.f32 %v7702_v42, %v9542_v53  ;;  %v864_v50 = vpop.f32.mrb[23].mxu0  ;;  %v9804_v40 = vpop.permute.xlu1 %1388  ;;  %2341 = vmatprep.subr.bf16.mxu1 %v12431_v0  ;;  %v3129_v53 = vld [vmem:[%s12424_s6 + $0x30] sm:$0xff] }
 0x10a   :  { %v865_v29 = vadd.f32 %v864_v50, %v9544_v54  ;;  %v9808_v36 = vpop.permute.xlu0 %1383  ;;  %3214 = vperm.xlu1 %8326, %v3128_v41   ;;  %v1275_v48 = vpack.c.bf16 %v1094_v33, %v1093_v7 }
 0x10b   :  { %v1096_v37 = vmax.f32 %v870_v21, 0.0  ;;  %3209 = vperm.xlu0 %8325, %v3127_v49   ;;  %v3132_v49 = vld [vmem:[%s12424_s6 + $0x48] sm:$0xff] }
 0x10c   :  { %v1095_v17 = vmax.f32 %v865_v29, 0.0  ;;  %v7705_v46 = vpop.f32.mrb[24].mxu0  ;;  %2342 = vmatpush1.bf16.msra.mxu1 %v1275_v48 }
 0x10d   :  { %v880_v25 = vadd.f32 %v7705_v46, %v9552_v57  ;;  %v874_v54 = vpop.f32.mrb[25].mxu0  ;;  %v9817_v10 = vpop.permute.xlu1 %1398  ;;  %2343 = vmatprep.subr.bf16.mxu1 %v12431_v0  ;;  %v3131_v57 = vld [vmem:[%s12424_s6 + $0x40] sm:$0xff] }
 0x10e   :  { %v875_v33 = vadd.f32 %v874_v54, %v9554_v58  ;;  %v9821_v41 = vpop.permute.xlu0 %1393  ;;  %3224 = vperm.xlu1 %8326, %v3130_v45   ;;  %v1276_v7 = vpack.c.bf16 %v1096_v37, %v1095_v17 }
 0x10f   :  { %v1098_v42 = vmax.f32 %v880_v25, 0.0  ;;  %3219 = vperm.xlu0 %8325, %v3129_v53   ;;  %v3134_v53 = vld [vmem:[%s12424_s6 + $0x58] sm:$0xff] }
 0x110   :  { %v1097_v21 = vmax.f32 %v875_v33, 0.0  ;;  %v7708_v50 = vpop.f32.mrb[26].mxu0  ;;  %2344 = vmatpush1.bf16.msra.mxu1 %v1276_v7 }
 0x111   :  { %v890_v29 = vadd.f32 %v7708_v50, %v9562_v61  ;;  %v884_v58 = vpop.f32.mrb[27].mxu0  ;;  %v9830_v48 = vpop.permute.xlu1 %1408  ;;  %2345 = vmatprep.subr.bf16.mxu1 %v12431_v0  ;;  %v3133_v61 = vld [vmem:[%s12424_s6 + $0x50] sm:$0xff] }
 0x112   :  { %v885_v37 = vadd.f32 %v884_v58, %v9564_v62  ;;  %v9834_v45 = vpop.permute.xlu0 %1403  ;;  %3234 = vperm.xlu1 %8326, %v3132_v49   ;;  %v1277_v17 = vpack.c.bf16 %v1098_v42, %v1097_v21 }
 0x113   :  { %v1100_v46 = vmax.f32 %v890_v29, 0.0  ;;  %3229 = vperm.xlu0 %8325, %v3131_v57   ;;  %v3136_v57 = vld [vmem:[%s12424_s6 + $0x68] sm:$0xff] }
 0x114   :  { %v1099_v25 = vmax.f32 %v885_v37, 0.0  ;;  %v7711_v54 = vpop.f32.mrb[28].mxu0  ;;  %2346 = vmatpush1.bf16.msra.mxu1 %v1277_v17 }
 0x115   :  { %v900_v33 = vadd.f32 %v7711_v54, %v9572_v2  ;;  %v894_v62 = vpop.f32.mrb[29].mxu0  ;;  %v9843_v7 = vpop.permute.xlu1 %1418  ;;  %2347 = vmatprep.subr.bf16.mxu1 %v12431_v0  ;;  %v3135_v2 = vld [vmem:[%s12424_s6 + $0x60] sm:$0xff] }
 0x116   :  { %v895_v42 = vadd.f32 %v894_v62, %v9574_v3  ;;  %v9847_v49 = vpop.permute.xlu0 %1413  ;;  %3244 = vperm.xlu1 %8326, %v3134_v53   ;;  %v1278_v21 = vpack.c.bf16 %v1100_v46, %v1099_v25 }
 0x117   :  { %v1102_v50 = vmax.f32 %v900_v33, 0.0  ;;  %3239 = vperm.xlu0 %8325, %v3133_v61   ;;  %v3138_v61 = vld [vmem:[%s12424_s6 + $0x78] sm:$0xff] }
 0x118   :  { %v1101_v29 = vmax.f32 %v895_v42, 0.0  ;;  %v7714_v58 = vpop.f32.mrb[30].mxu0  ;;  %2348 = vmatpush1.bf16.msra.mxu1 %v1278_v21 }
 0x119   :  { %v910_v37 = vadd.f32 %v7714_v58, %v9582_v6  ;;  %v904_v3 = vpop.f32.mrb[31].mxu0  ;;  %v9856_v17 = vpop.permute.xlu1 %1428  ;;  %2349 = vmatprep.subr.bf16.mxu1 %v12431_v0  ;;  %v3137_v6 = vld [vmem:[%s12424_s6 + $0x70] sm:$0xff] }
 0x11a   :  { %v905_v46 = vadd.f32 %v904_v3, %v9584_v9  ;;  %v9860_v53 = vpop.permute.xlu0 %1423  ;;  %3254 = vperm.xlu1 %8326, %v3136_v57   ;;  %v1279_v25 = vpack.c.bf16 %v1102_v50, %v1101_v29 }
 0x11b   :  { %v1104_v54 = vmax.f32 %v910_v37, 0.0  ;;  %3249 = vperm.xlu0 %8325, %v3135_v2   ;;  %v8327_v2 = vld [vmem:[%s12423_s3] ss:$16 sps:$4 sm:$0xff]  }
 0x11c   :  { %v1103_v33 = vmax.f32 %v905_v46, 0.0  ;;  %v7717_v62 = vpop.f32.mrb[32].mxu0  ;;  %2350 = vmatpush1.bf16.msra.mxu1 %v1279_v25  ;;  %v8330_v46 = vld [vmem:[%s12423_s3 + $0x24] ss:$16 sps:$4 sm:$0xff]  }
 0x11d   :  { %v920_v42 = vadd.f32 %v7717_v62, %v9592_v14  ;;  %v914_v9 = vpop.f32.mrb[33].mxu0  ;;  %v9869_v21 = vpop.permute.xlu1 %1438  ;;  %2351 = vmatprep.subr.bf16.mxu1 %v12431_v0  ;;  %v3140_v14 = vld [vmem:[%s12424_s6 + $0x88] sm:$0xff] }
 0x11e   :  { %v915_v50 = vadd.f32 %v914_v9, %v9594_v15  ;;  %v9873_v57 = vpop.permute.xlu0 %1433  ;;  %3264 = vperm.xlu1 %8326, %v3138_v61   ;;  %v1280_v29 = vpack.c.bf16 %v1104_v54, %v1103_v33  ;;  %v3139_v15 = vld [vmem:[%s12424_s6 + $0x80] sm:$0xff]  ;;  %v3142_v9 = vld [vmem:[%s12424_s6 + $0x98] sm:$0xff] }
 0x11f   :  { %v1106_v58 = vmax.f32 %v920_v42, 0.0  ;;  %3259 = vperm.xlu0 %8325, %v3137_v6  }
 0x120   :  { %v1105_v37 = vmax.f32 %v915_v50, 0.0  ;;  %v7720_v3 = vpop.f32.mrb[34].mxu0  ;;  %2352 = vmatpush1.bf16.msra.mxu1 %v1280_v29  ;;  %v3141_v29 = vld [vmem:[%s12424_s6 + $0x90] sm:$0xff] }
 0x121   :  { %v930_v25 = vadd.f32 %v7720_v3, %v9602_v22  ;;  %v924_v54 = vpop.f32.mrb[35].mxu0  ;;  %v9888_v61 = vpop.permute.xlu1 %1448  ;;  %2610 = vmatprep.subr.bf16.mxu1 %v12431_v0 }
 0x122   :  { %v1281_v33 = vpack.c.bf16 %v1106_v58, %v1105_v37  ;;  %v925_v62 = vadd.f32 %v924_v54, %v9604_v23  ;;  %v9892_v6 = vpop.permute.xlu0 %1443  ;;  %3274 = vperm.xlu1 %8326, %v3140_v14  }
 0x123   :  { %v1108_v42 = vmax.f32 %v930_v25, 0.0  ;;  %3269 = vperm.xlu0 %8325, %v3139_v15   ;;  %2354 = vmatmul.mubr.bf16.vlgmr.msra.gmra.mrb[0].mxu1 %v8327_v2  ;;  %v3144_v25 = vld [vmem:[%s12424_s6 + $0xa8] sm:$0xff] }
 0x124   :  { %v1107_v50 = vmax.f32 %v925_v62, 0.0  ;;  %v7723_v22 = vpop.f32.mrb[36].mxu0  ;;  %2611 = vmatpush1.bf16.msra.mxu1 %v1281_v33  ;;  %2361 = vmatprep.mubr.bf16.mxu1 %v8330_v46  ;;  %v8333_v33 = vld [vmem:[%s12423_s3 + $0x44] ss:$16 sps:$4 sm:$0xff]  }
 0x125   :  { %v940_v23 = vadd.f32 %v7723_v22, %v9612_v30  ;;  %v934_v58 = vpop.f32.mrb[37].mxu0  ;;  %v9901_v37 = vpop.permute.xlu1 %1458  ;;  %2612 = vmatprep.subr.bf16.mxu1 %v12431_v0  ;;  %v8332_v30 = vld [vmem:[%s12423_s3 + $0x20] ss:$16 sps:$4 sm:$0xff]  }
 0x126   :  { %v1282_v2 = vpack.c.bf16 %v1108_v42, %v1107_v50  ;;  %v935_v14 = vadd.f32 %v934_v58, %v9614_v31  ;;  %v9905_v3 = vpop.permute.xlu0 %1453  ;;  %3284 = vperm.xlu1 %8326, %v3142_v9   ;;  %v3143_v31 = vld [vmem:[%s12424_s6 + $0xa0] sm:$0xff]  ;;  %v3146_v58 = vld [vmem:[%s12424_s6 + $0xb8] sm:$0xff] }
 0x127   :  { %v1110_v15 = vmax.f32 %v940_v23, 0.0  ;;  %3279 = vperm.xlu0 %8325, %v3141_v29  }
 0x128   :  { %v1109_v46 = vmax.f32 %v935_v14, 0.0  ;;  %v7726_v54 = vpop.f32.mrb[38].mxu0  ;;  %2613 = vmatpush1.bf16.msra.mxu1 %v1282_v2  ;;  %v3145_v14 = vld [vmem:[%s12424_s6 + $0xb0] sm:$0xff] }
 0x129   :  { %v950_v62 = vadd.f32 %v7726_v54, %v9622_v38  ;;  %v944_v42 = vpop.f32.mrb[39].mxu0  ;;  %v9920_v9 = vpop.permute.xlu1 %1468  ;;  %2614 = vmatprep.subr.bf16.mxu1 %v12431_v0 }
 0x12a   :  { %v1283_v50 = vpack.c.bf16 %v1110_v15, %v1109_v46  ;;  %v945_v22 = vadd.f32 %v944_v42, %v9624_v39  ;;  %v9924_v29 = vpop.permute.xlu0 %1463  ;;  %3294 = vperm.xlu1 %8326, %v3144_v25  }
 0x12b   :  { %v1112_v23 = vmax.f32 %v950_v62, 0.0  ;;  %3289 = vperm.xlu0 %8325, %v3143_v31   ;;  %2362 = vmatmul.mubr.bf16.gmra.mrb[4].mxu1 %v8332_v30  ;;  %v3148_v62 = vld [vmem:[%s12424_s6 + $0xc8] sm:$0xff] }
 0x12c   :  { %v1111_v2 = vmax.f32 %v945_v22, 0.0  ;;  %v7729_v38 = vpop.f32.mrb[40].mxu0  ;;  %2615 = vmatpush1.bf16.msra.mxu1 %v1283_v50  ;;  %2369 = vmatprep.mubr.bf16.mxu1 %v8333_v33  ;;  %v8336_v50 = vld [vmem:[%s12423_s3 + $0x64] ss:$16 sps:$4 sm:$0xff]  }
 0x12d   :  { %v960_v39 = vadd.f32 %v7729_v38, %v9632_v44  ;;  %v954_v15 = vpop.f32.mrb[41].mxu0  ;;  %v9933_v46 = vpop.permute.xlu1 %1478  ;;  %2616 = vmatprep.subr.bf16.mxu1 %v12431_v0  ;;  %v8335_v44 = vld [vmem:[%s12423_s3 + $0x40] ss:$16 sps:$4 sm:$0xff]  }
 0x12e   :  { %v1284_v25 = vpack.c.bf16 %v1112_v23, %v1111_v2  ;;  %v955_v30 = vadd.f32 %v954_v15, %v9634_v47  ;;  %v9937_v54 = vpop.permute.xlu0 %1473  ;;  %3304 = vperm.xlu1 %8326, %v3146_v58   ;;  %v3147_v47 = vld [vmem:[%s12424_s6 + $0xc0] sm:$0xff]  ;;  %v3150_v15 = vld [vmem:[%s12424_s6 + $0xd8] sm:$0xff] }
 0x12f   :  { %v1114_v31 = vmax.f32 %v960_v39, 0.0  ;;  %3299 = vperm.xlu0 %8325, %v3145_v14  }
 0x130   :  { %v1113_v33 = vmax.f32 %v955_v30, 0.0  ;;  %v7732_v42 = vpop.f32.mrb[42].mxu0  ;;  %2617 = vmatpush1.bf16.msra.mxu1 %v1284_v25  ;;  %v3149_v30 = vld [vmem:[%s12424_s6 + $0xd0] sm:$0xff] }
 0x131   :  { %v970_v22 = vadd.f32 %v7732_v42, %v9642_v52  ;;  %v964_v23 = vpop.f32.mrb[43].mxu0  ;;  %v9952_v58 = vpop.permute.xlu1 %1488  ;;  %2618 = vmatprep.subr.bf16.mxu1 %v12431_v0 }
 0x132   :  { %v1285_v2 = vpack.c.bf16 %v1114_v31, %v1113_v33  ;;  %v965_v38 = vadd.f32 %v964_v23, %v9644_v55  ;;  %v9956_v14 = vpop.permute.xlu0 %1483  ;;  %3314 = vperm.xlu1 %8326, %v3148_v62  }
 0x133   :  { %v1116_v39 = vmax.f32 %v970_v22, 0.0  ;;  %3309 = vperm.xlu0 %8325, %v3147_v47   ;;  %2370 = vmatmul.mubr.bf16.gmra.mrb[8].mxu1 %v8335_v44  ;;  %v3152_v22 = vld [vmem:[%s12424_s6 + $0xe8] sm:$0xff] }
 0x134   :  { %v1115_v25 = vmax.f32 %v965_v38, 0.0  ;;  %v7735_v52 = vpop.f32.mrb[44].mxu0  ;;  %2619 = vmatpush1.bf16.msra.mxu1 %v1285_v2  ;;  %2377 = vmatprep.mubr.bf16.mxu1 %v8336_v50  ;;  %v8339_v2 = vld [vmem:[%s12423_s3 + $0x84] ss:$16 sps:$4 sm:$0xff]  }
 0x135   :  { %v980_v55 = vadd.f32 %v7735_v52, %v9652_v60  ;;  %v974_v31 = vpop.f32.mrb[45].mxu0  ;;  %v9965_v33 = vpop.permute.xlu1 %1498  ;;  %2620 = vmatprep.subr.bf16.mxu1 %v12431_v0  ;;  %v8338_v60 = vld [vmem:[%s12423_s3 + $0x60] ss:$16 sps:$4 sm:$0xff]  }
 0x136   :  { %v1286_v62 = vpack.c.bf16 %v1116_v39, %v1115_v25  ;;  %v975_v44 = vadd.f32 %v974_v31, %v9654_v63  ;;  %v9969_v42 = vpop.permute.xlu0 %1493  ;;  %3324 = vperm.xlu1 %8326, %v3150_v15   ;;  %v3151_v63 = vld [vmem:[%s12424_s6 + $0xe0] sm:$0xff]  ;;  %v3154_v31 = vld [vmem:[%s12424_s6 + $0xf8] sm:$0xff] }
 0x137   :  { %v1118_v47 = vmax.f32 %v980_v55, 0.0  ;;  %3319 = vperm.xlu0 %8325, %v3149_v30  }
 0x138   :  { %v1117_v50 = vmax.f32 %v975_v44, 0.0  ;;  %v7738_v23 = vpop.f32.mrb[46].mxu0  ;;  %2621 = vmatpush1.bf16.msra.mxu1 %v1286_v62  ;;  %v3153_v44 = vld [vmem:[%s12424_s6 + $0xf0] sm:$0xff] }
 0x139   :  { %v990_v38 = vadd.f32 %v7738_v23, %v9663_v18  ;;  %v984_v39 = vpop.f32.mrb[47].mxu0  ;;  %v9984_v15 = vpop.permute.xlu1 %1508  ;;  %2622 = vmatprep.subr.bf16.mxu1 %v12431_v0 }
 0x13a   :  { %v1287_v25 = vpack.c.bf16 %v1118_v47, %v1117_v50  ;;  %v985_v52 = vadd.f32 %v984_v39, %v9666_v26  ;;  %v9988_v30 = vpop.permute.xlu0 %1503  ;;  %3334 = vperm.xlu1 %8326, %v3152_v22  }
 0x13b   :  { %v1120_v55 = vmax.f32 %v990_v38, 0.0  ;;  %3329 = vperm.xlu0 %8325, %v3151_v63   ;;  %2378 = vmatmul.mubr.bf16.gmra.mrb[12].mxu1 %v8338_v60  ;;  %v3156_v38 = vld [vmem:[%s12424_s6 + $0x108] sm:$0xff] }
 0x13c   :  { %v1119_v62 = vmax.f32 %v985_v52, 0.0  ;;  %v7741_v18 = vpop.f32.mrb[48].mxu0  ;;  %2623 = vmatpush1.bf16.msra.mxu1 %v1287_v25  ;;  %2385 = vmatprep.mubr.bf16.mxu1 %v8339_v2  ;;  %v8342_v25 = vld [vmem:[%s12423_s3 + $0xa4] ss:$16 sps:$4 sm:$0xff]  }
 0x13d   :  { %v1000_v26 = vadd.f32 %v7741_v18, %v9675_v51  ;;  %v994_v47 = vpop.f32.mrb[49].mxu0  ;;  %v9997_v50 = vpop.permute.xlu1 %1518  ;;  %2624 = vmatprep.subr.bf16.mxu1 %v12431_v0  ;;  %v8341_v51 = vld [vmem:[%s12423_s3 + $0x80] ss:$16 sps:$4 sm:$0xff]  }
 0x13e   :  { %v1288_v22 = vpack.c.bf16 %v1120_v55, %v1119_v62  ;;  %v995_v60 = vadd.f32 %v994_v47, %v9678_v56  ;;  %v10001_v23 = vpop.permute.xlu0 %1513  ;;  %3344 = vperm.xlu1 %8326, %v3154_v31   ;;  %v3155_v56 = vld [vmem:[%s12424_s6 + $0x100] sm:$0xff]  ;;  %v3158_v47 = vld [vmem:[%s12424_s6 + $0x118] sm:$0xff] }
 0x13f   :  { %v1122_v63 = vmax.f32 %v1000_v26, 0.0  ;;  %3339 = vperm.xlu0 %8325, %v3153_v44  }
 0x140   :  { %v1121_v2 = vmax.f32 %v995_v60, 0.0  ;;  %v7744_v39 = vpop.f32.mrb[50].mxu0  ;;  %2625 = vmatpush1.bf16.msra.mxu1 %v1288_v22  ;;  %v3157_v60 = vld [vmem:[%s12424_s6 + $0x110] sm:$0xff] }
 0x141   :  { %v1010_v52 = vadd.f32 %v7744_v39, %v9687_v19  ;;  %v1004_v55 = vpop.f32.mrb[51].mxu0  ;;  %v10016_v31 = vpop.permute.xlu1 %1528  ;;  %2626 = vmatprep.subr.bf16.mxu1 %v12431_v0 }
 0x142   :  { %v1289_v62 = vpack.c.bf16 %v1122_v63, %v1121_v2  ;;  %v1005_v18 = vadd.f32 %v1004_v55, %v9691_v34  ;;  %v10020_v44 = vpop.permute.xlu0 %1523  ;;  %3354 = vperm.xlu1 %8326, %v3156_v38  }
 0x143   :  { %v1124_v26 = vmax.f32 %v1010_v52, 0.0  ;;  %3349 = vperm.xlu0 %8325, %v3155_v56   ;;  %2386 = vmatmul.mubr.bf16.gmra.mrb[16].mxu1 %v8341_v51  ;;  %v3160_v52 = vld [vmem:[%s12424_s6 + $0x128] sm:$0xff] }
 0x144   :  { %v1123_v22 = vmax.f32 %v1005_v18, 0.0  ;;  %v7747_v19 = vpop.f32.mrb[52].mxu0  ;;  %2627 = vmatpush1.bf16.msra.mxu1 %v1289_v62  ;;  %2393 = vmatprep.mubr.bf16.mxu1 %v8342_v25  ;;  %v8345_v62 = vld [vmem:[%s12423_s3 + $0xc4] ss:$16 sps:$4 sm:$0xff]  }
 0x145   :  { %v1020_v34 = vadd.f32 %v7747_v19, %v9700_v59  ;;  %v1014_v63 = vpop.f32.mrb[53].mxu0  ;;  %v10029_v2 = vpop.permute.xlu1 %1538  ;;  %2628 = vmatprep.subr.bf16.mxu1 %v12431_v0  ;;  %v8344_v59 = vld [vmem:[%s12423_s3 + $0xa0] ss:$16 sps:$4 sm:$0xff]  }
 0x146   :  { %v1290_v38 = vpack.c.bf16 %v1124_v26, %v1123_v22  ;;  %v1015_v51 = vadd.f32 %v1014_v63, %v9704_v4  ;;  %v10033_v39 = vpop.permute.xlu0 %1533  ;;  %3364 = vperm.xlu1 %8326, %v3158_v47   ;;  %v3159_v4 = vld [vmem:[%s12424_s6 + $0x120] sm:$0xff]  ;;  %v3162_v63 = vld [vmem:[%s12424_s6 + $0x138] sm:$0xff] }
 0x147   :  { %v1126_v56 = vmax.f32 %v1020_v34, 0.0  ;;  %3359 = vperm.xlu0 %8325, %v3157_v60  }
 0x148   :  { %v1125_v25 = vmax.f32 %v1015_v51, 0.0  ;;  %v7750_v55 = vpop.f32.mrb[54].mxu0  ;;  %2629 = vmatpush1.bf16.msra.mxu1 %v1290_v38  ;;  %v3161_v51 = vld [vmem:[%s12424_s6 + $0x130] sm:$0xff] }
 0x149   :  { %v1030_v18 = vadd.f32 %v7750_v55, %v9713_v35  ;;  %v1024_v26 = vpop.f32.mrb[55].mxu0  ;;  %v10048_v47 = vpop.permute.xlu1 %1548  ;;  %2630 = vmatprep.subr.bf16.mxu1 %v12431_v0 }
 0x14a   :  { %v1291_v22 = vpack.c.bf16 %v1126_v56, %v1125_v25  ;;  %v1025_v19 = vadd.f32 %v1024_v26, %v9717_v13  ;;  %v10052_v60 = vpop.permute.xlu0 %1543  ;;  %3374 = vperm.xlu1 %8326, %v3160_v52  }
 0x14b   :  { %v1128_v34 = vmax.f32 %v1030_v18, 0.0  ;;  %3369 = vperm.xlu0 %8325, %v3159_v4   ;;  %2394 = vmatmul.mubr.bf16.gmra.mrb[20].mxu1 %v8344_v59  ;;  %v3164_v18 = vld [vmem:[%s12424_s6 + $0x148] sm:$0xff] }
 0x14c   :  { %v1127_v38 = vmax.f32 %v1025_v19, 0.0  ;;  %v7753_v35 = vpop.f32.mrb[56].mxu0  ;;  %2631 = vmatpush1.bf16.msra.mxu1 %v1291_v22  ;;  %2401 = vmatprep.mubr.bf16.mxu1 %v8345_v62  ;;  %v8348_v22 = vld [vmem:[%s12423_s3 + $0xe4] ss:$16 sps:$4 sm:$0xff]  }
 0x14d   :  { %v1040_v13 = vadd.f32 %v7753_v35, %v9726_v5  ;;  %v1034_v56 = vpop.f32.mrb[57].mxu0  ;;  %v10061_v25 = vpop.permute.xlu1 %1558  ;;  %2632 = vmatprep.subr.bf16.mxu1 %v12431_v0  ;;  %v8347_v5 = vld [vmem:[%s12423_s3 + $0xc0] ss:$16 sps:$4 sm:$0xff]  }
 0x14e   :  { %v1292_v52 = vpack.c.bf16 %v1128_v34, %v1127_v38  ;;  %v1035_v59 = vadd.f32 %v1034_v56, %v9730_v12  ;;  %v10065_v55 = vpop.permute.xlu0 %1553  ;;  %3384 = vperm.xlu1 %8326, %v3162_v63   ;;  %v3163_v12 = vld [vmem:[%s12424_s6 + $0x140] sm:$0xff]  ;;  %v3166_v56 = vld [vmem:[%s12424_s6 + $0x158] sm:$0xff] }
 0x14f   :  { %v1130_v4 = vmax.f32 %v1040_v13, 0.0  ;;  %3379 = vperm.xlu0 %8325, %v3161_v51  }
 0x150   :  { %v1129_v62 = vmax.f32 %v1035_v59, 0.0  ;;  %v7756_v26 = vpop.f32.mrb[58].mxu0  ;;  %2633 = vmatpush1.bf16.msra.mxu1 %v1292_v52  ;;  %v3165_v59 = vld [vmem:[%s12424_s6 + $0x150] sm:$0xff] }
 0x151   :  { %v1050_v19 = vadd.f32 %v7756_v26, %v9739_v43  ;;  %v1044_v34 = vpop.f32.mrb[59].mxu0  ;;  %v10080_v63 = vpop.permute.xlu1 %1568  ;;  %2634 = vmatprep.subr.bf16.mxu1 %v12431_v0 }
 0x152   :  { %v1293_v38 = vpack.c.bf16 %v1130_v4, %v1129_v62  ;;  %v1045_v35 = vadd.f32 %v1044_v34, %v9743_v16  ;;  %v10084_v51 = vpop.permute.xlu0 %1563  ;;  %3394 = vperm.xlu1 %8326, %v3164_v18  }
 0x153   :  { %v1132_v13 = vmax.f32 %v1050_v19, 0.0  ;;  %3389 = vperm.xlu0 %8325, %v3163_v12   ;;  %2402 = vmatmul.mubr.bf16.gmra.mrb[24].mxu1 %v8347_v5  ;;  %v3168_v19 = vld [vmem:[%s12424_s6 + $0x168] sm:$0xff] }
 0x154   :  { %v1131_v52 = vmax.f32 %v1045_v35, 0.0  ;;  %v7759_v43 = vpop.f32.mrb[60].mxu0  ;;  %2635 = vmatpush1.bf16.msra.mxu1 %v1293_v38  ;;  %2409 = vmatprep.mubr.bf16.mxu1 %v8348_v22  ;;  %v8351_v38 = vld [vmem:[%s12423_s3 + $0x104] ss:$16 sps:$4 sm:$0xff]  }
 0x155   :  { %v1060_v16 = vadd.f32 %v7759_v43, %v9752_v11  ;;  %v1054_v4 = vpop.f32.mrb[61].mxu0  ;;  %v10093_v62 = vpop.permute.xlu1 %1578  ;;  %2636 = vmatprep.subr.bf16.mxu1 %v12431_v0  ;;  %v8350_v11 = vld [vmem:[%s12423_s3 + $0xe0] ss:$16 sps:$4 sm:$0xff]  }
 0x156   :  { %v1294_v18 = vpack.c.bf16 %v1132_v13, %v1131_v52  ;;  %v1055_v5 = vadd.f32 %v1054_v4, %v9756_v20  ;;  %v10097_v26 = vpop.permute.xlu0 %1573  ;;  %3404 = vperm.xlu1 %8326, %v3166_v56   ;;  %v3167_v20 = vld [vmem:[%s12424_s6 + $0x160] sm:$0xff]  ;;  %v3170_v4 = vld [vmem:[%s12424_s6 + $0x178] sm:$0xff] }
 0x157   :  { %v1134_v12 = vmax.f32 %v1060_v16, 0.0  ;;  %3399 = vperm.xlu0 %8325, %v3165_v59  }
 0x158   :  { %v1133_v22 = vmax.f32 %v1055_v5, 0.0  ;;  %v7762_v34 = vpop.f32.mrb[62].mxu0  ;;  %2637 = vmatpush1.bf16.msra.mxu1 %v1294_v18 }
 0x159   :  { %v1070_v35 = vadd.f32 %v7762_v34, %v9765_v8  ;;  %v1064_v13 = vpop.f32.mrb[63].mxu0  ;;  %v10112_v56 = vpop.permute.xlu1 %1588  ;;  %2638 = vmatprep.subr.bf16.mxu1 %v12431_v0  ;;  %v3169_v8 = vld [vmem:[%s12424_s6 + $0x170] sm:$0xff] }
 0x15a   :  { %v1295_v52 = vpack.c.bf16 %v1134_v12, %v1133_v22  ;;  %v1065_v43 = vadd.f32 %v1064_v13, %v9769_v24  ;;  %v10116_v59 = vpop.permute.xlu0 %1583  ;;  %3414 = vperm.xlu1 %8326, %v3168_v19   ;;  %v3172_v19 = vld [vmem:[%s12424_s6 + $0x188] sm:$0xff]  ;;  %v3171_v22 = vld [vmem:[%s12424_s6 + $0x180] sm:$0xff]  ;;  %v3173_v13 = vld [vmem:[%s12424_s6 + $0x190] sm:$0xff] }
 0x15b   :  { %v1136_v16 = vmax.f32 %v1070_v35, 0.0  ;;  %3409 = vperm.xlu0 %8325, %v3167_v20   ;;  %2410 = vmatmul.mubr.bf16.gmra.mrb[28].mxu1 %v8350_v11  ;;  %v8353_v11 = vld [vmem:[%s12423_s3 + $0x100] ss:$16 sps:$4 sm:$0xff]   ;;  %v8354_v34 = vld [vmem:[%s12423_s3 + $0x124] ss:$16 sps:$4 sm:$0xff]   ;;  %v3174_v35 = vld [vmem:[%s12424_s6 + $0x198] sm:$0xff] }
 0x15c   :  { %v1135_v18 = vmax.f32 %v1065_v43, 0.0  ;;  %2639 = vmatpush1.bf16.msra.mxu1 %v1295_v52  ;;  %2417 = vmatprep.mubr.bf16.mxu1 %v8351_v38 }
 0x15d   :  { %v10124_v5 = vpop.permute.xlu1 %1598  ;;  %2640 = vmatprep.subr.bf16.mxu1 %v12431_v0 }
 0x15e   :  { %v1296_v24 = vpack.c.bf16 %v1136_v16, %v1135_v18  ;;  %v10127_v12 = vpop.permute.xlu0 %1593  ;;  %3424 = vperm.xlu1 %8326, %v3170_v4   ;;  %v3176_v16 = vld [vmem:[%s12424_s6 + $0x1a8] sm:$0xff]  ;;  %v8356_v4 = vld [vmem:[%s12423_s3 + $0x120] ss:$16 sps:$4 sm:$0xff]  }
 0x15f   :  { %3419 = vperm.xlu0 %8325, %v3169_v8   ;;  %v3175_v18 = vld [vmem:[%s12424_s6 + $0x1a0] sm:$0xff] }
 0x160   :  { %2641 = vmatpush1.bf16.msra.mxu1 %v1296_v24  ;;  %v8357_v8 = vld [vmem:[%s12423_s3 + $0x144] ss:$16 sps:$4 sm:$0xff]  }
 0x161   :  { %v10141_v20 = vpop.permute.xlu1 %1608  ;;  %5973 = vmatprep.subr.bf16.mxu1 %v12431_v0  ;;  %v3181_v0 = vld [vmem:[%s12424_s6 + $0x1d0] sm:$0xff] }
 0x162   :  { %12433 = vst [vmem:[#allocation3_spill] sm:$0xff] %v10141_v20  ;;  %v10144_v38 = vpop.permute.xlu0 %1603  ;;  %3434 = vperm.xlu1 %8326, %v3172_v19   ;;  %v12543_v20 = vmov 0  }
 0x163   :  { %3429 = vperm.xlu0 %8325, %v3171_v22   ;;  %2418 = vmatmul.mubr.bf16.gmra.mrb[32].mxu1 %v8353_v11  ;;  %v3178_v11 = vld [vmem:[%s12424_s6 + $0x1b8] sm:$0xff]  ;;  %v3177_v22 = vld [vmem:[%s12424_s6 + $0x1b0] sm:$0xff] }
 0x164   :  { %2425 = vmatprep.mubr.bf16.mxu1 %v8354_v34 }
 0x165   :  { %v10152_v52 = vpop.permute.xlu1 %1618 }
 0x166   :  { %12434 = vst [vmem:[#allocation4_spill] sm:$0xff] %v10152_v52  ;;  %v10154_v43 = vpop.permute.xlu0 %1613  ;;  %3444 = vperm.xlu1 %8326, %v3174_v35   ;;  %v8509_v52 = vld [vmem:[%s12423_s3 + $0x388] ss:$16 sps:$4 sm:$0xff]  }
 0x167   :  { %12435 = vst [vmem:[#allocation5_spill] sm:$0xff] %v10154_v43  ;;  %3439 = vperm.xlu0 %8325, %v3173_v13   ;;  %v3180_v13 = vld [vmem:[%s12424_s6 + $0x1c8] sm:$0xff] }
 0x169   :  { %v10168_v24 = vpop.permute.xlu1 %1628 }
 0x16a   :  { %12436 = vst [vmem:[#allocation6_spill] sm:$0xff] %v10168_v24  ;;  %v10170_v19 = vpop.permute.xlu0 %1623  ;;  %3454 = vperm.xlu1 %8326, %v3176_v16   ;;  %v8359_v16 = vld [vmem:[%s12423_s3 + $0x140] ss:$16 sps:$4 sm:$0xff]  }
 0x16b   :  { %12437 = vst [vmem:[#allocation7_spill] sm:$0xff] %v10170_v19  ;;  %3449 = vperm.xlu0 %8325, %v3175_v18   ;;  %2426 = vmatmul.mubr.bf16.gmra.mrb[36].mxu1 %v8356_v4  ;;  %v3179_v4 = vld [vmem:[%s12424_s6 + $0x1c0] sm:$0xff] }
 0x16c   :  { %2433 = vmatprep.mubr.bf16.mxu1 %v8357_v8  ;;  %v8360_v18 = vld [vmem:[%s12423_s3 + $0x164] ss:$16 sps:$4 sm:$0xff]  }
 0x16d   :  { %v10178_v34 = vpop.permute.xlu1 %1638 }
 0x16e   :  { %12438 = vst [vmem:[#allocation8_spill] sm:$0xff] %v10178_v34  ;;  %v10180_v35 = vpop.permute.xlu0 %1633  ;;  %3464 = vperm.xlu1 %8326, %v3178_v11  }
 0x16f   :  { %12439 = vst [vmem:[#allocation9_spill] sm:$0xff] %v10180_v35  ;;  %3459 = vperm.xlu0 %8325, %v3177_v22   ;;  %v3182_v22 = vld [vmem:[%s12424_s6 + $0x1d8] sm:$0xff] }
 0x171   :  { %v10194_v8 = vpop.permute.xlu1 %1648 }
 0x172   :  { %12440 = vst [vmem:[#allocation10_spill] sm:$0xff] %v10194_v8  ;;  %v10196_v11 = vpop.permute.xlu0 %1643  ;;  %3474 = vperm.xlu1 %8326, %v3180_v13   ;;  %v3184_v13 = vld [vmem:[%s12424_s6 + $0x1e8] sm:$0xff] }
 0x173   :  { %12441 = vst [vmem:[#allocation11_spill] sm:$0xff] %v10196_v11  ;;  %3469 = vperm.xlu0 %8325, %v3179_v4   ;;  %2434 = vmatmul.mubr.bf16.gmra.mrb[40].mxu1 %v8359_v16  ;;  %v8362_v16 = vld [vmem:[%s12423_s3 + $0x160] ss:$16 sps:$4 sm:$0xff]  }
 0x174   :  { %2441 = vmatprep.mubr.bf16.mxu1 %v8360_v18  ;;  %v3183_v4 = vld [vmem:[%s12424_s6 + $0x1e0] sm:$0xff] }
 0x175   :  { %v10204_v34 = vpop.permute.xlu1 %1658  ;;  %v8363_v18 = vld [vmem:[%s12423_s3 + $0x184] ss:$16 sps:$4 sm:$0xff]  }
 0x176   :  { %12442 = vst [vmem:[#allocation12_spill] sm:$0xff] %v10204_v34  ;;  %v10206_v35 = vpop.permute.xlu0 %1653  ;;  %3484 = vperm.xlu1 %8326, %v3182_v22  }
 0x177   :  { %12443 = vst [vmem:[#allocation13_spill] sm:$0xff] %v10206_v35  ;;  %3479 = vperm.xlu0 %8325, %v3181_v0   ;;  %v3186_v0 = vld [vmem:[%s12424_s6 + $0x1f8] sm:$0xff]  ;;  %v3185_v35 = vld [vmem:[%s12424_s6 + $0x1f0] sm:$0xff] }
 0x179   :  { %v10220_v34 = vpop.permute.xlu1 %1668 }
 0x17a   :  { %12444 = vst [vmem:[#allocation14_spill] sm:$0xff] %v10220_v34  ;;  %v10222_v22 = vpop.permute.xlu0 %1663  ;;  %3494 = vperm.xlu1 %8326, %v3184_v13   ;;  %v4950_v13 = vld [vmem:[%s12425_s8 + $0x8] sm:$0xff] }
 0x17b   :  { %12445 = vst [vmem:[#allocation15_spill] sm:$0xff] %v10222_v22  ;;  %3489 = vperm.xlu0 %8325, %v3183_v4   ;;  %2442 = vmatmul.mubr.bf16.gmra.mrb[44].mxu1 %v8362_v16  ;;  %v8365_v16 = vld [vmem:[%s12423_s3 + $0x180] ss:$16 sps:$4 sm:$0xff]  }
 0x17c   :  { %2449 = vmatprep.mubr.bf16.mxu1 %v8363_v18  ;;  %v4949_v4 = vld [vmem:[%s12425_s8] sm:$0xff] }
 0x17d   :  { %v10230_v8 = vpop.permute.xlu1 %1678  ;;  %v8366_v18 = vld [vmem:[%s12423_s3 + $0x1a4] ss:$16 sps:$4 sm:$0xff]  }
 0x17e   :  { %12446 = vst [vmem:[#allocation16_spill] sm:$0xff] %v10230_v8  ;;  %v10232_v11 = vpop.permute.xlu0 %1673  ;;  %3504 = vperm.xlu1 %8326, %v3186_v0  }
 0x17f   :  { %12447 = vst [vmem:[#allocation17_spill] sm:$0xff] %v10232_v11  ;;  %3499 = vperm.xlu0 %8325, %v3185_v35   ;;  %v4952_v35 = vld [vmem:[%s12425_s8 + $0x18] sm:$0xff]  ;;  %v4951_v11 = vld [vmem:[%s12425_s8 + $0x10] sm:$0xff] }
 0x181   :  { %v10246_v8 = vpop.permute.xlu1 %3194 }
 0x182   :  { %12448 = vst [vmem:[#allocation18_spill] sm:$0xff] %v10246_v8  ;;  %v10248_v0 = vpop.permute.xlu0 %3189  ;;  %5020 = vperm.xlu1 %8326, %v4950_v13   ;;  %v4954_v13 = vld [vmem:[%s12425_s8 + $0x28] sm:$0xff] }
 0x183   :  { %12449 = vst [vmem:[#allocation19_spill] sm:$0xff] %v10248_v0  ;;  %5015 = vperm.xlu0 %8325, %v4949_v4   ;;  %2450 = vmatmul.mubr.bf16.gmra.mrb[48].mxu1 %v8365_v16  ;;  %v8368_v16 = vld [vmem:[%s12423_s3 + $0x1a0] ss:$16 sps:$4 sm:$0xff]  }
 0x184   :  { %2457 = vmatprep.mubr.bf16.mxu1 %v8366_v18  ;;  %v4953_v4 = vld [vmem:[%s12425_s8 + $0x20] sm:$0xff] }
 0x185   :  { %v10256_v34 = vpop.permute.xlu1 %3204  ;;  %v8369_v18 = vld [vmem:[%s12423_s3 + $0x1c4] ss:$16 sps:$4 sm:$0xff]  }
 0x186   :  { %12450 = vst [vmem:[#allocation20_spill] sm:$0xff] %v10256_v34  ;;  %v10258_v22 = vpop.permute.xlu0 %3199  ;;  %5030 = vperm.xlu1 %8326, %v4952_v35  }
 0x187   :  { %12451 = vst [vmem:[#allocation21_spill] sm:$0xff] %v10258_v22  ;;  %5025 = vperm.xlu0 %8325, %v4951_v11   ;;  %v4956_v11 = vld [vmem:[%s12425_s8 + $0x38] sm:$0xff]  ;;  %v4955_v22 = vld [vmem:[%s12425_s8 + $0x30] sm:$0xff] }
 0x189   :  { %v10272_v34 = vpop.permute.xlu1 %3214 }
 0x18a   :  { %12452 = vst [vmem:[#allocation22_spill] sm:$0xff] %v10272_v34  ;;  %v10274_v35 = vpop.permute.xlu0 %3209  ;;  %5040 = vperm.xlu1 %8326, %v4954_v13   ;;  %v4958_v13 = vld [vmem:[%s12425_s8 + $0x48] sm:$0xff] }
 0x18b   :  { %12453 = vst [vmem:[#allocation23_spill] sm:$0xff] %v10274_v35  ;;  %5035 = vperm.xlu0 %8325, %v4953_v4   ;;  %2458 = vmatmul.mubr.bf16.gmra.mrb[52].mxu1 %v8368_v16  ;;  %v8371_v16 = vld [vmem:[%s12423_s3 + $0x1c0] ss:$16 sps:$4 sm:$0xff]  }
 0x18c   :  { %2465 = vmatprep.mubr.bf16.mxu1 %v8369_v18  ;;  %v4957_v4 = vld [vmem:[%s12425_s8 + $0x40] sm:$0xff] }
 0x18d   :  { %v10282_v8 = vpop.permute.xlu1 %3224  ;;  %v8372_v18 = vld [vmem:[%s12423_s3 + $0x1e4] ss:$16 sps:$4 sm:$0xff]  }
 0x18e   :  { %12454 = vst [vmem:[#allocation24_spill] sm:$0xff] %v10282_v8  ;;  %v10284_v0 = vpop.permute.xlu0 %3219  ;;  %5050 = vperm.xlu1 %8326, %v4956_v11  }
 0x18f   :  { %12455 = vst [vmem:[#allocation25_spill] sm:$0xff] %v10284_v0  ;;  %5045 = vperm.xlu0 %8325, %v4955_v22   ;;  %v4960_v22 = vld [vmem:[%s12425_s8 + $0x58] sm:$0xff]  ;;  %v4959_v0 = vld [vmem:[%s12425_s8 + $0x50] sm:$0xff] }
 0x191   :  { %v10298_v8 = vpop.permute.xlu1 %3234 }
 0x192   :  { %12456 = vst [vmem:[#allocation26_spill] sm:$0xff] %v10298_v8  ;;  %v10300_v11 = vpop.permute.xlu0 %3229  ;;  %5060 = vperm.xlu1 %8326, %v4958_v13   ;;  %v4962_v13 = vld [vmem:[%s12425_s8 + $0x68] sm:$0xff] }
 0x193   :  { %12457 = vst [vmem:[#allocation27_spill] sm:$0xff] %v10300_v11  ;;  %5055 = vperm.xlu0 %8325, %v4957_v4   ;;  %2466 = vmatmul.mubr.bf16.gmra.mrb[56].mxu1 %v8371_v16  ;;  %v8374_v16 = vld [vmem:[%s12423_s3 + $0x1e0] ss:$16 sps:$4 sm:$0xff]  }
 0x194   :  { %2473 = vmatprep.mubr.bf16.mxu1 %v8372_v18  ;;  %v4961_v4 = vld [vmem:[%s12425_s8 + $0x60] sm:$0xff] }
 0x195   :  { %v10308_v34 = vpop.permute.xlu1 %3244  ;;  %v8375_v18 = vld [vmem:[%s12423_s3 + $0x204] ss:$16 sps:$4 sm:$0xff]  }
 0x196   :  { %12458 = vst [vmem:[#allocation28_spill] sm:$0xff] %v10308_v34  ;;  %v10310_v35 = vpop.permute.xlu0 %3239  ;;  %5070 = vperm.xlu1 %8326, %v4960_v22  }
 0x197   :  { %12459 = vst [vmem:[#allocation29_spill] sm:$0xff] %v10310_v35  ;;  %5065 = vperm.xlu0 %8325, %v4959_v0   ;;  %v4964_v0 = vld [vmem:[%s12425_s8 + $0x78] sm:$0xff]  ;;  %v4963_v35 = vld [vmem:[%s12425_s8 + $0x70] sm:$0xff] }
 0x199   :  { %v10324_v34 = vpop.permute.xlu1 %3254 }
 0x19a   :  { %12460 = vst [vmem:[#allocation30_spill] sm:$0xff] %v10324_v34  ;;  %v10326_v22 = vpop.permute.xlu0 %3249  ;;  %5080 = vperm.xlu1 %8326, %v4962_v13   ;;  %v4966_v13 = vld [vmem:[%s12425_s8 + $0x88] sm:$0xff] }
 0x19b   :  { %12461 = vst [vmem:[#allocation31_spill] sm:$0xff] %v10326_v22  ;;  %5075 = vperm.xlu0 %8325, %v4961_v4   ;;  %2474 = vmatmul.mubr.bf16.gmra.mrb[60].mxu1 %v8374_v16  ;;  %v8377_v16 = vld [vmem:[%s12423_s3 + $0x200] ss:$16 sps:$4 sm:$0xff]  }
 0x19c   :  { %2481 = vmatprep.mubr.bf16.mxu1 %v8375_v18  ;;  %v4965_v4 = vld [vmem:[%s12425_s8 + $0x80] sm:$0xff] }
 0x19d   :  { %v10334_v8 = vpop.permute.xlu1 %3264  ;;  %v8378_v18 = vld [vmem:[%s12423_s3 + $0x224] ss:$16 sps:$4 sm:$0xff]  }
 0x19e   :  { %12462 = vst [vmem:[#allocation32_spill] sm:$0xff] %v10334_v8  ;;  %v10336_v11 = vpop.permute.xlu0 %3259  ;;  %5090 = vperm.xlu1 %8326, %v4964_v0  }
 0x19f   :  { %12463 = vst [vmem:[#allocation33_spill] sm:$0xff] %v10336_v11  ;;  %5085 = vperm.xlu0 %8325, %v4963_v35   ;;  %v4968_v35 = vld [vmem:[%s12425_s8 + $0x98] sm:$0xff]  ;;  %v4967_v11 = vld [vmem:[%s12425_s8 + $0x90] sm:$0xff] }
 0x1a1   :  { %v10350_v8 = vpop.permute.xlu1 %3274 }
 0x1a2   :  { %12464 = vst [vmem:[#allocation34_spill] sm:$0xff] %v10350_v8  ;;  %v10352_v0 = vpop.permute.xlu0 %3269  ;;  %5100 = vperm.xlu1 %8326, %v4966_v13   ;;  %v4970_v13 = vld [vmem:[%s12425_s8 + $0xa8] sm:$0xff] }
 0x1a3   :  { %12465 = vst [vmem:[#allocation35_spill] sm:$0xff] %v10352_v0  ;;  %5095 = vperm.xlu0 %8325, %v4965_v4   ;;  %2482 = vmatmul.mubr.bf16.gmra.mrb[64].mxu1 %v8377_v16  ;;  %v8380_v16 = vld [vmem:[%s12423_s3 + $0x220] ss:$16 sps:$4 sm:$0xff]  }
 0x1a4   :  { %2489 = vmatprep.mubr.bf16.mxu1 %v8378_v18  ;;  %v4969_v4 = vld [vmem:[%s12425_s8 + $0xa0] sm:$0xff] }
 0x1a5   :  { %v10360_v34 = vpop.permute.xlu1 %3284  ;;  %v8381_v18 = vld [vmem:[%s12423_s3 + $0x244] ss:$16 sps:$4 sm:$0xff]  }
 0x1a6   :  { %12466 = vst [vmem:[#allocation36_spill] sm:$0xff] %v10360_v34  ;;  %v10362_v22 = vpop.permute.xlu0 %3279  ;;  %5110 = vperm.xlu1 %8326, %v4968_v35  }
 0x1a7   :  { %12467 = vst [vmem:[#allocation37_spill] sm:$0xff] %v10362_v22  ;;  %5105 = vperm.xlu0 %8325, %v4967_v11   ;;  %v4972_v11 = vld [vmem:[%s12425_s8 + $0xb8] sm:$0xff]  ;;  %v4971_v22 = vld [vmem:[%s12425_s8 + $0xb0] sm:$0xff] }
 0x1a9   :  { %v10376_v34 = vpop.permute.xlu1 %3294 }
 0x1aa   :  { %12468 = vst [vmem:[#allocation38_spill] sm:$0xff] %v10376_v34  ;;  %v10378_v35 = vpop.permute.xlu0 %3289  ;;  %5120 = vperm.xlu1 %8326, %v4970_v13   ;;  %v4974_v13 = vld [vmem:[%s12425_s8 + $0xc8] sm:$0xff] }
 0x1ab   :  { %12469 = vst [vmem:[#allocation39_spill] sm:$0xff] %v10378_v35  ;;  %5115 = vperm.xlu0 %8325, %v4969_v4   ;;  %2490 = vmatmul.mubr.bf16.gmra.mrb[68].mxu1 %v8380_v16  ;;  %v8383_v16 = vld [vmem:[%s12423_s3 + $0x240] ss:$16 sps:$4 sm:$0xff]  }
 0x1ac   :  { %2497 = vmatprep.mubr.bf16.mxu1 %v8381_v18  ;;  %v4973_v4 = vld [vmem:[%s12425_s8 + $0xc0] sm:$0xff] }
 0x1ad   :  { %v10386_v8 = vpop.permute.xlu1 %3304  ;;  %v8384_v18 = vld [vmem:[%s12423_s3 + $0x264] ss:$16 sps:$4 sm:$0xff]  }
 0x1ae   :  { %12470 = vst [vmem:[#allocation40_spill] sm:$0xff] %v10386_v8  ;;  %v10388_v0 = vpop.permute.xlu0 %3299  ;;  %5130 = vperm.xlu1 %8326, %v4972_v11  }
 0x1af   :  { %12471 = vst [vmem:[#allocation41_spill] sm:$0xff] %v10388_v0  ;;  %5125 = vperm.xlu0 %8325, %v4971_v22   ;;  %v4976_v22 = vld [vmem:[%s12425_s8 + $0xd8] sm:$0xff]  ;;  %v4975_v0 = vld [vmem:[%s12425_s8 + $0xd0] sm:$0xff] }
 0x1b1   :  { %v10402_v8 = vpop.permute.xlu1 %3314 }
 0x1b2   :  { %12472 = vst [vmem:[#allocation42_spill] sm:$0xff] %v10402_v8  ;;  %v10404_v11 = vpop.permute.xlu0 %3309  ;;  %5140 = vperm.xlu1 %8326, %v4974_v13   ;;  %v4978_v8 = vld [vmem:[%s12425_s8 + $0xe8] sm:$0xff]  ;;  %v8386_v13 = vld [vmem:[%s12423_s3 + $0x260] ss:$16 sps:$4 sm:$0xff]  }
 0x1b3   :  { %12473 = vst [vmem:[#allocation43_spill] sm:$0xff] %v10404_v11  ;;  %5135 = vperm.xlu0 %8325, %v4973_v4   ;;  %2498 = vmatmul.mubr.bf16.gmra.mrb[72].mxu1 %v8383_v16  ;;  %v4977_v4 = vld [vmem:[%s12425_s8 + $0xe0] sm:$0xff] }
 0x1b4   :  { %2505 = vmatprep.mubr.bf16.mxu1 %v8384_v18  ;;  %v8387_v18 = vld [vmem:[%s12423_s3 + $0x284] ss:$16 sps:$4 sm:$0xff]  }
 0x1b5   :  { %v10420_v16 = vpop.permute.xlu1 %3324 }
 0x1b6   :  { %5150 = vperm.xlu1 %8326, %v4976_v22   ;;  %v10412_v34 = vpop.permute.xlu0 %3319  ;;  %12475 = vst [vmem:[#allocation45_spill] sm:$0xff] %v10420_v16  ;;  %v4979_v22 = vld [vmem:[%s12425_s8 + $0xf0] sm:$0xff] }
 0x1b7   :  { %12474 = vst [vmem:[#allocation44_spill] sm:$0xff] %v10412_v34  ;;  %5145 = vperm.xlu0 %8325, %v4975_v0   ;;  %v4980_v0 = vld [vmem:[%s12425_s8 + $0xf8] sm:$0xff] }
 0x1b9   :  { %v10436_v34 = vpop.permute.xlu1 %3334 }
 0x1ba   :  { %5160 = vperm.xlu1 %8326, %v4978_v8   ;;  %v10434_v16 = vpop.permute.xlu0 %3329  ;;  %12477 = vst [vmem:[#allocation47_spill] sm:$0xff] %v10436_v34  ;;  %v4982_v8 = vld [vmem:[%s12425_s8 + $0x108] sm:$0xff] }
 0x1bb   :  { %5155 = vperm.xlu0 %8325, %v4977_v4   ;;  %2506 = vmatmul.mubr.bf16.gmra.mrb[76].mxu1 %v8386_v13  ;;  %12476 = vst [vmem:[#allocation46_spill] sm:$0xff] %v10434_v16  ;;  %v8389_v13 = vld [vmem:[%s12423_s3 + $0x280] ss:$16 sps:$4 sm:$0xff]  }
 0x1bc   :  { %2513 = vmatprep.mubr.bf16.mxu1 %v8387_v18  ;;  %v4981_v4 = vld [vmem:[%s12425_s8 + $0x100] sm:$0xff]  ;;  %v4983_v16 = vld [vmem:[%s12425_s8 + $0x110] sm:$0xff] }
 0x1bd   :  { %v8390_v18 = vld [vmem:[%s12423_s3 + $0x2a4] ss:$16 sps:$4 sm:$0xff]  }
 0x1be   :  { %5170 = vperm.xlu1 %8326, %v4980_v0   ;;  %v10450_v34 = vpop.permute.xlu0 %3339  ;;  %v4984_v0 = vld [vmem:[%s12425_s8 + $0x118] sm:$0xff] }
 0x1bf   :  { %5165 = vperm.xlu0 %8325, %v4979_v22   ;;  %12478 = vst [vmem:[#allocation48_spill] sm:$0xff] %v10450_v34  ;;  %v10455_v22 = vpop.permute.xlu1 %3344 }
 0x1c0   :  { %12479 = vst [vmem:[#allocation49_spill] sm:$0xff] %v10455_v22  ;;  %v8393_v22 = vld [vmem:[%s12423_s3 + $0x2c4] ss:$16 sps:$4 sm:$0xff]  }
 0x1c2   :  { %5180 = vperm.xlu1 %8326, %v4982_v8   ;;  %v4986_v8 = vld [vmem:[%s12425_s8 + $0x128] sm:$0xff]  ;;  %v10472_v34 = vpop.permute.xlu0 %3349 }
 0x1c3   :  { %5175 = vperm.xlu0 %8325, %v4981_v4   ;;  %2514 = vmatmul.mubr.bf16.gmra.mrb[80].mxu1 %v8389_v13  ;;  %v8392_v13 = vld [vmem:[%s12423_s3 + $0x2a0] ss:$16 sps:$4 sm:$0xff]   ;;  %12480 = vst [vmem:[#allocation50_spill] sm:$0xff] %v10472_v34 }
 0x1c4   :  { %2521 = vmatprep.mubr.bf16.mxu1 %v8390_v18  ;;  %v4985_v4 = vld [vmem:[%s12425_s8 + $0x120] sm:$0xff]  ;;  %v10474_v18 = vpop.permute.xlu1 %3354 }
 0x1c5   :  { %12481 = vst [vmem:[#allocation51_spill] sm:$0xff] %v10474_v18  ;;  %v4990_v18 = vld [vmem:[%s12425_s8 + $0x148] sm:$0xff] }
 0x1c6   :  { %5190 = vperm.xlu1 %8326, %v4984_v0   ;;  %v4987_v0 = vld [vmem:[%s12425_s8 + $0x130] sm:$0xff]  ;;  %v10482_v11 = vpop.permute.xlu0 %3359 }
 0x1c7   :  { %5185 = vperm.xlu0 %8325, %v4983_v16   ;;  %v4988_v16 = vld [vmem:[%s12425_s8 + $0x138] sm:$0xff]  ;;  %12482 = vst [vmem:[#allocation52_spill] sm:$0xff] %v10482_v11 }
 0x1ca   :  { %5200 = vperm.xlu1 %8326, %v4986_v8   ;;  %v8395_v8 = vld [vmem:[%s12423_s3 + $0x2c0] ss:$16 sps:$4 sm:$0xff]  }
 0x1cb   :  { %5195 = vperm.xlu0 %8325, %v4985_v4   ;;  %2522 = vmatmul.mubr.bf16.gmra.mrb[84].mxu1 %v8392_v13  ;;  %v10490_v13 = vpop.permute.xlu1 %3364  ;;  %v4989_v4 = vld [vmem:[%s12425_s8 + $0x140] sm:$0xff] }
 0x1cc   :  { %2529 = vmatprep.mubr.bf16.mxu1 %v8393_v22  ;;  %12483 = vst [vmem:[#allocation53_spill] sm:$0xff] %v10490_v13  ;;  %v8396_v22 = vld [vmem:[%s12423_s3 + $0x2e4] ss:$16 sps:$4 sm:$0xff]   ;;  %v10504_v13 = vpop.permute.xlu0 %3369 }
 0x1cd   :  { %12484 = vst [vmem:[#allocation54_spill] sm:$0xff] %v10504_v13  ;;  %v4995_v13 = vld [vmem:[%s12425_s8 + $0x170] sm:$0xff] }
 0x1ce   :  { %5210 = vperm.xlu1 %8326, %v4988_v16   ;;  %v4992_v16 = vld [vmem:[%s12425_s8 + $0x158] sm:$0xff] }
 0x1cf   :  { %5205 = vperm.xlu0 %8325, %v4987_v0   ;;  %v4991_v0 = vld [vmem:[%s12425_s8 + $0x150] sm:$0xff]  ;;  %v10506_v11 = vpop.permute.xlu1 %3374 }
 0x1d0   :  { %12485 = vst [vmem:[#allocation55_spill] sm:$0xff] %v10506_v11  ;;  %v10520_v11 = vpop.permute.xlu0 %3379 }
 0x1d1   :  { %12486 = vst [vmem:[#allocation56_spill] sm:$0xff] %v10520_v11 }
 0x1d2   :  { %5220 = vperm.xlu1 %8326, %v4990_v18   ;;  %v4994_v18 = vld [vmem:[%s12425_s8 + $0x168] sm:$0xff] }
 0x1d3   :  { %5215 = vperm.xlu0 %8325, %v4989_v4   ;;  %2530 = vmatmul.mubr.bf16.gmra.mrb[88].mxu1 %v8395_v8  ;;  %v8398_v8 = vld [vmem:[%s12423_s3 + $0x2e0] ss:$16 sps:$4 sm:$0xff]  }
 0x1d4   :  { %2537 = vmatprep.mubr.bf16.mxu1 %v8396_v22  ;;  %v4993_v4 = vld [vmem:[%s12425_s8 + $0x160] sm:$0xff]  ;;  %v10542_v11 = vpop.permute.xlu0 %3389 }
 0x1d5   :  { %v8399_v22 = vld [vmem:[%s12423_s3 + $0x304] ss:$16 sps:$4 sm:$0xff]   ;;  %12488 = vst [vmem:[#allocation58_spill] sm:$0xff] %v10542_v11 }
 0x1d6   :  { %5230 = vperm.xlu1 %8326, %v4992_v16   ;;  %v4996_v16 = vld [vmem:[%s12425_s8 + $0x178] sm:$0xff]  ;;  %v5011_v11 = vld [vmem:[%s12425_s8 + $0x1f0] sm:$0xff] }
 0x1d7   :  { %5225 = vperm.xlu0 %8325, %v4991_v0   ;;  %v10525_v0 = vpop.permute.xlu1 %3384 }
 0x1d8   :  { %12487 = vst [vmem:[#allocation57_spill] sm:$0xff] %v10525_v0  ;;  %v8402_v0 = vld [vmem:[%s12423_s3 + $0x324] ss:$16 sps:$4 sm:$0xff]   ;;  %v10552_v34 = vpop.permute.xlu0 %3399 }
 0x1d9   :  { %12490 = vst [vmem:[#allocation60_spill] sm:$0xff] %v10552_v34 }
 0x1da   :  { %5240 = vperm.xlu1 %8326, %v4994_v18   ;;  %v4998_v18 = vld [vmem:[%s12425_s8 + $0x188] sm:$0xff] }
 0x1db   :  { %5235 = vperm.xlu0 %8325, %v4993_v4   ;;  %2538 = vmatmul.mubr.bf16.gmra.mrb[92].mxu1 %v8398_v8  ;;  %v8401_v8 = vld [vmem:[%s12423_s3 + $0x300] ss:$16 sps:$4 sm:$0xff]  }
 0x1dc   :  { %2545 = vmatprep.mubr.bf16.mxu1 %v8399_v22  ;;  %v4997_v4 = vld [vmem:[%s12425_s8 + $0x180] sm:$0xff]  ;;  %v10544_v22 = vpop.permute.xlu1 %3394 }
 0x1dd   :  { %12489 = vst [vmem:[#allocation59_spill] sm:$0xff] %v10544_v22  ;;  %v5002_v22 = vld [vmem:[%s12425_s8 + $0x1a8] sm:$0xff] }
 0x1de   :  { %5250 = vperm.xlu1 %8326, %v4996_v16   ;;  %v4999_v16 = vld [vmem:[%s12425_s8 + $0x190] sm:$0xff] }
 0x1df   :  { %5245 = vperm.xlu0 %8325, %v4995_v13   ;;  %v5000_v13 = vld [vmem:[%s12425_s8 + $0x198] sm:$0xff] }
 0x1e2   :  { %5260 = vperm.xlu1 %8326, %v4998_v18   ;;  %v8404_v18 = vld [vmem:[%s12423_s3 + $0x320] ss:$16 sps:$4 sm:$0xff]  }
 0x1e3   :  { %5255 = vperm.xlu0 %8325, %v4997_v4   ;;  %2546 = vmatmul.mubr.bf16.gmra.mrb[96].mxu1 %v8401_v8  ;;  %v10560_v8 = vpop.permute.xlu1 %3404  ;;  %v5001_v4 = vld [vmem:[%s12425_s8 + $0x1a0] sm:$0xff] }
 0x1e4   :  { %2553 = vmatprep.mubr.bf16.mxu1 %v8402_v0  ;;  %12491 = vst [vmem:[#allocation61_spill] sm:$0xff] %v10560_v8  ;;  %v8405_v0 = vld [vmem:[%s12423_s3 + $0x344] ss:$16 sps:$4 sm:$0xff]   ;;  %v10574_v8 = vpop.permute.xlu0 %3409 }
 0x1e5   :  { %12492 = vst [vmem:[#allocation62_spill] sm:$0xff] %v10574_v8  ;;  %v5007_v8 = vld [vmem:[%s12425_s8 + $0x1d0] sm:$0xff] }
 0x1e6   :  { %5270 = vperm.xlu1 %8326, %v5000_v13   ;;  %v5004_v13 = vld [vmem:[%s12425_s8 + $0x1b8] sm:$0xff] }
 0x1e7   :  { %5265 = vperm.xlu0 %8325, %v4999_v16   ;;  %v5003_v16 = vld [vmem:[%s12425_s8 + $0x1b0] sm:$0xff]  ;;  %v10576_v34 = vpop.permute.xlu1 %3414 }
 0x1e8   :  { %12493 = vst [vmem:[#allocation63_spill] sm:$0xff] %v10576_v34  ;;  %v10590_v34 = vpop.permute.xlu0 %3419 }
 0x1e9   :  { %12494 = vst [vmem:[#allocation64_spill] sm:$0xff] %v10590_v34 }
 0x1ea   :  { %5280 = vperm.xlu1 %8326, %v5002_v22   ;;  %v5006_v22 = vld [vmem:[%s12425_s8 + $0x1c8] sm:$0xff] }
 0x1eb   :  { %5275 = vperm.xlu0 %8325, %v5001_v4   ;;  %2554 = vmatmul.mubr.bf16.gmra.mrb[100].mxu1 %v8404_v18  ;;  %v8407_v18 = vld [vmem:[%s12423_s3 + $0x340] ss:$16 sps:$4 sm:$0xff]  }
 0x1ec   :  { %2561 = vmatprep.mubr.bf16.mxu1 %v8405_v0  ;;  %v5005_v4 = vld [vmem:[%s12425_s8 + $0x1c0] sm:$0xff]  ;;  %v10612_v34 = vpop.permute.xlu0 %3429 }
 0x1ed   :  { %v8408_v0 = vld [vmem:[%s12423_s3 + $0x364] ss:$16 sps:$4 sm:$0xff]   ;;  %12496 = vst [vmem:[#allocation66_spill] sm:$0xff] %v10612_v34 }
 0x1ee   :  { %5290 = vperm.xlu1 %8326, %v5004_v13   ;;  %v5008_v13 = vld [vmem:[%s12425_s8 + $0x1d8] sm:$0xff] }
 0x1ef   :  { %5285 = vperm.xlu0 %8325, %v5003_v16   ;;  %v10595_v16 = vpop.permute.xlu1 %3424 }
 0x1f0   :  { %12495 = vst [vmem:[#allocation65_spill] sm:$0xff] %v10595_v16  ;;  %v8411_v16 = vld [vmem:[%s12423_s3 + $0x384] ss:$16 sps:$4 sm:$0xff]   ;;  %v10625_v34 = vpop.permute.xlu0 %3439 }
 0x1f1   :  { %12498 = vst [vmem:[#allocation68_spill] sm:$0xff] %v10625_v34 }
 0x1f2   :  { %5300 = vperm.xlu1 %8326, %v5006_v22   ;;  %v5010_v22 = vld [vmem:[%s12425_s8 + $0x1e8] sm:$0xff] }
 0x1f3   :  { %5295 = vperm.xlu0 %8325, %v5005_v4   ;;  %2562 = vmatmul.mubr.bf16.gmra.mrb[104].mxu1 %v8407_v18  ;;  %v8410_v18 = vld [vmem:[%s12423_s3 + $0x360] ss:$16 sps:$4 sm:$0xff]  }
 0x1f4   :  { %2569 = vmatprep.mubr.bf16.mxu1 %v8408_v0  ;;  %v5009_v4 = vld [vmem:[%s12425_s8 + $0x1e0] sm:$0xff]  ;;  %v10614_v0 = vpop.permute.xlu1 %3434 }
 0x1f5   :  { %12497 = vst [vmem:[#allocation67_spill] sm:$0xff] %v10614_v0 }
 0x1f6   :  { %5310 = vperm.xlu1 %8326, %v5008_v13   ;;  %v5012_v13 = vld [vmem:[%s12425_s8 + $0x1f8] sm:$0xff] }
 0x1f7   :  { %5305 = vperm.xlu0 %8325, %v5007_v8   ;;  %v16_v8 = vstv %s12426_s10 }
 0x1f8   :  { %17 = vst [vmem:[#allocation2] sm:$0x1] %v16_v8  ;;  %v6615_v8 = vld [vmem:[%s12427_s9] sm:$0xff] }
 0x1fa   :  { %5320 = vperm.xlu1 %8326, %v5010_v22   ;;  %v6616_v22 = vld [vmem:[%s12427_s9 + $0x8] sm:$0xff] }
 0x1fb   :  { %5315 = vperm.xlu0 %8325, %v5009_v4   ;;  %2570 = vmatmul.mubr.bf16.gmra.mrb[108].mxu1 %v8410_v18  ;;  %v8413_v18 = vld [vmem:[%s12423_s3 + $0x380] ss:$16 sps:$4 sm:$0xff]   ;;  %v10633_v4 = vpop.permute.xlu1 %3444 }
 0x1fc   :  { %2577 = vmatprep.mubr.bf16.mxu1 %v8411_v16  ;;  %12499 = vst [vmem:[#allocation69_spill] sm:$0xff] %v10633_v4  ;;  %v8414_v16 = vld [vmem:[%s12423_s3 + $0x3a4] ss:$16 sps:$4 sm:$0xff]   ;;  %v10647_v4 = vpop.permute.xlu0 %3449 }
 0x1fd   :  { %12500 = vst [vmem:[#allocation70_spill] sm:$0xff] %v10647_v4  ;;  %v6621_v4 = vld [vmem:[%s12427_s9 + $0x30] sm:$0xff] }
 0x1fe   :  { %5330 = vperm.xlu1 %8326, %v5012_v13   ;;  %v6617_v13 = vld [vmem:[%s12427_s9 + $0x10] sm:$0xff] }
 0x1ff   :  { %5325 = vperm.xlu0 %8325, %v5011_v11   ;;  %v6618_v11 = vld [vmem:[%s12427_s9 + $0x18] sm:$0xff]  ;;  %v10649_v34 = vpop.permute.xlu1 %3454 }
 0x200   :  { %12501 = vst [vmem:[#allocation71_spill] sm:$0xff] %v10649_v34  ;;  %v10663_v34 = vpop.permute.xlu0 %3459 }
 0x201   :  { %12502 = vst [vmem:[#allocation72_spill] sm:$0xff] %v10663_v34 }
 0x202   :  { %6686 = vperm.xlu1 %8326, %v6616_v22   ;;  %v6620_v22 = vld [vmem:[%s12427_s9 + $0x28] sm:$0xff] }
 0x203   :  { %6681 = vperm.xlu0 %8325, %v6615_v8   ;;  %2578 = vmatmul.mubr.bf16.gmra.mrb[112].mxu1 %v8413_v18  ;;  %v8416_v18 = vld [vmem:[%s12423_s3 + $0x3a0] ss:$16 sps:$4 sm:$0xff]  }
 0x204   :  { %2585 = vmatprep.mubr.bf16.mxu1 %v8414_v16  ;;  %v6619_v8 = vld [vmem:[%s12427_s9 + $0x20] sm:$0xff]  ;;  %v10685_v34 = vpop.permute.xlu0 %3469 }
 0x205   :  { %v8417_v16 = vld [vmem:[%s12423_s3 + $0x3c4] ss:$16 sps:$4 sm:$0xff]   ;;  %12504 = vst [vmem:[#allocation74_spill] sm:$0xff] %v10685_v34 }
 0x206   :  { %6696 = vperm.xlu1 %8326, %v6618_v11   ;;  %v6622_v11 = vld [vmem:[%s12427_s9 + $0x38] sm:$0xff] }
 0x207   :  { %6691 = vperm.xlu0 %8325, %v6617_v13   ;;  %v10668_v13 = vpop.permute.xlu1 %3464 }
 0x208   :  { %12503 = vst [vmem:[#allocation73_spill] sm:$0xff] %v10668_v13  ;;  %v8420_v13 = vld [vmem:[%s12423_s3 + $0x3e4] ss:$16 sps:$4 sm:$0xff]   ;;  %v10695_v0 = vpop.permute.xlu0 %3479 }
 0x209   :  { %12506 = vst [vmem:[#allocation76_spill] sm:$0xff] %v10695_v0 }
 0x20a   :  { %6706 = vperm.xlu1 %8326, %v6620_v22   ;;  %v6624_v22 = vld [vmem:[%s12427_s9 + $0x48] sm:$0xff] }
 0x20b   :  { %6701 = vperm.xlu0 %8325, %v6619_v8   ;;  %2586 = vmatmul.mubr.bf16.gmra.mrb[116].mxu1 %v8416_v18  ;;  %v8419_v18 = vld [vmem:[%s12423_s3 + $0x3c0] ss:$16 sps:$4 sm:$0xff]  }
 0x20c   :  { %2593 = vmatprep.mubr.bf16.mxu1 %v8417_v16  ;;  %v6623_v8 = vld [vmem:[%s12427_s9 + $0x40] sm:$0xff]  ;;  %v10687_v16 = vpop.permute.xlu1 %3474 }
 0x20d   :  { %12505 = vst [vmem:[#allocation75_spill] sm:$0xff] %v10687_v16  ;;  %v6628_v16 = vld [vmem:[%s12427_s9 + $0x68] sm:$0xff] }
 0x20e   :  { %6716 = vperm.xlu1 %8326, %v6622_v11   ;;  %v6625_v11 = vld [vmem:[%s12427_s9 + $0x50] sm:$0xff] }
 0x20f   :  { %6711 = vperm.xlu0 %8325, %v6621_v4   ;;  %v6626_v4 = vld [vmem:[%s12427_s9 + $0x58] sm:$0xff] }
 0x212   :  { %6726 = vperm.xlu1 %8326, %v6624_v22   ;;  %v8422_v22 = vld [vmem:[%s12423_s3 + $0x3e0] ss:$16 sps:$4 sm:$0xff]  }
 0x213   :  { %6721 = vperm.xlu0 %8325, %v6623_v8   ;;  %2594 = vmatmul.mubr.bf16.gmra.mrb[120].mxu1 %v8419_v18  ;;  %v10703_v18 = vpop.permute.xlu1 %3484  ;;  %v6627_v8 = vld [vmem:[%s12427_s9 + $0x60] sm:$0xff] }
 0x214   :  { %2601 = vmatprep.mubr.bf16.mxu1 %v8420_v13  ;;  %12507 = vst [vmem:[#allocation77_spill] sm:$0xff] %v10703_v18  ;;  %v8425_v13 = vld [vmem:[%s12423_s3 + $0xc] ss:$16 sps:$4 sm:$0xff]   ;;  %v10717_v18 = vpop.permute.xlu0 %3489 }
 0x215   :  { %12508 = vst [vmem:[#allocation78_spill] sm:$0xff] %v10717_v18  ;;  %v6633_v18 = vld [vmem:[%s12427_s9 + $0x90] sm:$0xff] }
 0x216   :  { %6736 = vperm.xlu1 %8326, %v6626_v4   ;;  %v6630_v4 = vld [vmem:[%s12427_s9 + $0x78] sm:$0xff] }
 0x217   :  { %6731 = vperm.xlu0 %8325, %v6625_v11   ;;  %v6629_v11 = vld [vmem:[%s12427_s9 + $0x70] sm:$0xff]  ;;  %v10719_v0 = vpop.permute.xlu1 %3494 }
 0x218   :  { %12509 = vst [vmem:[#allocation79_spill] sm:$0xff] %v10719_v0  ;;  %v10733_v0 = vpop.permute.xlu0 %3499 }
 0x219   :  { %12510 = vst [vmem:[#allocation80_spill] sm:$0xff] %v10733_v0 }
 0x21a   :  { %6746 = vperm.xlu1 %8326, %v6628_v16   ;;  %v8423_v16 = vld [vmem:[%s12423_s3 + $0x8] ss:$16 sps:$4 sm:$0xff]  }
 0x21b   :  { %6741 = vperm.xlu0 %8325, %v6627_v8   ;;  %2602 = vmatmul.mubr.bf16.gmra.mrb[124].mxu1 %v8422_v22  ;;  %v6632_v22 = vld [vmem:[%s12427_s9 + $0x88] sm:$0xff]  ;;  %v6631_v8 = vld [vmem:[%s12427_s9 + $0x80] sm:$0xff] }
 0x21c   :  { %2642 = vmatprep.mubr.bf16.mxu1 %v8425_v13  ;;  %v8426_v13 = vld [vmem:[%s12423_s3 + $0x2c] ss:$16 sps:$4 sm:$0xff]   ;;  %v10755_v0 = vpop.permute.xlu0 %5015 }
 0x21d   :  { %12512 = vst [vmem:[#allocation82_spill] sm:$0xff] %v10755_v0 }
 0x21e   :  { %6756 = vperm.xlu1 %8326, %v6630_v4   ;;  %v6634_v4 = vld [vmem:[%s12427_s9 + $0x98] sm:$0xff] }
 0x21f   :  { %6751 = vperm.xlu0 %8325, %v6629_v11   ;;  %v10738_v11 = vpop.permute.xlu1 %3504 }
 0x220   :  { %12511 = vst [vmem:[#allocation81_spill] sm:$0xff] %v10738_v11  ;;  %v8429_v11 = vld [vmem:[%s12423_s3 + $0x4c] ss:$16 sps:$4 sm:$0xff]   ;;  %v10765_v34 = vpop.permute.xlu0 %5025 }
 0x221   :  { %12514 = vst [vmem:[#allocation84_spill] sm:$0xff] %v10765_v34 }
 0x222   :  { %6766 = vperm.xlu1 %8326, %v6632_v22   ;;  %v6636_v22 = vld [vmem:[%s12427_s9 + $0xa8] sm:$0xff] }
 0x223   :  { %6761 = vperm.xlu0 %8325, %v6631_v8   ;;  %2643 = vmatmul.mubr.bf16.vlgmr.msra.gmra.mrb[0].mxu1 %v8423_v16  ;;  %v8428_v16 = vld [vmem:[%s12423_s3 + $0x28] ss:$16 sps:$4 sm:$0xff]   ;;  %v6635_v8 = vld [vmem:[%s12427_s9 + $0xa0] sm:$0xff] }
 0x224   :  { %2650 = vmatprep.mubr.bf16.mxu1 %v8426_v13  ;;  %v10757_v13 = vpop.permute.xlu1 %5020 }
 0x225   :  { %12513 = vst [vmem:[#allocation83_spill] sm:$0xff] %v10757_v13  ;;  %v6640_v13 = vld [vmem:[%s12427_s9 + $0xc8] sm:$0xff] }
 0x226   :  { %6776 = vperm.xlu1 %8326, %v6634_v4   ;;  %v6637_v4 = vld [vmem:[%s12427_s9 + $0xb0] sm:$0xff] }
 0x227   :  { %6771 = vperm.xlu0 %8325, %v6633_v18   ;;  %v6638_v18 = vld [vmem:[%s12427_s9 + $0xb8] sm:$0xff] }
 0x22a   :  { %6786 = vperm.xlu1 %8326, %v6636_v22   ;;  %v8431_v22 = vld [vmem:[%s12423_s3 + $0x48] ss:$16 sps:$4 sm:$0xff]  }
 0x22b   :  { %6781 = vperm.xlu0 %8325, %v6635_v8   ;;  %2651 = vmatmul.mubr.bf16.gmra.mrb[4].mxu1 %v8428_v16  ;;  %v10773_v16 = vpop.permute.xlu1 %5030  ;;  %v6639_v8 = vld [vmem:[%s12427_s9 + $0xc0] sm:$0xff] }
 0x22c   :  { %2658 = vmatprep.mubr.bf16.mxu1 %v8429_v11  ;;  %12515 = vst [vmem:[#allocation85_spill] sm:$0xff] %v10773_v16  ;;  %v8432_v11 = vld [vmem:[%s12423_s3 + $0x6c] ss:$16 sps:$4 sm:$0xff]   ;;  %v10787_v16 = vpop.permute.xlu0 %5035 }
 0x22d   :  { %12516 = vst [vmem:[#allocation86_spill] sm:$0xff] %v10787_v16  ;;  %v6645_v16 = vld [vmem:[%s12427_s9 + $0xf0] sm:$0xff] }
 0x22e   :  { %6796 = vperm.xlu1 %8326, %v6638_v18   ;;  %v6642_v18 = vld [vmem:[%s12427_s9 + $0xd8] sm:$0xff] }
 0x22f   :  { %6791 = vperm.xlu0 %8325, %v6637_v4   ;;  %v6641_v4 = vld [vmem:[%s12427_s9 + $0xd0] sm:$0xff]  ;;  %v10789_v34 = vpop.permute.xlu1 %5040 }
 0x230   :  { %12517 = vst [vmem:[#allocation87_spill] sm:$0xff] %v10789_v34  ;;  %v10803_v34 = vpop.permute.xlu0 %5045 }
 0x231   :  { %12518 = vst [vmem:[#allocation88_spill] sm:$0xff] %v10803_v34 }
 0x232   :  { %6806 = vperm.xlu1 %8326, %v6640_v13   ;;  %v6644_v13 = vld [vmem:[%s12427_s9 + $0xe8] sm:$0xff] }
 0x233   :  { %6801 = vperm.xlu0 %8325, %v6639_v8   ;;  %2659 = vmatmul.mubr.bf16.gmra.mrb[8].mxu1 %v8431_v22  ;;  %v8434_v22 = vld [vmem:[%s12423_s3 + $0x68] ss:$16 sps:$4 sm:$0xff]   ;;  %v6643_v8 = vld [vmem:[%s12427_s9 + $0xe0] sm:$0xff] }
 0x234   :  { %2666 = vmatprep.mubr.bf16.mxu1 %v8432_v11  ;;  %v8435_v11 = vld [vmem:[%s12423_s3 + $0x8c] ss:$16 sps:$4 sm:$0xff]   ;;  %v10825_v34 = vpop.permute.xlu0 %5055 }
 0x235   :  { %12520 = vst [vmem:[#allocation90_spill] sm:$0xff] %v10825_v34 }
 0x236   :  { %6816 = vperm.xlu1 %8326, %v6642_v18   ;;  %v6646_v18 = vld [vmem:[%s12427_s9 + $0xf8] sm:$0xff] }
 0x237   :  { %6811 = vperm.xlu0 %8325, %v6641_v4   ;;  %v10808_v4 = vpop.permute.xlu1 %5050 }
 0x238   :  { %12519 = vst [vmem:[#allocation89_spill] sm:$0xff] %v10808_v4  ;;  %v8438_v4 = vld [vmem:[%s12423_s3 + $0xac] ss:$16 sps:$4 sm:$0xff]   ;;  %v10835_v0 = vpop.permute.xlu0 %5065 }
 0x239   :  { %12522 = vst [vmem:[#allocation92_spill] sm:$0xff] %v10835_v0 }
 0x23a   :  { %6826 = vperm.xlu1 %8326, %v6644_v13   ;;  %v6648_v13 = vld [vmem:[%s12427_s9 + $0x108] sm:$0xff] }
 0x23b   :  { %6821 = vperm.xlu0 %8325, %v6643_v8   ;;  %2667 = vmatmul.mubr.bf16.gmra.mrb[12].mxu1 %v8434_v22  ;;  %v8437_v22 = vld [vmem:[%s12423_s3 + $0x88] ss:$16 sps:$4 sm:$0xff]   ;;  %v6647_v8 = vld [vmem:[%s12427_s9 + $0x100] sm:$0xff] }
 0x23c   :  { %2674 = vmatprep.mubr.bf16.mxu1 %v8435_v11  ;;  %v10827_v11 = vpop.permute.xlu1 %5060 }
 0x23d   :  { %12521 = vst [vmem:[#allocation91_spill] sm:$0xff] %v10827_v11  ;;  %v6652_v11 = vld [vmem:[%s12427_s9 + $0x128] sm:$0xff] }
 0x23e   :  { %6836 = vperm.xlu1 %8326, %v6646_v18   ;;  %v6649_v18 = vld [vmem:[%s12427_s9 + $0x110] sm:$0xff] }
 0x23f   :  { %6831 = vperm.xlu0 %8325, %v6645_v16   ;;  %v6650_v16 = vld [vmem:[%s12427_s9 + $0x118] sm:$0xff] }
 0x242   :  { %6846 = vperm.xlu1 %8326, %v6648_v13   ;;  %v8440_v13 = vld [vmem:[%s12423_s3 + $0xa8] ss:$16 sps:$4 sm:$0xff]  }
 0x243   :  { %6841 = vperm.xlu0 %8325, %v6647_v8   ;;  %2675 = vmatmul.mubr.bf16.gmra.mrb[16].mxu1 %v8437_v22  ;;  %v10843_v22 = vpop.permute.xlu1 %5070  ;;  %v6651_v8 = vld [vmem:[%s12427_s9 + $0x120] sm:$0xff] }
 0x244   :  { %2682 = vmatprep.mubr.bf16.mxu1 %v8438_v4  ;;  %12523 = vst [vmem:[#allocation93_spill] sm:$0xff] %v10843_v22  ;;  %v8441_v4 = vld [vmem:[%s12423_s3 + $0xcc] ss:$16 sps:$4 sm:$0xff]   ;;  %v10857_v22 = vpop.permute.xlu0 %5075 }
 0x245   :  { %12524 = vst [vmem:[#allocation94_spill] sm:$0xff] %v10857_v22  ;;  %v6657_v22 = vld [vmem:[%s12427_s9 + $0x150] sm:$0xff] }
 0x246   :  { %6856 = vperm.xlu1 %8326, %v6650_v16   ;;  %v6654_v16 = vld [vmem:[%s12427_s9 + $0x138] sm:$0xff] }
 0x247   :  { %6851 = vperm.xlu0 %8325, %v6649_v18   ;;  %v6653_v18 = vld [vmem:[%s12427_s9 + $0x130] sm:$0xff]  ;;  %v10859_v0 = vpop.permute.xlu1 %5080 }
 0x248   :  { %12525 = vst [vmem:[#allocation95_spill] sm:$0xff] %v10859_v0  ;;  %v10873_v0 = vpop.permute.xlu0 %5085 }
 0x249   :  { %12526 = vst [vmem:[#allocation96_spill] sm:$0xff] %v10873_v0 }
 0x24a   :  { %6866 = vperm.xlu1 %8326, %v6652_v11   ;;  %v6656_v11 = vld [vmem:[%s12427_s9 + $0x148] sm:$0xff] }
 0x24b   :  { %6861 = vperm.xlu0 %8325, %v6651_v8   ;;  %2683 = vmatmul.mubr.bf16.gmra.mrb[20].mxu1 %v8440_v13  ;;  %v8443_v13 = vld [vmem:[%s12423_s3 + $0xc8] ss:$16 sps:$4 sm:$0xff]   ;;  %v6655_v8 = vld [vmem:[%s12427_s9 + $0x140] sm:$0xff] }
 0x24c   :  { %2690 = vmatprep.mubr.bf16.mxu1 %v8441_v4  ;;  %v8444_v4 = vld [vmem:[%s12423_s3 + $0xec] ss:$16 sps:$4 sm:$0xff]   ;;  %v10895_v0 = vpop.permute.xlu0 %5095 }
 0x24d   :  { %12528 = vst [vmem:[#allocation98_spill] sm:$0xff] %v10895_v0 }
 0x24e   :  { %6876 = vperm.xlu1 %8326, %v6654_v16   ;;  %v6658_v16 = vld [vmem:[%s12427_s9 + $0x158] sm:$0xff] }
 0x24f   :  { %6871 = vperm.xlu0 %8325, %v6653_v18   ;;  %v10878_v18 = vpop.permute.xlu1 %5090 }
 0x250   :  { %12527 = vst [vmem:[#allocation97_spill] sm:$0xff] %v10878_v18  ;;  %v8447_v18 = vld [vmem:[%s12423_s3 + $0x10c] ss:$16 sps:$4 sm:$0xff]   ;;  %v10905_v34 = vpop.permute.xlu0 %5105 }
 0x251   :  { %12530 = vst [vmem:[#allocation100_spill] sm:$0xff] %v10905_v34 }
 0x252   :  { %6886 = vperm.xlu1 %8326, %v6656_v11   ;;  %v6660_v11 = vld [vmem:[%s12427_s9 + $0x168] sm:$0xff] }
 0x253   :  { %6881 = vperm.xlu0 %8325, %v6655_v8   ;;  %2691 = vmatmul.mubr.bf16.gmra.mrb[24].mxu1 %v8443_v13  ;;  %v8446_v13 = vld [vmem:[%s12423_s3 + $0xe8] ss:$16 sps:$4 sm:$0xff]   ;;  %v6659_v8 = vld [vmem:[%s12427_s9 + $0x160] sm:$0xff] }
 0x254   :  { %2698 = vmatprep.mubr.bf16.mxu1 %v8444_v4  ;;  %v10897_v4 = vpop.permute.xlu1 %5100 }
 0x255   :  { %12529 = vst [vmem:[#allocation99_spill] sm:$0xff] %v10897_v4  ;;  %v6664_v4 = vld [vmem:[%s12427_s9 + $0x188] sm:$0xff] }
 0x256   :  { %6896 = vperm.xlu1 %8326, %v6658_v16   ;;  %v6661_v16 = vld [vmem:[%s12427_s9 + $0x170] sm:$0xff] }
 0x257   :  { %6891 = vperm.xlu0 %8325, %v6657_v22   ;;  %v6662_v22 = vld [vmem:[%s12427_s9 + $0x178] sm:$0xff] }
 0x25a   :  { %6906 = vperm.xlu1 %8326, %v6660_v11   ;;  %v8449_v11 = vld [vmem:[%s12423_s3 + $0x108] ss:$16 sps:$4 sm:$0xff]  }
 0x25b   :  { %6901 = vperm.xlu0 %8325, %v6659_v8   ;;  %2699 = vmatmul.mubr.bf16.gmra.mrb[28].mxu1 %v8446_v13  ;;  %v10913_v13 = vpop.permute.xlu1 %5110  ;;  %v6663_v8 = vld [vmem:[%s12427_s9 + $0x180] sm:$0xff] }
 0x25c   :  { %2706 = vmatprep.mubr.bf16.mxu1 %v8447_v18  ;;  %12531 = vst [vmem:[#allocation101_spill] sm:$0xff] %v10913_v13  ;;  %v8450_v18 = vld [vmem:[%s12423_s3 + $0x12c] ss:$16 sps:$4 sm:$0xff]   ;;  %v10927_v13 = vpop.permute.xlu0 %5115 }
 0x25d   :  { %12532 = vst [vmem:[#allocation102_spill] sm:$0xff] %v10927_v13  ;;  %v6669_v13 = vld [vmem:[%s12427_s9 + $0x1b0] sm:$0xff] }
 0x25e   :  { %6916 = vperm.xlu1 %8326, %v6662_v22   ;;  %v6666_v22 = vld [vmem:[%s12427_s9 + $0x198] sm:$0xff] }
 0x25f   :  { %6911 = vperm.xlu0 %8325, %v6661_v16   ;;  %v6665_v16 = vld [vmem:[%s12427_s9 + $0x190] sm:$0xff]  ;;  %v10929_v34 = vpop.permute.xlu1 %5120 }
 0x260   :  { %12533 = vst [vmem:[#allocation103_spill] sm:$0xff] %v10929_v34  ;;  %v10943_v34 = vpop.permute.xlu0 %5125 }
 0x261   :  { %12534 = vst [vmem:[#allocation104_spill] sm:$0xff] %v10943_v34 }
 0x262   :  { %6926 = vperm.xlu1 %8326, %v6664_v4   ;;  %v6668_v4 = vld [vmem:[%s12427_s9 + $0x1a8] sm:$0xff] }
 0x263   :  { %6921 = vperm.xlu0 %8325, %v6663_v8   ;;  %2707 = vmatmul.mubr.bf16.gmra.mrb[32].mxu1 %v8449_v11  ;;  %v8452_v11 = vld [vmem:[%s12423_s3 + $0x128] ss:$16 sps:$4 sm:$0xff]   ;;  %v6667_v8 = vld [vmem:[%s12427_s9 + $0x1a0] sm:$0xff] }
 0x264   :  { %2714 = vmatprep.mubr.bf16.mxu1 %v8450_v18  ;;  %v8453_v18 = vld [vmem:[%s12423_s3 + $0x14c] ss:$16 sps:$4 sm:$0xff]   ;;  %v10965_v34 = vpop.permute.xlu0 %5135 }
 0x265   :  { %12536 = vst [vmem:[#allocation106_spill] sm:$0xff] %v10965_v34 }
 0x266   :  { %6936 = vperm.xlu1 %8326, %v6666_v22   ;;  %v6670_v22 = vld [vmem:[%s12427_s9 + $0x1b8] sm:$0xff] }
 0x267   :  { %6931 = vperm.xlu0 %8325, %v6665_v16   ;;  %v10948_v16 = vpop.permute.xlu1 %5130 }
 0x268   :  { %12535 = vst [vmem:[#allocation105_spill] sm:$0xff] %v10948_v16  ;;  %v8456_v16 = vld [vmem:[%s12423_s3 + $0x16c] ss:$16 sps:$4 sm:$0xff]   ;;  %v10975_v0 = vpop.permute.xlu0 %5145 }
 0x269   :  { %12538 = vst [vmem:[#allocation108_spill] sm:$0xff] %v10975_v0 }
 0x26a   :  { %6946 = vperm.xlu1 %8326, %v6668_v4   ;;  %v6672_v4 = vld [vmem:[%s12427_s9 + $0x1c8] sm:$0xff] }
 0x26b   :  { %6941 = vperm.xlu0 %8325, %v6667_v8   ;;  %2715 = vmatmul.mubr.bf16.gmra.mrb[36].mxu1 %v8452_v11  ;;  %v8455_v11 = vld [vmem:[%s12423_s3 + $0x148] ss:$16 sps:$4 sm:$0xff]   ;;  %v6671_v8 = vld [vmem:[%s12427_s9 + $0x1c0] sm:$0xff] }
 0x26c   :  { %2722 = vmatprep.mubr.bf16.mxu1 %v8453_v18  ;;  %v10967_v18 = vpop.permute.xlu1 %5140 }
 0x26d   :  { %12537 = vst [vmem:[#allocation107_spill] sm:$0xff] %v10967_v18  ;;  %v6676_v18 = vld [vmem:[%s12427_s9 + $0x1e8] sm:$0xff] }
 0x26e   :  { %6956 = vperm.xlu1 %8326, %v6670_v22   ;;  %v6673_v22 = vld [vmem:[%s12427_s9 + $0x1d0] sm:$0xff] }
 0x26f   :  { %6951 = vperm.xlu0 %8325, %v6669_v13   ;;  %v6674_v13 = vld [vmem:[%s12427_s9 + $0x1d8] sm:$0xff] }
 0x272   :  { %6966 = vperm.xlu1 %8326, %v6672_v4   ;;  %v8458_v4 = vld [vmem:[%s12423_s3 + $0x168] ss:$16 sps:$4 sm:$0xff]  }
 0x273   :  { %6961 = vperm.xlu0 %8325, %v6671_v8   ;;  %2723 = vmatmul.mubr.bf16.gmra.mrb[40].mxu1 %v8455_v11  ;;  %v10983_v11 = vpop.permute.xlu1 %5150  ;;  %v6675_v8 = vld [vmem:[%s12427_s9 + $0x1e0] sm:$0xff] }
 0x274   :  { %2730 = vmatprep.mubr.bf16.mxu1 %v8456_v16  ;;  %12539 = vst [vmem:[#allocation109_spill] sm:$0xff] %v10983_v11  ;;  %v8459_v16 = vld [vmem:[%s12423_s3 + $0x18c] ss:$16 sps:$4 sm:$0xff]   ;;  %v10997_v11 = vpop.permute.xlu0 %5155 }
 0x275   :  { %12540 = vst [vmem:[#allocation110_spill] sm:$0xff] %v10997_v11  ;;  %v8507_v11 = vld [vmem:[%s12423_s3 + $0x38c] ss:$16 sps:$4 sm:$0xff]  }
 0x276   :  { %6976 = vperm.xlu1 %8326, %v6674_v13   ;;  %v6678_v13 = vld [vmem:[%s12427_s9 + $0x1f8] sm:$0xff] }
 0x277   :  { %6971 = vperm.xlu0 %8325, %v6673_v22   ;;  %v6677_v22 = vld [vmem:[%s12427_s9 + $0x1f0] sm:$0xff]  ;;  %v10999_v0 = vpop.permute.xlu1 %5160 }
 0x278   :  { %12541 = vst [vmem:[#allocation111_spill] sm:$0xff] %v10999_v0  ;;  %v11007_v34 = vpop.permute.xlu0 %5165 }
 0x279   :  { %12542 = vst [vmem:[#allocation112_spill] sm:$0xff] %v11007_v34 }
 0x27a   :  { %6986 = vperm.xlu1 %8326, %v6676_v18   ;;  %v8461_v18 = vld [vmem:[%s12423_s3 + $0x188] ss:$16 sps:$4 sm:$0xff]  }
 0x27b   :  { %6981 = vperm.xlu0 %8325, %v6675_v8   ;;  %2731 = vmatmul.mubr.bf16.gmra.mrb[44].mxu1 %v8458_v4  ;;  %v7132_v4 = vld [vmem:[#allocation2] sm:$0x1]  ;;  %v8462_v8 = vld [vmem:[%s12423_s3 + $0x1ac] ss:$16 sps:$4 sm:$0xff]  }
 0x27c   :  { %2738 = vmatprep.mubr.bf16.mxu1 %v8459_v16  ;;  %v8464_v16 = vld [vmem:[%s12423_s3 + $0x1a8] ss:$16 sps:$4 sm:$0xff]  }
 0x27e   :  { %6996 = vperm.xlu1 %8326, %v6678_v13   ;;  %v8465_v13 = vld [vmem:[%s12423_s3 + $0x1cc] ss:$16 sps:$4 sm:$0xff]  }
 0x27f   :  { %6991 = vperm.xlu0 %8325, %v6677_v22   ;;  %v8467_v22 = vld [vmem:[%s12423_s3 + $0x1c8] ss:$16 sps:$4 sm:$0xff]  }
 0x283   :  { %7135 = vperm.xlu0 %8325, %v7132_v4   ;;  %2739 = vmatmul.mubr.bf16.gmra.mrb[48].mxu1 %v8461_v18  ;;  %v8468_v4 = vld [vmem:[%s12423_s3 + $0x1ec] ss:$16 sps:$4 sm:$0xff]   ;;  %v8470_v18 = vld [vmem:[%s12423_s3 + $0x1e8] ss:$16 sps:$4 sm:$0xff]  }
 0x284   :  { %2746 = vmatprep.mubr.bf16.mxu1 %v8462_v8  ;;  %v8471_v8 = vld [vmem:[%s12423_s3 + $0x20c] ss:$16 sps:$4 sm:$0xff]  }
 0x28b   :  { %2747 = vmatmul.mubr.bf16.gmra.mrb[52].mxu1 %v8464_v16  ;;  %v8473_v16 = vld [vmem:[%s12423_s3 + $0x208] ss:$16 sps:$4 sm:$0xff]  }
 0x28c   :  { %2754 = vmatprep.mubr.bf16.mxu1 %v8465_v13  ;;  %v8474_v13 = vld [vmem:[%s12423_s3 + $0x22c] ss:$16 sps:$4 sm:$0xff]  }
 0x293   :  { %2755 = vmatmul.mubr.bf16.gmra.mrb[56].mxu1 %v8467_v22  ;;  %v8476_v22 = vld [vmem:[%s12423_s3 + $0x228] ss:$16 sps:$4 sm:$0xff]  }
 0x294   :  { %2762 = vmatprep.mubr.bf16.mxu1 %v8468_v4  ;;  %v8477_v4 = vld [vmem:[%s12423_s3 + $0x24c] ss:$16 sps:$4 sm:$0xff]  }
 0x29b   :  { %2763 = vmatmul.mubr.bf16.gmra.mrb[60].mxu1 %v8470_v18  ;;  %v8479_v18 = vld [vmem:[%s12423_s3 + $0x248] ss:$16 sps:$4 sm:$0xff]  }
 0x29c   :  { %2770 = vmatprep.mubr.bf16.mxu1 %v8471_v8  ;;  %v8480_v8 = vld [vmem:[%s12423_s3 + $0x26c] ss:$16 sps:$4 sm:$0xff]  }
 0x2a3   :  { %2771 = vmatmul.mubr.bf16.gmra.mrb[64].mxu1 %v8473_v16  ;;  %v8482_v16 = vld [vmem:[%s12423_s3 + $0x268] ss:$16 sps:$4 sm:$0xff]  }
 0x2a4   :  { %2778 = vmatprep.mubr.bf16.mxu1 %v8474_v13  ;;  %v8483_v13 = vld [vmem:[%s12423_s3 + $0x28c] ss:$16 sps:$4 sm:$0xff]  }
 0x2ab   :  { %2779 = vmatmul.mubr.bf16.gmra.mrb[68].mxu1 %v8476_v22  ;;  %v8485_v22 = vld [vmem:[%s12423_s3 + $0x288] ss:$16 sps:$4 sm:$0xff]  }
 0x2ac   :  { %2786 = vmatprep.mubr.bf16.mxu1 %v8477_v4  ;;  %v8486_v4 = vld [vmem:[%s12423_s3 + $0x2ac] ss:$16 sps:$4 sm:$0xff]  }
 0x2b3   :  { %2787 = vmatmul.mubr.bf16.gmra.mrb[72].mxu1 %v8479_v18  ;;  %v8488_v18 = vld [vmem:[%s12423_s3 + $0x2a8] ss:$16 sps:$4 sm:$0xff]  }
 0x2b4   :  { %2794 = vmatprep.mubr.bf16.mxu1 %v8480_v8  ;;  %v8489_v8 = vld [vmem:[%s12423_s3 + $0x2cc] ss:$16 sps:$4 sm:$0xff]  }
 0x2bb   :  { %2795 = vmatmul.mubr.bf16.gmra.mrb[76].mxu1 %v8482_v16  ;;  %v8491_v16 = vld [vmem:[%s12423_s3 + $0x2c8] ss:$16 sps:$4 sm:$0xff]  }
 0x2bc   :  { %2802 = vmatprep.mubr.bf16.mxu1 %v8483_v13  ;;  %v8492_v13 = vld [vmem:[%s12423_s3 + $0x2ec] ss:$16 sps:$4 sm:$0xff]  }
 0x2c3   :  { %2803 = vmatmul.mubr.bf16.gmra.mrb[80].mxu1 %v8485_v22  ;;  %v8494_v22 = vld [vmem:[%s12423_s3 + $0x2e8] ss:$16 sps:$4 sm:$0xff]  }
 0x2c4   :  { %2810 = vmatprep.mubr.bf16.mxu1 %v8486_v4  ;;  %v8495_v4 = vld [vmem:[%s12423_s3 + $0x30c] ss:$16 sps:$4 sm:$0xff]  }
 0x2cb   :  { %2811 = vmatmul.mubr.bf16.gmra.mrb[84].mxu1 %v8488_v18  ;;  %v8497_v18 = vld [vmem:[%s12423_s3 + $0x308] ss:$16 sps:$4 sm:$0xff]  }
 0x2cc   :  { %2818 = vmatprep.mubr.bf16.mxu1 %v8489_v8  ;;  %v8498_v8 = vld [vmem:[%s12423_s3 + $0x32c] ss:$16 sps:$4 sm:$0xff]  }
 0x2d3   :  { %2819 = vmatmul.mubr.bf16.gmra.mrb[88].mxu1 %v8491_v16  ;;  %v8500_v16 = vld [vmem:[%s12423_s3 + $0x328] ss:$16 sps:$4 sm:$0xff]  }
 0x2d4   :  { %2826 = vmatprep.mubr.bf16.mxu1 %v8492_v13  ;;  %v8501_v13 = vld [vmem:[%s12423_s3 + $0x34c] ss:$16 sps:$4 sm:$0xff]  }
 0x2db   :  { %2827 = vmatmul.mubr.bf16.gmra.mrb[92].mxu1 %v8494_v22  ;;  %v8503_v22 = vld [vmem:[%s12423_s3 + $0x348] ss:$16 sps:$4 sm:$0xff]  }
 0x2dc   :  { %2834 = vmatprep.mubr.bf16.mxu1 %v8495_v4  ;;  %v8504_v4 = vld [vmem:[%s12423_s3 + $0x36c] ss:$16 sps:$4 sm:$0xff]  }
 0x2e3   :  { %2835 = vmatmul.mubr.bf16.gmra.mrb[96].mxu1 %v8497_v18 }
 0x2e4   :  { %2842 = vmatprep.mubr.bf16.mxu1 %v8498_v8  ;;  %v8506_v8 = vld [vmem:[%s12423_s3 + $0x368] ss:$16 sps:$4 sm:$0xff]  }
 0x2eb   :  { %2843 = vmatmul.mubr.bf16.gmra.mrb[100].mxu1 %v8500_v16  ;;  %v8521_v16 = vld [vmem:[%s12428_s5 + $0x4] ss:$16 sps:$4 sm:$0xff]  }
 0x2ec   :  { %2850 = vmatprep.mubr.bf16.mxu1 %v8501_v13  ;;  %4179 = vmatprep.mubr.bf16.mxu0 %v8521_v16 }
 0x2f3   :  { %2851 = vmatmul.mubr.bf16.gmra.mrb[104].mxu1 %v8503_v22 }
 0x2f4   :  { %2858 = vmatprep.mubr.bf16.mxu1 %v8504_v4 }
 0x2f6   :  { %v2644_v18 = vpop.f32.mrb[0].mxu1 }
 0x2f7   :  { %v7801_v34 = vadd.f32 %v2644_v18, %v9782_v28  ;;  %v2646_v0 = vpop.f32.mrb[1].mxu1 }
 0x2f8   :  { %v2647_v13 = vpop.f32.mrb[2].mxu1 }
 0x2f9   :  { %v7802_v22 = vadd.f32 %v2647_v13, %v9778_v27  ;;  %v2649_v4 = vpop.f32.mrb[3].mxu1  ;;  %v2899_v35 = vmax.f32 %v7801_v34, 0.0  ;;  %v8510_v27 = vld [vmem:[%s12423_s3 + $0x3ac] ss:$16 sps:$4 sm:$0xff]   ;;  %v8512_v13 = vld [vmem:[%s12423_s3 + $0x3a8] ss:$16 sps:$4 sm:$0xff]  }
 0x2fb   :  { %v2900_v24 = vmax.f32 %v7802_v22, 0.0  ;;  %2859 = vmatmul.mubr.bf16.gmra.mrb[108].mxu1 %v8506_v8 }
 0x2fc   :  { %2866 = vmatprep.mubr.bf16.mxu1 %v8507_v11 }
 0x2fd   :  { %v3091_v19 = vpack.c.bf16 %v2900_v24, %v2899_v35 }
 0x2fe   :  { %v2652_v28 = vpop.f32.mrb[4].mxu1 }
 0x2ff   :  { %v7803_v0 = vadd.f32 %v2652_v28, %v9795_v32  ;;  %v2654_v18 = vpop.f32.mrb[5].mxu1  ;;  %4148 = vmatpush1.bf16.msra.mxu0 %v3091_v19 }
 0x300   :  { %v2655_v43 = vpop.f32.mrb[6].mxu1  ;;  %4149 = vmatprep.subr.bf16.mxu0 %v12543_v20 }
 0x301   :  { %v7804_v34 = vadd.f32 %v2655_v43, %v9791_v1  ;;  %v2657_v11 = vpop.f32.mrb[7].mxu1  ;;  %v2901_v24 = vmax.f32 %v7803_v0, 0.0  ;;  %v8513_v1 = vld [vmem:[%s12423_s3 + $0x3cc] ss:$16 sps:$4 sm:$0xff]  }
 0x303   :  { %v2902_v35 = vmax.f32 %v7804_v34, 0.0  ;;  %2867 = vmatmul.mubr.bf16.gmra.mrb[112].mxu1 %v8509_v52  ;;  %v8515_v34 = vld [vmem:[%s12423_s3 + $0x3c8] ss:$16 sps:$4 sm:$0xff]  }
 0x304   :  { %2874 = vmatprep.mubr.bf16.mxu1 %v8510_v27 }
 0x305   :  { %v3092_v32 = vpack.c.bf16 %v2902_v35, %v2901_v24 }
 0x306   :  { %v2660_v19 = vpop.f32.mrb[8].mxu1 }
 0x307   :  { %v7805_v8 = vadd.f32 %v2660_v19, %v9808_v36  ;;  %v2662_v16 = vpop.f32.mrb[9].mxu1  ;;  %4150 = vmatpush1.bf16.msra.mxu0 %v3092_v32 }
 0x308   :  { %v2663_v22 = vpop.f32.mrb[10].mxu1  ;;  %4151 = vmatprep.subr.bf16.mxu0 %v12543_v20 }
 0x309   :  { %v7806_v52 = vadd.f32 %v2663_v22, %v9804_v40  ;;  %v2665_v43 = vpop.f32.mrb[11].mxu1  ;;  %v2903_v4 = vmax.f32 %v7805_v8, 0.0  ;;  %v8516_v40 = vld [vmem:[%s12423_s3 + $0x3ec] ss:$16 sps:$4 sm:$0xff]   ;;  %v8518_v22 = vld [vmem:[%s12423_s3 + $0x3e8] ss:$16 sps:$4 sm:$0xff]  }
 0x30b   :  { %v2904_v28 = vmax.f32 %v7806_v52, 0.0  ;;  %2875 = vmatmul.mubr.bf16.gmra.mrb[116].mxu1 %v8512_v13 }
 0x30c   :  { %2882 = vmatprep.mubr.bf16.mxu1 %v8513_v1 }
 0x30d   :  { %v3093_v36 = vpack.c.bf16 %v2904_v28, %v2903_v4 }
 0x30e   :  { %v2668_v0 = vpop.f32.mrb[12].mxu1 }
 0x30f   :  { %v7807_v18 = vadd.f32 %v2668_v0, %v9821_v41  ;;  %v2670_v27 = vpop.f32.mrb[13].mxu1  ;;  %4152 = vmatpush1.bf16.msra.mxu0 %v3093_v36 }
 0x310   :  { %v2671_v11 = vpop.f32.mrb[14].mxu1  ;;  %4153 = vmatprep.subr.bf16.mxu0 %v12543_v20 }
 0x311   :  { %v7808_v24 = vadd.f32 %v2671_v11, %v9817_v10  ;;  %v2673_v35 = vpop.f32.mrb[15].mxu1  ;;  %v2905_v32 = vmax.f32 %v7807_v18, 0.0 }
 0x313   :  { %v2906_v19 = vmax.f32 %v7808_v24, 0.0  ;;  %2883 = vmatmul.mubr.bf16.gmra.mrb[120].mxu1 %v8515_v34 }
 0x314   :  { %2890 = vmatprep.mubr.bf16.mxu1 %v8516_v40 }
 0x315   :  { %v3094_v41 = vpack.c.bf16 %v2906_v19, %v2905_v32 }
 0x316   :  { %v2676_v8 = vpop.f32.mrb[16].mxu1 }
 0x317   :  { %v7809_v16 = vadd.f32 %v2676_v8, %v9834_v45  ;;  %v2678_v13 = vpop.f32.mrb[17].mxu1  ;;  %4154 = vmatpush1.bf16.msra.mxu0 %v3094_v41 }
 0x318   :  { %v2679_v1 = vpop.f32.mrb[18].mxu1  ;;  %4155 = vmatprep.subr.bf16.mxu0 %v12543_v20 }
 0x319   :  { %v7810_v10 = vadd.f32 %v2679_v1, %v9830_v48  ;;  %v2681_v52 = vpop.f32.mrb[19].mxu1  ;;  %v2907_v43 = vmax.f32 %v7809_v16, 0.0 }
 0x31b   :  { %v2908_v4 = vmax.f32 %v7810_v10, 0.0  ;;  %2891 = vmatmul.mubr.bf16.gmra.mrb[124].mxu1 %v8518_v22 }
 0x31d   :  { %v3095_v28 = vpack.c.bf16 %v2908_v4, %v2907_v43 }
 0x31e   :  { %v2684_v36 = vpop.f32.mrb[20].mxu1 }
 0x31f   :  { %v7811_v0 = vadd.f32 %v2684_v36, %v9847_v49  ;;  %v2686_v45 = vpop.f32.mrb[21].mxu1  ;;  %4156 = vmatpush1.bf16.msra.mxu0 %v3095_v28 }
 0x320   :  { %v2687_v18 = vpop.f32.mrb[22].mxu1  ;;  %4157 = vmatprep.subr.bf16.mxu0 %v12543_v20 }
 0x321   :  { %v7812_v27 = vadd.f32 %v2687_v18, %v9843_v7  ;;  %v2689_v34 = vpop.f32.mrb[23].mxu1  ;;  %v2909_v11 = vmax.f32 %v7811_v0, 0.0 }
 0x323   :  { %v2910_v40 = vmax.f32 %v7812_v27, 0.0 }
 0x325   :  { %v3096_v24 = vpack.c.bf16 %v2910_v40, %v2909_v11 }
 0x326   :  { %v2692_v48 = vpop.f32.mrb[24].mxu1 }
 0x327   :  { %v7813_v35 = vadd.f32 %v2692_v48, %v9860_v53  ;;  %v2694_v32 = vpop.f32.mrb[25].mxu1  ;;  %4158 = vmatpush1.bf16.msra.mxu0 %v3096_v24 }
 0x328   :  { %v2695_v19 = vpop.f32.mrb[26].mxu1  ;;  %4159 = vmatprep.subr.bf16.mxu0 %v12543_v20 }
 0x329   :  { %v7814_v49 = vadd.f32 %v2695_v19, %v9856_v17  ;;  %v2697_v41 = vpop.f32.mrb[27].mxu1  ;;  %v2911_v8 = vmax.f32 %v7813_v35, 0.0 }
 0x32b   :  { %v2912_v16 = vmax.f32 %v7814_v49, 0.0 }
 0x32d   :  { %v3097_v13 = vpack.c.bf16 %v2912_v16, %v2911_v8 }
 0x32e   :  { %v2700_v22 = vpop.f32.mrb[28].mxu1 }
 0x32f   :  { %v7815_v7 = vadd.f32 %v2700_v22, %v9873_v57  ;;  %v2702_v1 = vpop.f32.mrb[29].mxu1  ;;  %4160 = vmatpush1.bf16.msra.mxu0 %v3097_v13 }
 0x330   :  { %v2703_v10 = vpop.f32.mrb[30].mxu1  ;;  %4161 = vmatprep.subr.bf16.mxu0 %v12543_v20 }
 0x331   :  { %v7816_v53 = vadd.f32 %v2703_v10, %v9869_v21  ;;  %v2705_v52 = vpop.f32.mrb[31].mxu1  ;;  %v2913_v43 = vmax.f32 %v7815_v7, 0.0 }
 0x333   :  { %v2914_v4 = vmax.f32 %v7816_v53, 0.0 }
 0x335   :  { %v3098_v28 = vpack.c.bf16 %v2914_v4, %v2913_v43 }
 0x336   :  { %v2708_v36 = vpop.f32.mrb[32].mxu1 }
 0x337   :  { %v7817_v17 = vadd.f32 %v2708_v36, %v9892_v6  ;;  %v2710_v0 = vpop.f32.mrb[33].mxu1  ;;  %4162 = vmatpush1.bf16.msra.mxu0 %v3098_v28 }
 0x338   :  { %v2711_v45 = vpop.f32.mrb[34].mxu1  ;;  %4163 = vmatprep.subr.bf16.mxu0 %v12543_v20 }
 0x339   :  { %v7818_v57 = vadd.f32 %v2711_v45, %v9888_v61  ;;  %v2713_v18 = vpop.f32.mrb[35].mxu1  ;;  %v2915_v27 = vmax.f32 %v7817_v17, 0.0 }
 0x33b   :  { %v2916_v34 = vmax.f32 %v7818_v57, 0.0 }
 0x33d   :  { %v3099_v11 = vpack.c.bf16 %v2916_v34, %v2915_v27 }
 0x33e   :  { %v2716_v40 = vpop.f32.mrb[36].mxu1 }
 0x33f   :  { %v7819_v21 = vadd.f32 %v2716_v40, %v9905_v3  ;;  %v2718_v24 = vpop.f32.mrb[37].mxu1  ;;  %4164 = vmatpush1.bf16.msra.mxu0 %v3099_v11 }
 0x340   :  { %v2719_v48 = vpop.f32.mrb[38].mxu1  ;;  %4165 = vmatprep.subr.bf16.mxu0 %v12543_v20 }
 0x341   :  { %v7820_v6 = vadd.f32 %v2719_v48, %v9901_v37  ;;  %v2721_v35 = vpop.f32.mrb[39].mxu1  ;;  %v2917_v32 = vmax.f32 %v7819_v21, 0.0 }
 0x343   :  { %v2918_v19 = vmax.f32 %v7820_v6, 0.0 }
 0x345   :  { %v3100_v49 = vpack.c.bf16 %v2918_v19, %v2917_v32 }
 0x346   :  { %v2724_v41 = vpop.f32.mrb[40].mxu1 }
 0x347   :  { %v7821_v61 = vadd.f32 %v2724_v41, %v9924_v29  ;;  %v2726_v8 = vpop.f32.mrb[41].mxu1  ;;  %4166 = vmatpush1.bf16.msra.mxu0 %v3100_v49 }
 0x348   :  { %v2727_v16 = vpop.f32.mrb[42].mxu1  ;;  %4167 = vmatprep.subr.bf16.mxu0 %v12543_v20 }
 0x349   :  { %v7822_v3 = vadd.f32 %v2727_v16, %v9920_v9  ;;  %v2729_v13 = vpop.f32.mrb[43].mxu1  ;;  %v2919_v22 = vmax.f32 %v7821_v61, 0.0 }
 0x34b   :  { %v2920_v7 = vmax.f32 %v7822_v3, 0.0 }
 0x34d   :  { %v3101_v1 = vpack.c.bf16 %v2920_v7, %v2919_v22 }
 0x34e   :  { %v2732_v10 = vpop.f32.mrb[44].mxu1 }
 0x34f   :  { %v7823_v37 = vadd.f32 %v2732_v10, %v9937_v54  ;;  %v2734_v53 = vpop.f32.mrb[45].mxu1  ;;  %4168 = vmatpush1.bf16.msra.mxu0 %v3101_v1 }
 0x350   :  { %v2735_v52 = vpop.f32.mrb[46].mxu1  ;;  %4169 = vmatprep.subr.bf16.mxu0 %v12543_v20 }
 0x351   :  { %v7824_v29 = vadd.f32 %v2735_v52, %v9933_v46  ;;  %v2737_v43 = vpop.f32.mrb[47].mxu1  ;;  %v2921_v4 = vmax.f32 %v7823_v37, 0.0 }
 0x353   :  { %v2922_v28 = vmax.f32 %v7824_v29, 0.0 }
 0x355   :  { %v3102_v36 = vpack.c.bf16 %v2922_v28, %v2921_v4 }
 0x356   :  { %v2740_v17 = vpop.f32.mrb[48].mxu1 }
 0x357   :  { %v7825_v9 = vadd.f32 %v2740_v17, %v9956_v14  ;;  %v2742_v0 = vpop.f32.mrb[49].mxu1  ;;  %4170 = vmatpush1.bf16.msra.mxu0 %v3102_v36 }
 0x358   :  { %v2743_v45 = vpop.f32.mrb[50].mxu1  ;;  %4171 = vmatprep.subr.bf16.mxu0 %v12543_v20 }
 0x359   :  { %v7826_v54 = vadd.f32 %v2743_v45, %v9952_v58  ;;  %v2745_v57 = vpop.f32.mrb[51].mxu1  ;;  %v2923_v18 = vmax.f32 %v7825_v9, 0.0 }
 0x35b   :  { %v2924_v27 = vmax.f32 %v7826_v54, 0.0  ;;  %v8525_v54 = vld [vmem:[%s12428_s5 + $0x44] ss:$16 sps:$4 sm:$0xff]  }
 0x35d   :  { %v3103_v34 = vpack.c.bf16 %v2924_v27, %v2923_v18 }
 0x35e   :  { %v2748_v11 = vpop.f32.mrb[52].mxu1 }
 0x35f   :  { %v7827_v46 = vadd.f32 %v2748_v11, %v9969_v42  ;;  %v2750_v40 = vpop.f32.mrb[53].mxu1  ;;  %4172 = vmatpush1.bf16.msra.mxu0 %v3103_v34 }
 0x360   :  { %v2751_v21 = vpop.f32.mrb[54].mxu1  ;;  %4173 = vmatprep.subr.bf16.mxu0 %v12543_v20 }
 0x361   :  { %v7828_v14 = vadd.f32 %v2751_v21, %v9965_v33  ;;  %v2753_v24 = vpop.f32.mrb[55].mxu1  ;;  %v2925_v48 = vmax.f32 %v7827_v46, 0.0 }
 0x363   :  { %v2926_v6 = vmax.f32 %v7828_v14, 0.0  ;;  %v8528_v14 = vld [vmem:[%s12428_s5 + $0x64] ss:$16 sps:$4 sm:$0xff]  }
 0x365   :  { %v3104_v35 = vpack.c.bf16 %v2926_v6, %v2925_v48 }
 0x366   :  { %v2756_v32 = vpop.f32.mrb[56].mxu1 }
 0x367   :  { %v7829_v58 = vadd.f32 %v2756_v32, %v9988_v30  ;;  %v2758_v19 = vpop.f32.mrb[57].mxu1  ;;  %4174 = vmatpush1.bf16.msra.mxu0 %v3104_v35 }
 0x368   :  { %v2759_v49 = vpop.f32.mrb[58].mxu1  ;;  %4175 = vmatprep.subr.bf16.mxu0 %v12543_v20 }
 0x369   :  { %v7830_v42 = vadd.f32 %v2759_v49, %v9984_v15  ;;  %v2761_v41 = vpop.f32.mrb[59].mxu1  ;;  %v2927_v61 = vmax.f32 %v7829_v58, 0.0  ;;  %v8519_v15 = vld [vmem:[%s12428_s5] ss:$16 sps:$4 sm:$0xff]  }
 0x36b   :  { %v2928_v8 = vmax.f32 %v7830_v42, 0.0  ;;  %v8531_v42 = vld [vmem:[%s12428_s5 + $0x84] ss:$16 sps:$4 sm:$0xff]  }
 0x36d   :  { %v3105_v16 = vpack.c.bf16 %v2928_v8, %v2927_v61 }
 0x36e   :  { %v2764_v3 = vpop.f32.mrb[60].mxu1 }
 0x36f   :  { %v7831_v33 = vadd.f32 %v2764_v3, %v10001_v23  ;;  %v2766_v13 = vpop.f32.mrb[61].mxu1  ;;  %4176 = vmatpush1.bf16.msra.mxu0 %v3105_v16  ;;  %v8522_v23 = vld [vmem:[%s12428_s5 + $0x24] ss:$16 sps:$4 sm:$0xff]  }
 0x370   :  { %v2767_v22 = vpop.f32.mrb[62].mxu1  ;;  %4177 = vmatprep.subr.bf16.mxu0 %v12543_v20 }
 0x371   :  { %v7832_v30 = vadd.f32 %v2767_v22, %v9997_v50  ;;  %v2769_v7 = vpop.f32.mrb[63].mxu1  ;;  %v2929_v1 = vmax.f32 %v7831_v33, 0.0 }
 0x373   :  { %v2930_v10 = vmax.f32 %v7832_v30, 0.0  ;;  %v8534_v30 = vld [vmem:[%s12428_s5 + $0xa4] ss:$16 sps:$4 sm:$0xff]  }
 0x375   :  { %v3106_v37 = vpack.c.bf16 %v2930_v10, %v2929_v1 }
 0x376   :  { %v2772_v53 = vpop.f32.mrb[64].mxu1 }
 0x377   :  { %v7833_v52 = vadd.f32 %v2772_v53, %v10020_v44  ;;  %v2774_v29 = vpop.f32.mrb[65].mxu1  ;;  %4178 = vmatpush1.bf16.msra.mxu0 %v3106_v37  ;;  %v8524_v44 = vld [vmem:[%s12428_s5 + $0x20] ss:$16 sps:$4 sm:$0xff]  }
 0x378   :  { %v2775_v43 = vpop.f32.mrb[66].mxu1  ;;  %4436 = vmatprep.subr.bf16.mxu0 %v12543_v20 }
 0x379   :  { %v7834_v50 = vadd.f32 %v2775_v43, %v10016_v31  ;;  %v2777_v4 = vpop.f32.mrb[67].mxu1  ;;  %v2931_v28 = vmax.f32 %v7833_v52, 0.0 }
 0x37a   :  { %4180 = vmatmul.mubr.bf16.vlgmr.msra.gmra.mrb[64].mxu0 %v8519_v15 }
 0x37b   :  { %v2932_v36 = vmax.f32 %v7834_v50, 0.0  ;;  %4187 = vmatprep.mubr.bf16.mxu0 %v8522_v23  ;;  %v8537_v23 = vld [vmem:[%s12428_s5 + $0xc4] ss:$16 sps:$4 sm:$0xff]  }
 0x37d   :  { %v3107_v17 = vpack.c.bf16 %v2932_v36, %v2931_v28 }
 0x37e   :  { %v2780_v9 = vpop.f32.mrb[68].mxu1 }
 0x37f   :  { %v7835_v0 = vadd.f32 %v2780_v9, %v10033_v39  ;;  %v2782_v45 = vpop.f32.mrb[69].mxu1  ;;  %4437 = vmatpush1.bf16.msra.mxu0 %v3107_v17  ;;  %v8527_v39 = vld [vmem:[%s12428_s5 + $0x40] ss:$16 sps:$4 sm:$0xff]  }
 0x380   :  { %v2783_v31 = vpop.f32.mrb[70].mxu1  ;;  %4438 = vmatprep.subr.bf16.mxu0 %v12543_v20 }
 0x381   :  { %v7836_v57 = vadd.f32 %v2783_v31, %v10029_v2  ;;  %v2785_v18 = vpop.f32.mrb[71].mxu1  ;;  %v2933_v27 = vmax.f32 %v7835_v0, 0.0  ;;  %v8540_v0 = vld [vmem:[%s12428_s5 + $0xe4] ss:$16 sps:$4 sm:$0xff]  }
 0x382   :  { %4188 = vmatmul.mubr.bf16.gmra.mrb[68].mxu0 %v8524_v44 }
 0x383   :  { %v2934_v34 = vmax.f32 %v7836_v57, 0.0  ;;  %4195 = vmatprep.mubr.bf16.mxu0 %v8525_v54 }
 0x385   :  { %v3108_v11 = vpack.c.bf16 %v2934_v34, %v2933_v27 }
 0x386   :  { %v2788_v46 = vpop.f32.mrb[72].mxu1 }
 0x387   :  { %v7837_v40 = vadd.f32 %v2788_v46, %v10052_v60  ;;  %v2790_v21 = vpop.f32.mrb[73].mxu1  ;;  %4439 = vmatpush1.bf16.msra.mxu0 %v3108_v11  ;;  %v8530_v60 = vld [vmem:[%s12428_s5 + $0x60] ss:$16 sps:$4 sm:$0xff]   ;;  %v8543_v46 = vld [vmem:[%s12428_s5 + $0x104] ss:$16 sps:$4 sm:$0xff]  }
 0x388   :  { %v2791_v2 = vpop.f32.mrb[74].mxu1  ;;  %4440 = vmatprep.subr.bf16.mxu0 %v12543_v20 }
 0x389   :  { %v7838_v24 = vadd.f32 %v2791_v2, %v10048_v47  ;;  %v2793_v48 = vpop.f32.mrb[75].mxu1  ;;  %v2935_v6 = vmax.f32 %v7837_v40, 0.0 }
 0x38a   :  { %4196 = vmatmul.mubr.bf16.gmra.mrb[72].mxu0 %v8527_v39 }
 0x38b   :  { %v2936_v35 = vmax.f32 %v7838_v24, 0.0  ;;  %4203 = vmatprep.mubr.bf16.mxu0 %v8528_v14 }
 0x38d   :  { %v3109_v32 = vpack.c.bf16 %v2936_v35, %v2935_v6  ;;  %v8546_v35 = vld [vmem:[%s12428_s5 + $0x124] ss:$16 sps:$4 sm:$0xff]  }
 0x38e   :  { %v2796_v58 = vpop.f32.mrb[76].mxu1 }
 0x38f   :  { %v7839_v19 = vadd.f32 %v2796_v58, %v10065_v55  ;;  %v2798_v49 = vpop.f32.mrb[77].mxu1  ;;  %4441 = vmatpush1.bf16.msra.mxu0 %v3109_v32  ;;  %v8533_v55 = vld [vmem:[%s12428_s5 + $0x80] ss:$16 sps:$4 sm:$0xff]  }
 0x390   :  { %v2799_v47 = vpop.f32.mrb[78].mxu1  ;;  %4442 = vmatprep.subr.bf16.mxu0 %v12543_v20  ;;  %v12544_v32 = vld [vmem:[#allocation3_spill] sm:$0xff] }
 0x391   :  { %v7840_v41 = vadd.f32 %v2799_v47, %v10061_v25  ;;  %v2801_v61 = vpop.f32.mrb[79].mxu1  ;;  %v2937_v8 = vmax.f32 %v7839_v19, 0.0 }
 0x392   :  { %4204 = vmatmul.mubr.bf16.gmra.mrb[76].mxu0 %v8530_v60 }
 0x393   :  { %v2938_v16 = vmax.f32 %v7840_v41, 0.0  ;;  %4211 = vmatprep.mubr.bf16.mxu0 %v8531_v42  ;;  %v12545_v41 = vld [vmem:[#allocation5_spill] sm:$0xff] }
 0x395   :  { %v3110_v3 = vpack.c.bf16 %v2938_v16, %v2937_v8  ;;  %v8549_v16 = vld [vmem:[%s12428_s5 + $0x144] ss:$16 sps:$4 sm:$0xff]  }
 0x396   :  { %v2804_v33 = vpop.f32.mrb[80].mxu1 }
 0x397   :  { %v7841_v13 = vadd.f32 %v2804_v33, %v10084_v51  ;;  %v2806_v22 = vpop.f32.mrb[81].mxu1  ;;  %4443 = vmatpush1.bf16.msra.mxu0 %v3110_v3  ;;  %v8536_v51 = vld [vmem:[%s12428_s5 + $0xa0] ss:$16 sps:$4 sm:$0xff]  }
 0x398   :  { %v2807_v25 = vpop.f32.mrb[82].mxu1  ;;  %4444 = vmatprep.subr.bf16.mxu0 %v12543_v20  ;;  %v12546_v33 = vld [vmem:[#allocation4_spill] sm:$0xff] }
 0x399   :  { %v7842_v7 = vadd.f32 %v2807_v25, %v10080_v63  ;;  %v2809_v1 = vpop.f32.mrb[83].mxu1  ;;  %v2939_v10 = vmax.f32 %v7841_v13, 0.0 }
 0x39a   :  { %4212 = vmatmul.mubr.bf16.gmra.mrb[80].mxu0 %v8533_v55  ;;  %v8551_v1 = vld [vmem:[%s12428_s5 + $0x140] ss:$16 sps:$4 sm:$0xff]  }
 0x39b   :  { %v2940_v37 = vmax.f32 %v7842_v7, 0.0  ;;  %4219 = vmatprep.mubr.bf16.mxu0 %v8534_v30 }
 0x39d   :  { %v3111_v53 = vpack.c.bf16 %v2940_v37, %v2939_v10  ;;  %v12547_v10 = vld [vmem:[#allocation7_spill] sm:$0xff] }
 0x39e   :  { %v2812_v15 = vpop.f32.mrb[84].mxu1 }
 0x39f   :  { %v7843_v52 = vadd.f32 %v2812_v15, %v10097_v26  ;;  %v2814_v29 = vpop.f32.mrb[85].mxu1  ;;  %4445 = vmatpush1.bf16.msra.mxu0 %v3111_v53  ;;  %v8539_v26 = vld [vmem:[%s12428_s5 + $0xc0] ss:$16 sps:$4 sm:$0xff]   ;;  %v8552_v15 = vld [vmem:[%s12428_s5 + $0x164] ss:$16 sps:$4 sm:$0xff]  }
 0x3a0   :  { %v2815_v63 = vpop.f32.mrb[86].mxu1  ;;  %4446 = vmatprep.subr.bf16.mxu0 %v12543_v20 }
 0x3a1   :  { %v7844_v43 = vadd.f32 %v2815_v63, %v10093_v62  ;;  %v2817_v50 = vpop.f32.mrb[87].mxu1  ;;  %v2941_v4 = vmax.f32 %v7843_v52, 0.0  ;;  %v12548_v52 = vld [vmem:[#allocation6_spill] sm:$0xff] }
 0x3a2   :  { %4220 = vmatmul.mubr.bf16.gmra.mrb[84].mxu0 %v8536_v51 }
 0x3a3   :  { %v2942_v28 = vmax.f32 %v7844_v43, 0.0  ;;  %4227 = vmatprep.mubr.bf16.mxu0 %v8537_v23 }
 0x3a5   :  { %v3112_v36 = vpack.c.bf16 %v2942_v28, %v2941_v4  ;;  %v8554_v28 = vld [vmem:[%s12428_s5 + $0x160] ss:$16 sps:$4 sm:$0xff]  }
 0x3a6   :  { %v2820_v17 = vpop.f32.mrb[88].mxu1 }
 0x3a7   :  { %v7845_v9 = vadd.f32 %v2820_v17, %v10116_v59  ;;  %v2822_v44 = vpop.f32.mrb[89].mxu1  ;;  %4447 = vmatpush1.bf16.msra.mxu0 %v3112_v36  ;;  %v8542_v59 = vld [vmem:[%s12428_s5 + $0xe0] ss:$16 sps:$4 sm:$0xff]  }
 0x3a8   :  { %v2823_v62 = vpop.f32.mrb[90].mxu1  ;;  %4448 = vmatprep.subr.bf16.mxu0 %v12543_v20  ;;  %v12549_v36 = vld [vmem:[#allocation9_spill] sm:$0xff] }
 0x3a9   :  { %v7846_v45 = vadd.f32 %v2823_v62, %v10112_v56  ;;  %v2825_v54 = vpop.f32.mrb[91].mxu1  ;;  %v2943_v31 = vmax.f32 %v7845_v9, 0.0  ;;  %v8555_v9 = vld [vmem:[%s12428_s5 + $0x184] ss:$16 sps:$4 sm:$0xff]  }
 0x3aa   :  { %4228 = vmatmul.mubr.bf16.gmra.mrb[88].mxu0 %v8539_v26 }
 0x3ab   :  { %v2944_v57 = vmax.f32 %v7846_v45, 0.0  ;;  %4235 = vmatprep.mubr.bf16.mxu0 %v8540_v0  ;;  %v12550_v0 = vld [vmem:[#allocation8_spill] sm:$0xff] }
 0x3ad   :  { %v3113_v18 = vpack.c.bf16 %v2944_v57, %v2943_v31 }
 0x3ae   :  { %v2828_v27 = vpop.f32.mrb[92].mxu1 }
 0x3af   :  { %v7847_v34 = vadd.f32 %v2828_v27, %v10127_v12  ;;  %v2830_v11 = vpop.f32.mrb[93].mxu1  ;;  %4449 = vmatpush1.bf16.msra.mxu0 %v3113_v18  ;;  %v8545_v12 = vld [vmem:[%s12428_s5 + $0x100] ss:$16 sps:$4 sm:$0xff]  }
 0x3b0   :  { %v2831_v56 = vpop.f32.mrb[94].mxu1  ;;  %4450 = vmatprep.subr.bf16.mxu0 %v12543_v20  ;;  %v8557_v27 = vld [vmem:[%s12428_s5 + $0x180] ss:$16 sps:$4 sm:$0xff]  }
 0x3b1   :  { %v7848_v39 = vadd.f32 %v2831_v56, %v10124_v5  ;;  %v2833_v40 = vpop.f32.mrb[95].mxu1  ;;  %v2945_v21 = vmax.f32 %v7847_v34, 0.0 }
 0x3b2   :  { %4236 = vmatmul.mubr.bf16.gmra.mrb[92].mxu0 %v8542_v59  ;;  %v12551_v59 = vld [vmem:[#allocation11_spill] sm:$0xff] }
 0x3b3   :  { %v2946_v14 = vmax.f32 %v7848_v39, 0.0  ;;  %4243 = vmatprep.mubr.bf16.mxu0 %v8543_v46  ;;  %v8558_v46 = vld [vmem:[%s12428_s5 + $0x1a4] ss:$16 sps:$4 sm:$0xff]   ;;  %v12552_v39 = vld [vmem:[#allocation10_spill] sm:$0xff] }
 0x3b5   :  { %v3114_v2 = vpack.c.bf16 %v2946_v14, %v2945_v21 }
 0x3b6   :  { %v2836_v24 = vpop.f32.mrb[96].mxu1 }
 0x3b7   :  { %v7849_v48 = vadd.f32 %v2836_v24, %v10144_v38  ;;  %v2838_v6 = vpop.f32.mrb[97].mxu1  ;;  %4451 = vmatpush1.bf16.msra.mxu0 %v3114_v2  ;;  %v8548_v38 = vld [vmem:[%s12428_s5 + $0x120] ss:$16 sps:$4 sm:$0xff]  }
 0x3b8   :  { %v2839_v5 = vpop.f32.mrb[98].mxu1  ;;  %4452 = vmatprep.subr.bf16.mxu0 %v12543_v20  ;;  %v12553_v6 = vld [vmem:[#allocation13_spill] sm:$0xff] }
 0x3b9   :  { %v7850_v58 = vadd.f32 %v2839_v5, %v12544_v32  ;;  %v2841_v60 = vpop.f32.mrb[99].mxu1  ;;  %v2947_v19 = vmax.f32 %v7849_v48, 0.0  ;;  %v8560_v48 = vld [vmem:[%s12428_s5 + $0x1a0] ss:$16 sps:$4 sm:$0xff]   ;;  %v8561_v32 = vld [vmem:[%s12428_s5 + $0x1c4] ss:$16 sps:$4 sm:$0xff]  }
 0x3ba   :  { %4244 = vmatmul.mubr.bf16.gmra.mrb[96].mxu0 %v8545_v12  ;;  %v12554_v60 = vld [vmem:[#allocation12_spill] sm:$0xff] }
 0x3bb   :  { %v2948_v49 = vmax.f32 %v7850_v58, 0.0  ;;  %4251 = vmatprep.mubr.bf16.mxu0 %v8546_v35 }
 0x3bd   :  { %v3115_v42 = vpack.c.bf16 %v2948_v49, %v2947_v19 }
 0x3be   :  { %v2844_v47 = vpop.f32.mrb[100].mxu1 }
 0x3bf   :  { %v7851_v61 = vadd.f32 %v2844_v47, %v12545_v41  ;;  %v2846_v8 = vpop.f32.mrb[101].mxu1  ;;  %4453 = vmatpush1.bf16.msra.mxu0 %v3115_v42 }
 0x3c0   :  { %v2847_v3 = vpop.f32.mrb[102].mxu1  ;;  %4454 = vmatprep.subr.bf16.mxu0 %v12543_v20  ;;  %v12555_v8 = vld [vmem:[#allocation15_spill] sm:$0xff] }
 0x3c1   :  { %v7852_v55 = vadd.f32 %v2847_v3, %v12546_v33  ;;  %v2849_v13 = vpop.f32.mrb[103].mxu1  ;;  %v2949_v22 = vmax.f32 %v7851_v61, 0.0  ;;  %v8563_v61 = vld [vmem:[%s12428_s5 + $0x1c0] ss:$16 sps:$4 sm:$0xff]   ;;  %v8564_v33 = vld [vmem:[%s12428_s5 + $0x1e4] ss:$16 sps:$4 sm:$0xff]  }
 0x3c2   :  { %4252 = vmatmul.mubr.bf16.gmra.mrb[100].mxu0 %v8548_v38  ;;  %v12556_v13 = vld [vmem:[#allocation14_spill] sm:$0xff] }
 0x3c3   :  { %v2950_v30 = vmax.f32 %v7852_v55, 0.0  ;;  %4259 = vmatprep.mubr.bf16.mxu0 %v8549_v16 }
 0x3c5   :  { %v3116_v25 = vpack.c.bf16 %v2950_v30, %v2949_v22 }
 0x3c6   :  { %v2852_v7 = vpop.f32.mrb[104].mxu1 }
 0x3c7   :  { %v7853_v37 = vadd.f32 %v2852_v7, %v12547_v10  ;;  %v2854_v53 = vpop.f32.mrb[105].mxu1  ;;  %4455 = vmatpush1.bf16.msra.mxu0 %v3116_v25 }
 0x3c8   :  { %v2855_v51 = vpop.f32.mrb[106].mxu1  ;;  %4456 = vmatprep.subr.bf16.mxu0 %v12543_v20  ;;  %v12557_v53 = vld [vmem:[#allocation17_spill] sm:$0xff] }
 0x3c9   :  { %v7854_v29 = vadd.f32 %v2855_v51, %v12548_v52  ;;  %v2857_v23 = vpop.f32.mrb[107].mxu1  ;;  %v2951_v63 = vmax.f32 %v7853_v37, 0.0  ;;  %v8566_v37 = vld [vmem:[%s12428_s5 + $0x1e0] ss:$16 sps:$4 sm:$0xff]   ;;  %v8567_v52 = vld [vmem:[%s12428_s5 + $0x204] ss:$16 sps:$4 sm:$0xff]  }
 0x3ca   :  { %4260 = vmatmul.mubr.bf16.gmra.mrb[104].mxu0 %v8551_v1  ;;  %v12558_v23 = vld [vmem:[#allocation16_spill] sm:$0xff] }
 0x3cb   :  { %v2952_v43 = vmax.f32 %v7854_v29, 0.0  ;;  %4267 = vmatprep.mubr.bf16.mxu0 %v8552_v15 }
 0x3cd   :  { %v3117_v50 = vpack.c.bf16 %v2952_v43, %v2951_v63 }
 0x3ce   :  { %v2860_v4 = vpop.f32.mrb[108].mxu1 }
 0x3cf   :  { %v7855_v17 = vadd.f32 %v2860_v4, %v12549_v36  ;;  %v2862_v26 = vpop.f32.mrb[109].mxu1  ;;  %4457 = vmatpush1.bf16.msra.mxu0 %v3117_v50  ;;  %v8569_v36 = vld [vmem:[%s12428_s5 + $0x200] ss:$16 sps:$4 sm:$0xff]  }
 0x3d0   :  { %v2863_v44 = vpop.f32.mrb[110].mxu1  ;;  %4458 = vmatprep.subr.bf16.mxu0 %v12543_v20  ;;  %v8572_v26 = vld [vmem:[%s12428_s5 + $0x220] ss:$16 sps:$4 sm:$0xff]  }
 0x3d1   :  { %v7856_v62 = vadd.f32 %v2863_v44, %v12550_v0  ;;  %v2865_v45 = vpop.f32.mrb[111].mxu1  ;;  %v2953_v54 = vmax.f32 %v7855_v17, 0.0  ;;  %v8570_v17 = vld [vmem:[%s12428_s5 + $0x224] ss:$16 sps:$4 sm:$0xff]   ;;  %v8575_v44 = vld [vmem:[%s12428_s5 + $0x240] ss:$16 sps:$4 sm:$0xff]  }
 0x3d2   :  { %4268 = vmatmul.mubr.bf16.gmra.mrb[108].mxu0 %v8554_v28  ;;  %v8576_v0 = vld [vmem:[%s12428_s5 + $0x264] ss:$16 sps:$4 sm:$0xff]  }
 0x3d3   :  { %v2954_v31 = vmax.f32 %v7856_v62, 0.0  ;;  %4275 = vmatprep.mubr.bf16.mxu0 %v8555_v9  ;;  %v8573_v9 = vld [vmem:[%s12428_s5 + $0x244] ss:$16 sps:$4 sm:$0xff]   ;;  %v8578_v62 = vld [vmem:[%s12428_s5 + $0x260] ss:$16 sps:$4 sm:$0xff]  }
 0x3d4   :  { %v8579_v45 = vld [vmem:[%s12428_s5 + $0x284] ss:$16 sps:$4 sm:$0xff]  }
 0x3d5   :  { %v3118_v57 = vpack.c.bf16 %v2954_v31, %v2953_v54  ;;  %v8581_v54 = vld [vmem:[%s12428_s5 + $0x280] ss:$16 sps:$4 sm:$0xff]   ;;  %v8582_v31 = vld [vmem:[%s12428_s5 + $0x2a4] ss:$16 sps:$4 sm:$0xff]  }
 0x3d6   :  { %v2868_v18 = vpop.f32.mrb[112].mxu1 }
 0x3d7   :  { %v7857_v34 = vadd.f32 %v2868_v18, %v12551_v59  ;;  %v2870_v11 = vpop.f32.mrb[113].mxu1  ;;  %4459 = vmatpush1.bf16.msra.mxu0 %v3118_v57  ;;  %v8584_v57 = vld [vmem:[%s12428_s5 + $0x2a0] ss:$16 sps:$4 sm:$0xff]   ;;  %v8585_v18 = vld [vmem:[%s12428_s5 + $0x2c4] ss:$16 sps:$4 sm:$0xff]  }
 0x3d8   :  { %v2871_v56 = vpop.f32.mrb[114].mxu1  ;;  %4460 = vmatprep.subr.bf16.mxu0 %v12543_v20  ;;  %v8588_v59 = vld [vmem:[%s12428_s5 + $0x2e4] ss:$16 sps:$4 sm:$0xff]  }
 0x3d9   :  { %v7858_v40 = vadd.f32 %v2871_v56, %v12552_v39  ;;  %v2873_v21 = vpop.f32.mrb[115].mxu1  ;;  %v2955_v14 = vmax.f32 %v7857_v34, 0.0  ;;  %v8590_v34 = vld [vmem:[%s12428_s5 + $0x2e0] ss:$16 sps:$4 sm:$0xff]   ;;  %v8591_v11 = vld [vmem:[%s12428_s5 + $0x304] ss:$16 sps:$4 sm:$0xff]  }
 0x3da   :  { %4276 = vmatmul.mubr.bf16.gmra.mrb[112].mxu0 %v8557_v27  ;;  %v8587_v27 = vld [vmem:[%s12428_s5 + $0x2c0] ss:$16 sps:$4 sm:$0xff]   ;;  %v8594_v56 = vld [vmem:[%s12428_s5 + $0x324] ss:$16 sps:$4 sm:$0xff]  }
 0x3db   :  { %v2956_v2 = vmax.f32 %v7858_v40, 0.0  ;;  %4283 = vmatprep.mubr.bf16.mxu0 %v8558_v46  ;;  %v8593_v46 = vld [vmem:[%s12428_s5 + $0x300] ss:$16 sps:$4 sm:$0xff]   ;;  %v8597_v40 = vld [vmem:[%s12428_s5 + $0x344] ss:$16 sps:$4 sm:$0xff]  }
 0x3dc   :  { %v8596_v39 = vld [vmem:[%s12428_s5 + $0x320] ss:$16 sps:$4 sm:$0xff]  }
 0x3dd   :  { %v3119_v24 = vpack.c.bf16 %v2956_v2, %v2955_v14  ;;  %v8599_v21 = vld [vmem:[%s12428_s5 + $0x340] ss:$16 sps:$4 sm:$0xff]   ;;  %v8600_v14 = vld [vmem:[%s12428_s5 + $0x364] ss:$16 sps:$4 sm:$0xff]  }
 0x3de   :  { %v2876_v12 = vpop.f32.mrb[116].mxu1  ;;  %v8602_v2 = vld [vmem:[%s12428_s5 + $0x360] ss:$16 sps:$4 sm:$0xff]  }
 0x3df   :  { %v7859_v35 = vadd.f32 %v2876_v12, %v12553_v6  ;;  %v2878_v5 = vpop.f32.mrb[117].mxu1  ;;  %4461 = vmatpush1.bf16.msra.mxu0 %v3119_v24  ;;  %v8603_v24 = vld [vmem:[%s12428_s5 + $0x384] ss:$16 sps:$4 sm:$0xff]   ;;  %v8605_v12 = vld [vmem:[%s12428_s5 + $0x380] ss:$16 sps:$4 sm:$0xff]  }
 0x3e0   :  { %v2879_v58 = vpop.f32.mrb[118].mxu1  ;;  %4462 = vmatprep.subr.bf16.mxu0 %v12543_v20  ;;  %v8608_v6 = vld [vmem:[%s12428_s5 + $0x3a0] ss:$16 sps:$4 sm:$0xff]  }
 0x3e1   :  { %v7860_v19 = vadd.f32 %v2879_v58, %v12554_v60  ;;  %v2881_v49 = vpop.f32.mrb[119].mxu1  ;;  %v2957_v42 = vmax.f32 %v7859_v35, 0.0  ;;  %v8609_v35 = vld [vmem:[%s12428_s5 + $0x3c4] ss:$16 sps:$4 sm:$0xff]   ;;  %v8611_v5 = vld [vmem:[%s12428_s5 + $0x3c0] ss:$16 sps:$4 sm:$0xff]  }
 0x3e2   :  { %4284 = vmatmul.mubr.bf16.gmra.mrb[116].mxu0 %v8560_v48  ;;  %v8606_v48 = vld [vmem:[%s12428_s5 + $0x3a4] ss:$16 sps:$4 sm:$0xff]   ;;  %v8614_v58 = vld [vmem:[%s12428_s5 + $0x3e0] ss:$16 sps:$4 sm:$0xff]   ;;  %v8617_v60 = vld [vmem:[%s12428_s5 + $0xc] ss:$16 sps:$4 sm:$0xff]  }
 0x3e3   :  { %v2958_v47 = vmax.f32 %v7860_v19, 0.0  ;;  %4291 = vmatprep.mubr.bf16.mxu0 %v8561_v32  ;;  %v8612_v32 = vld [vmem:[%s12428_s5 + $0x3e4] ss:$16 sps:$4 sm:$0xff]   ;;  %v8615_v19 = vld [vmem:[%s12428_s5 + $0x8] ss:$16 sps:$4 sm:$0xff]  }
 0x3e4   :  { %v8618_v49 = vld [vmem:[%s12428_s5 + $0x2c] ss:$16 sps:$4 sm:$0xff]  }
 0x3e5   :  { %v3120_v38 = vpack.c.bf16 %v2958_v47, %v2957_v42  ;;  %v8620_v42 = vld [vmem:[%s12428_s5 + $0x28] ss:$16 sps:$4 sm:$0xff]   ;;  %v8621_v47 = vld [vmem:[%s12428_s5 + $0x4c] ss:$16 sps:$4 sm:$0xff]  }
 0x3e6   :  { %v2884_v41 = vpop.f32.mrb[120].mxu1 }
 0x3e7   :  { %v7861_v16 = vadd.f32 %v2884_v41, %v12555_v8  ;;  %v2886_v3 = vpop.f32.mrb[121].mxu1  ;;  %4463 = vmatpush1.bf16.msra.mxu0 %v3120_v38  ;;  %v8623_v38 = vld [vmem:[%s12428_s5 + $0x48] ss:$16 sps:$4 sm:$0xff]   ;;  %v8624_v41 = vld [vmem:[%s12428_s5 + $0x6c] ss:$16 sps:$4 sm:$0xff]  }
 0x3e8   :  { %v2887_v55 = vpop.f32.mrb[122].mxu1  ;;  %4464 = vmatprep.subr.bf16.mxu0 %v12543_v20  ;;  %v8627_v8 = vld [vmem:[%s12428_s5 + $0x8c] ss:$16 sps:$4 sm:$0xff]  }
 0x3e9   :  { %v7862_v22 = vadd.f32 %v2887_v55, %v12556_v13  ;;  %v2889_v30 = vpop.f32.mrb[123].mxu1  ;;  %v2959_v25 = vmax.f32 %v7861_v16, 0.0  ;;  %v8629_v16 = vld [vmem:[%s12428_s5 + $0x88] ss:$16 sps:$4 sm:$0xff]   ;;  %v8630_v3 = vld [vmem:[%s12428_s5 + $0xac] ss:$16 sps:$4 sm:$0xff]  }
 0x3ea   :  { %4292 = vmatmul.mubr.bf16.gmra.mrb[120].mxu0 %v8563_v61  ;;  %v8626_v61 = vld [vmem:[%s12428_s5 + $0x68] ss:$16 sps:$4 sm:$0xff]   ;;  %v8633_v55 = vld [vmem:[%s12428_s5 + $0xcc] ss:$16 sps:$4 sm:$0xff]  }
 0x3eb   :  { %v2960_v7 = vmax.f32 %v7862_v22, 0.0  ;;  %4299 = vmatprep.mubr.bf16.mxu0 %v8564_v33  ;;  %v8632_v33 = vld [vmem:[%s12428_s5 + $0xa8] ss:$16 sps:$4 sm:$0xff]   ;;  %v8636_v22 = vld [vmem:[%s12428_s5 + $0xec] ss:$16 sps:$4 sm:$0xff]  }
 0x3ec   :  { %v8635_v13 = vld [vmem:[%s12428_s5 + $0xc8] ss:$16 sps:$4 sm:$0xff]  }
 0x3ed   :  { %v3121_v1 = vpack.c.bf16 %v2960_v7, %v2959_v25  ;;  %v8638_v30 = vld [vmem:[%s12428_s5 + $0xe8] ss:$16 sps:$4 sm:$0xff]   ;;  %v8639_v25 = vld [vmem:[%s12428_s5 + $0x10c] ss:$16 sps:$4 sm:$0xff]  }
 0x3ee   :  { %v2892_v10 = vpop.f32.mrb[124].mxu1  ;;  %v8641_v7 = vld [vmem:[%s12428_s5 + $0x108] ss:$16 sps:$4 sm:$0xff]  }
 0x3ef   :  { %v7863_v15 = vadd.f32 %v2892_v10, %v12557_v53  ;;  %v2894_v51 = vpop.f32.mrb[125].mxu1  ;;  %4465 = vmatpush1.bf16.msra.mxu0 %v3121_v1  ;;  %v8642_v1 = vld [vmem:[%s12428_s5 + $0x12c] ss:$16 sps:$4 sm:$0xff]   ;;  %v8644_v10 = vld [vmem:[%s12428_s5 + $0x128] ss:$16 sps:$4 sm:$0xff]  }
 0x3f0   :  { %v2895_v29 = vpop.f32.mrb[126].mxu1  ;;  %4466 = vmatprep.subr.bf16.mxu0 %v12543_v20  ;;  %v8647_v53 = vld [vmem:[%s12428_s5 + $0x148] ss:$16 sps:$4 sm:$0xff]  }
 0x3f1   :  { %v7864_v63 = vadd.f32 %v2895_v29, %v12558_v23  ;;  %v2897_v43 = vpop.f32.mrb[127].mxu1  ;;  %v2961_v50 = vmax.f32 %v7863_v15, 0.0  ;;  %v8648_v15 = vld [vmem:[%s12428_s5 + $0x16c] ss:$16 sps:$4 sm:$0xff]   ;;  %v8650_v51 = vld [vmem:[%s12428_s5 + $0x168] ss:$16 sps:$4 sm:$0xff]  }
 0x3f2   :  { %4300 = vmatmul.mubr.bf16.gmra.mrb[124].mxu0 %v8566_v37  ;;  %v8645_v37 = vld [vmem:[%s12428_s5 + $0x14c] ss:$16 sps:$4 sm:$0xff]   ;;  %v8653_v29 = vld [vmem:[%s12428_s5 + $0x188] ss:$16 sps:$4 sm:$0xff]  }
 0x3f3   :  { %v2962_v4 = vmax.f32 %v7864_v63, 0.0  ;;  %4307 = vmatprep.mubr.bf16.mxu0 %v8567_v52  ;;  %v8651_v52 = vld [vmem:[%s12428_s5 + $0x18c] ss:$16 sps:$4 sm:$0xff]   ;;  %v8656_v63 = vld [vmem:[%s12428_s5 + $0x1a8] ss:$16 sps:$4 sm:$0xff]  }
 0x3f4   :  { %v8654_v23 = vld [vmem:[%s12428_s5 + $0x1ac] ss:$16 sps:$4 sm:$0xff]  }
 0x3f5   :  { %v3122_v28 = vpack.c.bf16 %v2962_v4, %v2961_v50  ;;  %v8657_v43 = vld [vmem:[%s12428_s5 + $0x1cc] ss:$16 sps:$4 sm:$0xff]   ;;  %v8659_v50 = vld [vmem:[%s12428_s5 + $0x1c8] ss:$16 sps:$4 sm:$0xff]  }
 0x3f6   :  { %v8660_v4 = vld [vmem:[%s12428_s5 + $0x1ec] ss:$16 sps:$4 sm:$0xff]  }
 0x3f7   :  { %4467 = vmatpush1.bf16.msra.mxu0 %v3122_v28  ;;  %v8662_v28 = vld [vmem:[%s12428_s5 + $0x1e8] ss:$16 sps:$4 sm:$0xff]  }
 0x3f8   :  { %6262 = vmatprep.subr.bf16.mxu0 %v12543_v20 }
 0x3fa   :  { %4308 = vmatmul.mubr.bf16.gmra.mrb[128].mxu0 %v8569_v36  ;;  %v8663_v36 = vld [vmem:[%s12428_s5 + $0x20c] ss:$16 sps:$4 sm:$0xff]  }
 0x3fb   :  { %4315 = vmatprep.mubr.bf16.mxu0 %v8570_v17  ;;  %v8665_v17 = vld [vmem:[%s12428_s5 + $0x208] ss:$16 sps:$4 sm:$0xff]  }
 0x402   :  { %4316 = vmatmul.mubr.bf16.gmra.mrb[132].mxu0 %v8572_v26  ;;  %v8666_v26 = vld [vmem:[%s12428_s5 + $0x22c] ss:$16 sps:$4 sm:$0xff]  }
 0x403   :  { %4323 = vmatprep.mubr.bf16.mxu0 %v8573_v9  ;;  %v8668_v9 = vld [vmem:[%s12428_s5 + $0x228] ss:$16 sps:$4 sm:$0xff]  }
 0x40a   :  { %4324 = vmatmul.mubr.bf16.gmra.mrb[136].mxu0 %v8575_v44  ;;  %v8669_v44 = vld [vmem:[%s12428_s5 + $0x24c] ss:$16 sps:$4 sm:$0xff]  }
 0x40b   :  { %4331 = vmatprep.mubr.bf16.mxu0 %v8576_v0  ;;  %v8671_v0 = vld [vmem:[%s12428_s5 + $0x248] ss:$16 sps:$4 sm:$0xff]  }
 0x412   :  { %4332 = vmatmul.mubr.bf16.gmra.mrb[140].mxu0 %v8578_v62  ;;  %v8672_v62 = vld [vmem:[%s12428_s5 + $0x26c] ss:$16 sps:$4 sm:$0xff]  }
 0x413   :  { %4339 = vmatprep.mubr.bf16.mxu0 %v8579_v45  ;;  %v8674_v45 = vld [vmem:[%s12428_s5 + $0x268] ss:$16 sps:$4 sm:$0xff]  }
 0x41a   :  { %4340 = vmatmul.mubr.bf16.gmra.mrb[144].mxu0 %v8581_v54  ;;  %v8675_v54 = vld [vmem:[%s12428_s5 + $0x28c] ss:$16 sps:$4 sm:$0xff]  }
 0x41b   :  { %4347 = vmatprep.mubr.bf16.mxu0 %v8582_v31  ;;  %v8677_v31 = vld [vmem:[%s12428_s5 + $0x288] ss:$16 sps:$4 sm:$0xff]  }
 0x422   :  { %4348 = vmatmul.mubr.bf16.gmra.mrb[148].mxu0 %v8584_v57  ;;  %v8678_v57 = vld [vmem:[%s12428_s5 + $0x2ac] ss:$16 sps:$4 sm:$0xff]  }
 0x423   :  { %4355 = vmatprep.mubr.bf16.mxu0 %v8585_v18  ;;  %v8680_v18 = vld [vmem:[%s12428_s5 + $0x2a8] ss:$16 sps:$4 sm:$0xff]  }
 0x42a   :  { %4356 = vmatmul.mubr.bf16.gmra.mrb[152].mxu0 %v8587_v27  ;;  %v8681_v27 = vld [vmem:[%s12428_s5 + $0x2cc] ss:$16 sps:$4 sm:$0xff]  }
 0x42b   :  { %4363 = vmatprep.mubr.bf16.mxu0 %v8588_v59  ;;  %v8683_v59 = vld [vmem:[%s12428_s5 + $0x2c8] ss:$16 sps:$4 sm:$0xff]  }
 0x432   :  { %4364 = vmatmul.mubr.bf16.gmra.mrb[156].mxu0 %v8590_v34  ;;  %v8684_v34 = vld [vmem:[%s12428_s5 + $0x2ec] ss:$16 sps:$4 sm:$0xff]  }
 0x433   :  { %4371 = vmatprep.mubr.bf16.mxu0 %v8591_v11  ;;  %v8686_v11 = vld [vmem:[%s12428_s5 + $0x2e8] ss:$16 sps:$4 sm:$0xff]  }
 0x43a   :  { %4372 = vmatmul.mubr.bf16.gmra.mrb[160].mxu0 %v8593_v46  ;;  %v8687_v46 = vld [vmem:[%s12428_s5 + $0x30c] ss:$16 sps:$4 sm:$0xff]  }
 0x43b   :  { %4379 = vmatprep.mubr.bf16.mxu0 %v8594_v56  ;;  %v8689_v56 = vld [vmem:[%s12428_s5 + $0x308] ss:$16 sps:$4 sm:$0xff]  }
 0x442   :  { %4380 = vmatmul.mubr.bf16.gmra.mrb[164].mxu0 %v8596_v39  ;;  %v8690_v39 = vld [vmem:[%s12428_s5 + $0x32c] ss:$16 sps:$4 sm:$0xff]  }
 0x443   :  { %4387 = vmatprep.mubr.bf16.mxu0 %v8597_v40  ;;  %v8692_v40 = vld [vmem:[%s12428_s5 + $0x328] ss:$16 sps:$4 sm:$0xff]  }
 0x44a   :  { %4388 = vmatmul.mubr.bf16.gmra.mrb[168].mxu0 %v8599_v21  ;;  %v8693_v21 = vld [vmem:[%s12428_s5 + $0x34c] ss:$16 sps:$4 sm:$0xff]  }
 0x44b   :  { %4395 = vmatprep.mubr.bf16.mxu0 %v8600_v14  ;;  %v8695_v14 = vld [vmem:[%s12428_s5 + $0x348] ss:$16 sps:$4 sm:$0xff]  }
 0x452   :  { %4396 = vmatmul.mubr.bf16.gmra.mrb[172].mxu0 %v8602_v2  ;;  %v8696_v2 = vld [vmem:[%s12428_s5 + $0x36c] ss:$16 sps:$4 sm:$0xff]  }
 0x453   :  { %4403 = vmatprep.mubr.bf16.mxu0 %v8603_v24 }
 0x45a   :  { %4404 = vmatmul.mubr.bf16.gmra.mrb[176].mxu0 %v8605_v12  ;;  %v8698_v12 = vld [vmem:[%s12428_s5 + $0x368] ss:$16 sps:$4 sm:$0xff]  }
 0x45b   :  { %4411 = vmatprep.mubr.bf16.mxu0 %v8606_v48  ;;  %v12559_v48 = vld [vmem:[#allocation19_spill] sm:$0xff] }
 0x462   :  { %4412 = vmatmul.mubr.bf16.gmra.mrb[180].mxu0 %v8608_v6 }
 0x463   :  { %4419 = vmatprep.mubr.bf16.mxu0 %v8609_v35 }
 0x46a   :  { %4420 = vmatmul.mubr.bf16.gmra.mrb[184].mxu0 %v8611_v5  ;;  %v8713_v5 = vld [vmem:[%s12429_s7 + $0x4] ss:$16 sps:$4 sm:$0xff]  }
 0x46b   :  { %4427 = vmatprep.mubr.bf16.mxu0 %v8612_v32  ;;  %6005 = vmatprep.mubr.bf16.mxu1 %v8713_v5 }
 0x472   :  { %4428 = vmatmul.mubr.bf16.gmra.mrb[188].mxu0 %v8614_v58  ;;  %v8699_v58 = vld [vmem:[%s12428_s5 + $0x38c] ss:$16 sps:$4 sm:$0xff]  }
 0x473   :  { %4468 = vmatprep.mubr.bf16.mxu0 %v8617_v60  ;;  %v12560_v60 = vld [vmem:[#allocation18_spill] sm:$0xff] }
 0x47a   :  { %4469 = vmatmul.mubr.bf16.vlgmr.msra.gmra.mrb[64].mxu0 %v8615_v19 }
 0x47b   :  { %4476 = vmatprep.mubr.bf16.mxu0 %v8618_v49 }
 0x482   :  { %4477 = vmatmul.mubr.bf16.gmra.mrb[68].mxu0 %v8620_v42 }
 0x483   :  { %4484 = vmatprep.mubr.bf16.mxu0 %v8621_v47 }
 0x48a   :  { %4485 = vmatmul.mubr.bf16.gmra.mrb[72].mxu0 %v8623_v38 }
 0x48b   :  { %4492 = vmatprep.mubr.bf16.mxu0 %v8624_v41 }
 0x492   :  { %4493 = vmatmul.mubr.bf16.gmra.mrb[76].mxu0 %v8626_v61  ;;  %v12561_v61 = vld [vmem:[#allocation21_spill] sm:$0xff] }
 0x493   :  { %4500 = vmatprep.mubr.bf16.mxu0 %v8627_v8 }
 0x49a   :  { %4501 = vmatmul.mubr.bf16.gmra.mrb[80].mxu0 %v8629_v16 }
 0x49b   :  { %4508 = vmatprep.mubr.bf16.mxu0 %v8630_v3  ;;  %v8701_v3 = vld [vmem:[%s12428_s5 + $0x388] ss:$16 sps:$4 sm:$0xff]  }
 0x4a2   :  { %4509 = vmatmul.mubr.bf16.gmra.mrb[84].mxu0 %v8632_v33 }
 0x4a3   :  { %4516 = vmatprep.mubr.bf16.mxu0 %v8633_v55  ;;  %v8702_v55 = vld [vmem:[%s12428_s5 + $0x3ac] ss:$16 sps:$4 sm:$0xff]  }
 0x4aa   :  { %4517 = vmatmul.mubr.bf16.gmra.mrb[88].mxu0 %v8635_v13  ;;  %v12562_v13 = vld [vmem:[#allocation20_spill] sm:$0xff] }
 0x4ab   :  { %4524 = vmatprep.mubr.bf16.mxu0 %v8636_v22 }
 0x4b2   :  { %4525 = vmatmul.mubr.bf16.gmra.mrb[92].mxu0 %v8638_v30 }
 0x4b3   :  { %4532 = vmatprep.mubr.bf16.mxu0 %v8639_v25 }
 0x4ba   :  { %4533 = vmatmul.mubr.bf16.gmra.mrb[96].mxu0 %v8641_v7 }
 0x4bb   :  { %4540 = vmatprep.mubr.bf16.mxu0 %v8642_v1 }
 0x4c2   :  { %4541 = vmatmul.mubr.bf16.gmra.mrb[100].mxu0 %v8644_v10 }
 0x4c3   :  { %4548 = vmatprep.mubr.bf16.mxu0 %v8645_v37  ;;  %v12563_v37 = vld [vmem:[#allocation23_spill] sm:$0xff] }
 0x4ca   :  { %4549 = vmatmul.mubr.bf16.gmra.mrb[104].mxu0 %v8647_v53 }
 0x4cb   :  { %4556 = vmatprep.mubr.bf16.mxu0 %v8648_v15 }
 0x4d2   :  { %4557 = vmatmul.mubr.bf16.gmra.mrb[108].mxu0 %v8650_v51  ;;  %v8704_v51 = vld [vmem:[%s12428_s5 + $0x3a8] ss:$16 sps:$4 sm:$0xff]  }
 0x4d3   :  { %4564 = vmatprep.mubr.bf16.mxu0 %v8651_v52 }
 0x4da   :  { %4565 = vmatmul.mubr.bf16.gmra.mrb[112].mxu0 %v8653_v29  ;;  %v8705_v29 = vld [vmem:[%s12428_s5 + $0x3cc] ss:$16 sps:$4 sm:$0xff]  }
 0x4db   :  { %4572 = vmatprep.mubr.bf16.mxu0 %v8654_v23  ;;  %v12564_v23 = vld [vmem:[#allocation22_spill] sm:$0xff] }
 0x4e2   :  { %4573 = vmatmul.mubr.bf16.gmra.mrb[116].mxu0 %v8656_v63 }
 0x4e3   :  { %4580 = vmatprep.mubr.bf16.mxu0 %v8657_v43 }
 0x4ea   :  { %4581 = vmatmul.mubr.bf16.gmra.mrb[120].mxu0 %v8659_v50 }
 0x4eb   :  { %4588 = vmatprep.mubr.bf16.mxu0 %v8660_v4 }
 0x4f2   :  { %4589 = vmatmul.mubr.bf16.gmra.mrb[124].mxu0 %v8662_v28 }
 0x4f3   :  { %4596 = vmatprep.mubr.bf16.mxu0 %v8663_v36 }
 0x4fa   :  { %4597 = vmatmul.mubr.bf16.gmra.mrb[128].mxu0 %v8665_v17  ;;  %v12565_v17 = vld [vmem:[#allocation25_spill] sm:$0xff] }
 0x4fb   :  { %4604 = vmatprep.mubr.bf16.mxu0 %v8666_v26 }
 0x502   :  { %4605 = vmatmul.mubr.bf16.gmra.mrb[132].mxu0 %v8668_v9 }
 0x503   :  { %4612 = vmatprep.mubr.bf16.mxu0 %v8669_v44  ;;  %v8707_v44 = vld [vmem:[%s12428_s5 + $0x3c8] ss:$16 sps:$4 sm:$0xff]  }
 0x50a   :  { %4613 = vmatmul.mubr.bf16.gmra.mrb[136].mxu0 %v8671_v0 }
 0x50b   :  { %4620 = vmatprep.mubr.bf16.mxu0 %v8672_v62  ;;  %v8708_v62 = vld [vmem:[%s12428_s5 + $0x3ec] ss:$16 sps:$4 sm:$0xff]  }
 0x512   :  { %4621 = vmatmul.mubr.bf16.gmra.mrb[140].mxu0 %v8674_v45  ;;  %v12566_v45 = vld [vmem:[#allocation24_spill] sm:$0xff] }
 0x513   :  { %4628 = vmatprep.mubr.bf16.mxu0 %v8675_v54 }
 0x51a   :  { %4629 = vmatmul.mubr.bf16.gmra.mrb[144].mxu0 %v8677_v31 }
 0x51b   :  { %4636 = vmatprep.mubr.bf16.mxu0 %v8678_v57 }
 0x522   :  { %4637 = vmatmul.mubr.bf16.gmra.mrb[148].mxu0 %v8680_v18 }
 0x523   :  { %4644 = vmatprep.mubr.bf16.mxu0 %v8681_v27 }
 0x52a   :  { %4645 = vmatmul.mubr.bf16.gmra.mrb[152].mxu0 %v8683_v59 }
 0x52b   :  { %4652 = vmatprep.mubr.bf16.mxu0 %v8684_v34  ;;  %v12567_v34 = vld [vmem:[#allocation27_spill] sm:$0xff] }
 0x532   :  { %4653 = vmatmul.mubr.bf16.gmra.mrb[156].mxu0 %v8686_v11 }
 0x533   :  { %4660 = vmatprep.mubr.bf16.mxu0 %v8687_v46 }
 0x53a   :  { %4661 = vmatmul.mubr.bf16.gmra.mrb[160].mxu0 %v8689_v56  ;;  %v8710_v56 = vld [vmem:[%s12428_s5 + $0x3e8] ss:$16 sps:$4 sm:$0xff]  }
 0x53b   :  { %4668 = vmatprep.mubr.bf16.mxu0 %v8690_v39 }
 0x542   :  { %4669 = vmatmul.mubr.bf16.gmra.mrb[164].mxu0 %v8692_v40  ;;  %v12568_v40 = vld [vmem:[#allocation26_spill] sm:$0xff] }
 0x543   :  { %4676 = vmatprep.mubr.bf16.mxu0 %v8693_v21 }
 0x54a   :  { %4677 = vmatmul.mubr.bf16.gmra.mrb[168].mxu0 %v8695_v14 }
 0x54b   :  { %4684 = vmatprep.mubr.bf16.mxu0 %v8696_v2 }
 0x54d   :  { %v4470_v24 = vpop.f32.mrb[64].mxu0 }
 0x54e   :  { %v7865_v6 = vadd.f32 %v4470_v24, %v12559_v48  ;;  %v4472_v35 = vpop.f32.mrb[65].mxu0 }
 0x54f   :  { %v4473_v32 = vpop.f32.mrb[66].mxu0 }
 0x550   :  { %v7866_v19 = vadd.f32 %v4473_v32, %v12560_v60  ;;  %v4475_v49 = vpop.f32.mrb[67].mxu0  ;;  %v4725_v42 = vmax.f32 %v7865_v6, 0.0  ;;  %v12569_v6 = vld [vmem:[#allocation29_spill] sm:$0xff] }
 0x552   :  { %v4726_v47 = vmax.f32 %v7866_v19, 0.0  ;;  %4685 = vmatmul.mubr.bf16.gmra.mrb[172].mxu0 %v8698_v12 }
 0x553   :  { %4692 = vmatprep.mubr.bf16.mxu0 %v8699_v58  ;;  %v12570_v58 = vld [vmem:[#allocation28_spill] sm:$0xff] }
 0x554   :  { %v4917_v38 = vpack.c.bf16 %v4726_v47, %v4725_v42 }
 0x555   :  { %v4478_v41 = vpop.f32.mrb[68].mxu0 }
 0x556   :  { %v7867_v8 = vadd.f32 %v4478_v41, %v12561_v61  ;;  %v4480_v16 = vpop.f32.mrb[69].mxu0  ;;  %5974 = vmatpush1.bf16.msra.mxu1 %v4917_v38  ;;  %v12571_v41 = vld [vmem:[#allocation31_spill] sm:$0xff] }
 0x557   :  { %v4481_v33 = vpop.f32.mrb[70].mxu0  ;;  %5975 = vmatprep.subr.bf16.mxu1 %v12543_v20 }
 0x558   :  { %v7868_v22 = vadd.f32 %v4481_v33, %v12562_v13  ;;  %v4483_v30 = vpop.f32.mrb[71].mxu0  ;;  %v4727_v25 = vmax.f32 %v7867_v8, 0.0 }
 0x55a   :  { %v4728_v7 = vmax.f32 %v7868_v22, 0.0  ;;  %4693 = vmatmul.mubr.bf16.gmra.mrb[176].mxu0 %v8701_v3  ;;  %v12572_v3 = vld [vmem:[#allocation30_spill] sm:$0xff] }
 0x55b   :  { %4700 = vmatprep.mubr.bf16.mxu0 %v8702_v55 }
 0x55c   :  { %v4918_v1 = vpack.c.bf16 %v4728_v7, %v4727_v25  ;;  %v12573_v7 = vld [vmem:[#allocation33_spill] sm:$0xff] }
 0x55d   :  { %v4486_v10 = vpop.f32.mrb[72].mxu0 }
 0x55e   :  { %v7869_v53 = vadd.f32 %v4486_v10, %v12563_v37  ;;  %v4488_v15 = vpop.f32.mrb[73].mxu0  ;;  %5976 = vmatpush1.bf16.msra.mxu1 %v4918_v1 }
 0x55f   :  { %v4489_v52 = vpop.f32.mrb[74].mxu0  ;;  %5977 = vmatprep.subr.bf16.mxu1 %v12543_v20 }
 0x560   :  { %v7870_v63 = vadd.f32 %v4489_v52, %v12564_v23  ;;  %v4491_v43 = vpop.f32.mrb[75].mxu0  ;;  %v4729_v50 = vmax.f32 %v7869_v53, 0.0  ;;  %v12574_v53 = vld [vmem:[#allocation32_spill] sm:$0xff] }
 0x561   :  { %v12575_v43 = vld [vmem:[#allocation35_spill] sm:$0xff] }
 0x562   :  { %v4730_v4 = vmax.f32 %v7870_v63, 0.0  ;;  %4701 = vmatmul.mubr.bf16.gmra.mrb[180].mxu0 %v8704_v51 }
 0x563   :  { %4708 = vmatprep.mubr.bf16.mxu0 %v8705_v29 }
 0x564   :  { %v4919_v28 = vpack.c.bf16 %v4730_v4, %v4729_v50 }
 0x565   :  { %v4494_v36 = vpop.f32.mrb[76].mxu0 }
 0x566   :  { %v7871_v26 = vadd.f32 %v4494_v36, %v12565_v17  ;;  %v4496_v9 = vpop.f32.mrb[77].mxu0  ;;  %5978 = vmatpush1.bf16.msra.mxu1 %v4919_v28  ;;  %v12576_v36 = vld [vmem:[#allocation34_spill] sm:$0xff] }
 0x567   :  { %v4497_v0 = vpop.f32.mrb[78].mxu0  ;;  %5979 = vmatprep.subr.bf16.mxu1 %v12543_v20 }
 0x568   :  { %v7872_v54 = vadd.f32 %v4497_v0, %v12566_v45  ;;  %v4499_v31 = vpop.f32.mrb[79].mxu0  ;;  %v4731_v57 = vmax.f32 %v7871_v26, 0.0  ;;  %v12577_v45 = vld [vmem:[#allocation37_spill] sm:$0xff] }
 0x56a   :  { %v4732_v18 = vmax.f32 %v7872_v54, 0.0  ;;  %4709 = vmatmul.mubr.bf16.gmra.mrb[184].mxu0 %v8707_v44 }
 0x56b   :  { %4716 = vmatprep.mubr.bf16.mxu0 %v8708_v62 }
 0x56c   :  { %v4920_v27 = vpack.c.bf16 %v4732_v18, %v4731_v57  ;;  %v12578_v18 = vld [vmem:[#allocation36_spill] sm:$0xff] }
 0x56d   :  { %v4502_v59 = vpop.f32.mrb[80].mxu0 }
 0x56e   :  { %v7873_v11 = vadd.f32 %v4502_v59, %v12567_v34  ;;  %v4504_v46 = vpop.f32.mrb[81].mxu0  ;;  %5980 = vmatpush1.bf16.msra.mxu1 %v4920_v27 }
 0x56f   :  { %v4505_v39 = vpop.f32.mrb[82].mxu0  ;;  %5981 = vmatprep.subr.bf16.mxu1 %v12543_v20 }
 0x570   :  { %v7874_v21 = vadd.f32 %v4505_v39, %v12568_v40  ;;  %v4507_v14 = vpop.f32.mrb[83].mxu0  ;;  %v4733_v2 = vmax.f32 %v7873_v11, 0.0  ;;  %v12579_v39 = vld [vmem:[#allocation39_spill] sm:$0xff] }
 0x572   :  { %v4734_v24 = vmax.f32 %v7874_v21, 0.0  ;;  %4717 = vmatmul.mubr.bf16.gmra.mrb[188].mxu0 %v8710_v56 }
 0x574   :  { %v4921_v12 = vpack.c.bf16 %v4734_v24, %v4733_v2  ;;  %v12580_v2 = vld [vmem:[#allocation38_spill] sm:$0xff] }
 0x575   :  { %v4510_v48 = vpop.f32.mrb[84].mxu0 }
 0x576   :  { %v7875_v35 = vadd.f32 %v4510_v48, %v12569_v6  ;;  %v4512_v5 = vpop.f32.mrb[85].mxu0  ;;  %5982 = vmatpush1.bf16.msra.mxu1 %v4921_v12 }
 0x577   :  { %v4513_v32 = vpop.f32.mrb[86].mxu0  ;;  %5983 = vmatprep.subr.bf16.mxu1 %v12543_v20 }
 0x578   :  { %v7876_v60 = vadd.f32 %v4513_v32, %v12570_v58  ;;  %v4515_v19 = vpop.f32.mrb[87].mxu0  ;;  %v4735_v49 = vmax.f32 %v7875_v35, 0.0  ;;  %v12581_v32 = vld [vmem:[#allocation41_spill] sm:$0xff] }
 0x57a   :  { %v4736_v42 = vmax.f32 %v7876_v60, 0.0 }
 0x57c   :  { %v4922_v47 = vpack.c.bf16 %v4736_v42, %v4735_v49  ;;  %v12582_v49 = vld [vmem:[#allocation40_spill] sm:$0xff] }
 0x57d   :  { %v4518_v38 = vpop.f32.mrb[88].mxu0 }
 0x57e   :  { %v7877_v61 = vadd.f32 %v4518_v38, %v12571_v41  ;;  %v4520_v8 = vpop.f32.mrb[89].mxu0  ;;  %5984 = vmatpush1.bf16.msra.mxu1 %v4922_v47 }
 0x57f   :  { %v4521_v16 = vpop.f32.mrb[90].mxu0  ;;  %5985 = vmatprep.subr.bf16.mxu1 %v12543_v20 }
 0x580   :  { %v7878_v33 = vadd.f32 %v4521_v16, %v12572_v3  ;;  %v4523_v55 = vpop.f32.mrb[91].mxu0  ;;  %v4737_v13 = vmax.f32 %v7877_v61, 0.0  ;;  %v12583_v16 = vld [vmem:[#allocation43_spill] sm:$0xff] }
 0x582   :  { %v4738_v22 = vmax.f32 %v7878_v33, 0.0 }
 0x584   :  { %v4923_v30 = vpack.c.bf16 %v4738_v22, %v4737_v13  ;;  %v12584_v13 = vld [vmem:[#allocation42_spill] sm:$0xff] }
 0x585   :  { %v4526_v25 = vpop.f32.mrb[92].mxu0 }
 0x586   :  { %v7879_v1 = vadd.f32 %v4526_v25, %v12573_v7  ;;  %v4528_v10 = vpop.f32.mrb[93].mxu0  ;;  %5986 = vmatpush1.bf16.msra.mxu1 %v4923_v30 }
 0x587   :  { %v4529_v37 = vpop.f32.mrb[94].mxu0  ;;  %5987 = vmatprep.subr.bf16.mxu1 %v12543_v20 }
 0x588   :  { %v7880_v15 = vadd.f32 %v4529_v37, %v12574_v53  ;;  %v4531_v51 = vpop.f32.mrb[95].mxu0  ;;  %v4739_v52 = vmax.f32 %v7879_v1, 0.0  ;;  %v12585_v37 = vld [vmem:[#allocation44_spill] sm:$0xff] }
 0x58a   :  { %v4740_v29 = vmax.f32 %v7880_v15, 0.0 }
 0x58c   :  { %v4924_v23 = vpack.c.bf16 %v4740_v29, %v4739_v52  ;;  %v12586_v52 = vld [vmem:[#allocation45_spill] sm:$0xff] }
 0x58d   :  { %v4534_v63 = vpop.f32.mrb[96].mxu0 }
 0x58e   :  { %v7881_v50 = vadd.f32 %v4534_v63, %v12575_v43  ;;  %v4536_v4 = vpop.f32.mrb[97].mxu0  ;;  %5988 = vmatpush1.bf16.msra.mxu1 %v4924_v23 }
 0x58f   :  { %v4537_v28 = vpop.f32.mrb[98].mxu0  ;;  %5989 = vmatprep.subr.bf16.mxu1 %v12543_v20 }
 0x590   :  { %v7882_v17 = vadd.f32 %v4537_v28, %v12576_v36  ;;  %v4539_v26 = vpop.f32.mrb[99].mxu0  ;;  %v4741_v9 = vmax.f32 %v7881_v50, 0.0  ;;  %v12587_v28 = vld [vmem:[#allocation46_spill] sm:$0xff] }
 0x592   :  { %v4742_v44 = vmax.f32 %v7882_v17, 0.0 }
 0x594   :  { %v4925_v0 = vpack.c.bf16 %v4742_v44, %v4741_v9  ;;  %v12588_v9 = vld [vmem:[#allocation47_spill] sm:$0xff] }
 0x595   :  { %v4542_v62 = vpop.f32.mrb[100].mxu0 }
 0x596   :  { %v7883_v54 = vadd.f32 %v4542_v62, %v12577_v45  ;;  %v4544_v31 = vpop.f32.mrb[101].mxu0  ;;  %5990 = vmatpush1.bf16.msra.mxu1 %v4925_v0 }
 0x597   :  { %v4545_v57 = vpop.f32.mrb[102].mxu0  ;;  %5991 = vmatprep.subr.bf16.mxu1 %v12543_v20 }
 0x598   :  { %v7884_v27 = vadd.f32 %v4545_v57, %v12578_v18  ;;  %v4547_v59 = vpop.f32.mrb[103].mxu0  ;;  %v4743_v34 = vmax.f32 %v7883_v54, 0.0  ;;  %v12589_v57 = vld [vmem:[#allocation48_spill] sm:$0xff] }
 0x59a   :  { %v4744_v11 = vmax.f32 %v7884_v27, 0.0 }
 0x59c   :  { %v4926_v46 = vpack.c.bf16 %v4744_v11, %v4743_v34  ;;  %v12590_v34 = vld [vmem:[#allocation49_spill] sm:$0xff] }
 0x59d   :  { %v4550_v56 = vpop.f32.mrb[104].mxu0 }
 0x59e   :  { %v7885_v40 = vadd.f32 %v4550_v56, %v12579_v39  ;;  %v4552_v21 = vpop.f32.mrb[105].mxu0  ;;  %5992 = vmatpush1.bf16.msra.mxu1 %v4926_v46 }
 0x59f   :  { %v4553_v14 = vpop.f32.mrb[106].mxu0  ;;  %5993 = vmatprep.subr.bf16.mxu1 %v12543_v20 }
 0x5a0   :  { %v7886_v24 = vadd.f32 %v4553_v14, %v12580_v2  ;;  %v4555_v12 = vpop.f32.mrb[107].mxu0  ;;  %v4745_v48 = vmax.f32 %v7885_v40, 0.0  ;;  %v8711_v14 = vld [vmem:[%s12429_s7] ss:$16 sps:$4 sm:$0xff]  }
 0x5a1   :  { %v12591_v2 = vld [vmem:[#allocation50_spill] sm:$0xff] }
 0x5a2   :  { %v4746_v6 = vmax.f32 %v7886_v24, 0.0 }
 0x5a4   :  { %v4927_v35 = vpack.c.bf16 %v4746_v6, %v4745_v48  ;;  %v8714_v48 = vld [vmem:[%s12429_s7 + $0x24] ss:$16 sps:$4 sm:$0xff]  }
 0x5a5   :  { %v4558_v5 = vpop.f32.mrb[108].mxu0 }
 0x5a6   :  { %v7887_v58 = vadd.f32 %v4558_v5, %v12581_v32  ;;  %v4560_v60 = vpop.f32.mrb[109].mxu0  ;;  %5994 = vmatpush1.bf16.msra.mxu1 %v4927_v35  ;;  %v8763_v35 = vld [vmem:[%s12429_s7 + $0xc] ss:$16 sps:$4 sm:$0xff]   ;;  %v12592_v5 = vld [vmem:[#allocation51_spill] sm:$0xff] }
 0x5a7   :  { %v4561_v19 = vpop.f32.mrb[110].mxu0  ;;  %5995 = vmatprep.subr.bf16.mxu1 %v12543_v20  ;;  %6294 = vmatprep.mubr.bf16.mxu0 %v8763_v35 }
 0x5a8   :  { %v7888_v42 = vadd.f32 %v4561_v19, %v12582_v49  ;;  %v4563_v47 = vpop.f32.mrb[111].mxu0  ;;  %v4747_v38 = vmax.f32 %v7887_v58, 0.0 }
 0x5a9   :  { %v8716_v47 = vld [vmem:[%s12429_s7 + $0x20] ss:$16 sps:$4 sm:$0xff]  }
 0x5aa   :  { %v4748_v41 = vmax.f32 %v7888_v42, 0.0 }
 0x5ac   :  { %v4928_v61 = vpack.c.bf16 %v4748_v41, %v4747_v38  ;;  %v12593_v38 = vld [vmem:[#allocation52_spill] sm:$0xff] }
 0x5ad   :  { %v4566_v8 = vpop.f32.mrb[112].mxu0 }
 0x5ae   :  { %v7889_v3 = vadd.f32 %v4566_v8, %v12583_v16  ;;  %v4568_v33 = vpop.f32.mrb[113].mxu0  ;;  %5996 = vmatpush1.bf16.msra.mxu1 %v4928_v61  ;;  %v8717_v8 = vld [vmem:[%s12429_s7 + $0x44] ss:$16 sps:$4 sm:$0xff]  }
 0x5af   :  { %v4569_v55 = vpop.f32.mrb[114].mxu0  ;;  %5997 = vmatprep.subr.bf16.mxu1 %v12543_v20 }
 0x5b0   :  { %v7890_v22 = vadd.f32 %v4569_v55, %v12584_v13  ;;  %v4571_v30 = vpop.f32.mrb[115].mxu0  ;;  %v4749_v25 = vmax.f32 %v7889_v3, 0.0  ;;  %v12594_v3 = vld [vmem:[#allocation53_spill] sm:$0xff] }
 0x5b2   :  { %v4750_v7 = vmax.f32 %v7890_v22, 0.0 }
 0x5b4   :  { %v4929_v1 = vpack.c.bf16 %v4750_v7, %v4749_v25  ;;  %v8719_v7 = vld [vmem:[%s12429_s7 + $0x40] ss:$16 sps:$4 sm:$0xff]  }
 0x5b5   :  { %v4574_v10 = vpop.f32.mrb[116].mxu0 }
 0x5b6   :  { %v7891_v53 = vadd.f32 %v4574_v10, %v12585_v37  ;;  %v4576_v15 = vpop.f32.mrb[117].mxu0  ;;  %5998 = vmatpush1.bf16.msra.mxu1 %v4929_v1  ;;  %v12595_v1 = vld [vmem:[#allocation54_spill] sm:$0xff] }
 0x5b7   :  { %v4577_v51 = vpop.f32.mrb[118].mxu0  ;;  %5999 = vmatprep.subr.bf16.mxu1 %v12543_v20 }
 0x5b8   :  { %v7892_v29 = vadd.f32 %v4577_v51, %v12586_v52  ;;  %v4579_v23 = vpop.f32.mrb[119].mxu0  ;;  %v4751_v63 = vmax.f32 %v7891_v53, 0.0  ;;  %v8720_v53 = vld [vmem:[%s12429_s7 + $0x64] ss:$16 sps:$4 sm:$0xff]  }
 0x5b9   :  { %v12596_v51 = vld [vmem:[#allocation55_spill] sm:$0xff] }
 0x5ba   :  { %v4752_v43 = vmax.f32 %v7892_v29, 0.0 }
 0x5bc   :  { %v4930_v50 = vpack.c.bf16 %v4752_v43, %v4751_v63 }
 0x5bd   :  { %v4582_v4 = vpop.f32.mrb[120].mxu0 }
 0x5be   :  { %v7893_v36 = vadd.f32 %v4582_v4, %v12587_v28  ;;  %v4584_v17 = vpop.f32.mrb[121].mxu0  ;;  %6000 = vmatpush1.bf16.msra.mxu1 %v4930_v50  ;;  %v8722_v4 = vld [vmem:[%s12429_s7 + $0x60] ss:$16 sps:$4 sm:$0xff]  }
 0x5bf   :  { %v4585_v26 = vpop.f32.mrb[122].mxu0  ;;  %6001 = vmatprep.subr.bf16.mxu1 %v12543_v20  ;;  %v12597_v28 = vld [vmem:[#allocation56_spill] sm:$0xff] }
 0x5c0   :  { %v7894_v44 = vadd.f32 %v4585_v26, %v12588_v9  ;;  %v4587_v0 = vpop.f32.mrb[123].mxu0  ;;  %v4753_v62 = vmax.f32 %v7893_v36, 0.0  ;;  %v8723_v26 = vld [vmem:[%s12429_s7 + $0x84] ss:$16 sps:$4 sm:$0xff]  }
 0x5c2   :  { %v4754_v45 = vmax.f32 %v7894_v44, 0.0  ;;  %v12598_v44 = vld [vmem:[#allocation57_spill] sm:$0xff] }
 0x5c4   :  { %v4931_v54 = vpack.c.bf16 %v4754_v45, %v4753_v62 }
 0x5c5   :  { %v4590_v31 = vpop.f32.mrb[124].mxu0 }
 0x5c6   :  { %v7895_v18 = vadd.f32 %v4590_v31, %v12589_v57  ;;  %v4592_v27 = vpop.f32.mrb[125].mxu0  ;;  %6002 = vmatpush1.bf16.msra.mxu1 %v4931_v54 }
 0x5c7   :  { %v4593_v59 = vpop.f32.mrb[126].mxu0  ;;  %6003 = vmatprep.subr.bf16.mxu1 %v12543_v20  ;;  %v12599_v27 = vld [vmem:[#allocation58_spill] sm:$0xff] }
 0x5c8   :  { %v7896_v11 = vadd.f32 %v4593_v59, %v12590_v34  ;;  %v4595_v46 = vpop.f32.mrb[127].mxu0  ;;  %v4755_v56 = vmax.f32 %v7895_v18, 0.0  ;;  %v8725_v18 = vld [vmem:[%s12429_s7 + $0x80] ss:$16 sps:$4 sm:$0xff]  }
 0x5ca   :  { %v4756_v39 = vmax.f32 %v7896_v11, 0.0  ;;  %v8726_v11 = vld [vmem:[%s12429_s7 + $0xa4] ss:$16 sps:$4 sm:$0xff]  }
 0x5cc   :  { %v4932_v40 = vpack.c.bf16 %v4756_v39, %v4755_v56  ;;  %v12600_v56 = vld [vmem:[#allocation59_spill] sm:$0xff] }
 0x5cd   :  { %v4598_v21 = vpop.f32.mrb[128].mxu0 }
 0x5ce   :  { %v7897_v24 = vadd.f32 %v4598_v21, %v12591_v2  ;;  %v4600_v12 = vpop.f32.mrb[129].mxu0  ;;  %6004 = vmatpush1.bf16.msra.mxu1 %v4932_v40 }
 0x5cf   :  { %v4601_v6 = vpop.f32.mrb[130].mxu0  ;;  %7769 = vmatprep.subr.bf16.mxu1 %v12543_v20  ;;  %v8728_v12 = vld [vmem:[%s12429_s7 + $0xa0] ss:$16 sps:$4 sm:$0xff]  }
 0x5d0   :  { %v7898_v32 = vadd.f32 %v4601_v6, %v12592_v5  ;;  %v4603_v58 = vpop.f32.mrb[131].mxu0  ;;  %v4757_v60 = vmax.f32 %v7897_v24, 0.0  ;;  %v8729_v5 = vld [vmem:[%s12429_s7 + $0xc4] ss:$16 sps:$4 sm:$0xff]  }
 0x5d1   :  { %6006 = vmatmul.mubr.bf16.vlgmr.msra.gmra.mrb[128].mxu1 %v8711_v14  ;;  %v12602_v58 = vld [vmem:[#allocation61_spill] sm:$0xff] }
 0x5d2   :  { %v4758_v19 = vmax.f32 %v7898_v32, 0.0  ;;  %6013 = vmatprep.mubr.bf16.mxu1 %v8714_v48  ;;  %v12601_v48 = vld [vmem:[#allocation60_spill] sm:$0xff] }
 0x5d4   :  { %v4933_v49 = vpack.c.bf16 %v4758_v19, %v4757_v60 }
 0x5d5   :  { %v4606_v42 = vpop.f32.mrb[132].mxu0 }
 0x5d6   :  { %v7899_v41 = vadd.f32 %v4606_v42, %v12593_v38  ;;  %v4608_v61 = vpop.f32.mrb[133].mxu0  ;;  %6263 = vmatpush1.bf16.msra.mxu0 %v4933_v49  ;;  %7785 = vmatpush1.bf16.msra.mxu1 %v4933_v49 }
 0x5d7   :  { %v4609_v16 = vpop.f32.mrb[134].mxu0  ;;  %6264 = vmatprep.subr.bf16.mxu0 %v12543_v20  ;;  %7770 = vmatprep.subr.bf16.mxu1 %v12543_v20  ;;  %v12603_v61 = vld [vmem:[#allocation62_spill] sm:$0xff] }
 0x5d8   :  { %v7900_v33 = vadd.f32 %v4609_v16, %v12594_v3  ;;  %v4611_v55 = vpop.f32.mrb[135].mxu0  ;;  %v4759_v13 = vmax.f32 %v7899_v41, 0.0  ;;  %v8731_v41 = vld [vmem:[%s12429_s7 + $0xc0] ss:$16 sps:$4 sm:$0xff]   ;;  %v8732_v3 = vld [vmem:[%s12429_s7 + $0xe4] ss:$16 sps:$4 sm:$0xff]  }
 0x5d9   :  { %6014 = vmatmul.mubr.bf16.gmra.mrb[132].mxu1 %v8716_v47  ;;  %v12604_v55 = vld [vmem:[#allocation63_spill] sm:$0xff] }
 0x5da   :  { %v4760_v22 = vmax.f32 %v7900_v33, 0.0  ;;  %6021 = vmatprep.mubr.bf16.mxu1 %v8717_v8 }
 0x5dc   :  { %v4934_v30 = vpack.c.bf16 %v4760_v22, %v4759_v13 }
 0x5dd   :  { %v4614_v25 = vpop.f32.mrb[136].mxu0 }
 0x5de   :  { %v7901_v10 = vadd.f32 %v4614_v25, %v12595_v1  ;;  %v4616_v37 = vpop.f32.mrb[137].mxu0  ;;  %6265 = vmatpush1.bf16.msra.mxu0 %v4934_v30  ;;  %7786 = vmatpush1.bf16.msra.mxu1 %v4934_v30 }
 0x5df   :  { %v4617_v15 = vpop.f32.mrb[138].mxu0  ;;  %6266 = vmatprep.subr.bf16.mxu0 %v12543_v20  ;;  %7771 = vmatprep.subr.bf16.mxu1 %v12543_v20  ;;  %v12605_v37 = vld [vmem:[#allocation64_spill] sm:$0xff] }
 0x5e0   :  { %v7902_v52 = vadd.f32 %v4617_v15, %v12596_v51  ;;  %v4619_v29 = vpop.f32.mrb[139].mxu0  ;;  %v4761_v23 = vmax.f32 %v7901_v10, 0.0  ;;  %v8734_v10 = vld [vmem:[%s12429_s7 + $0xe0] ss:$16 sps:$4 sm:$0xff]   ;;  %v8735_v51 = vld [vmem:[%s12429_s7 + $0x104] ss:$16 sps:$4 sm:$0xff]  }
 0x5e1   :  { %6022 = vmatmul.mubr.bf16.gmra.mrb[136].mxu1 %v8719_v7  ;;  %v12606_v29 = vld [vmem:[#allocation65_spill] sm:$0xff] }
 0x5e2   :  { %v4762_v63 = vmax.f32 %v7902_v52, 0.0  ;;  %6029 = vmatprep.mubr.bf16.mxu1 %v8720_v53 }
 0x5e4   :  { %v4935_v43 = vpack.c.bf16 %v4762_v63, %v4761_v23 }
 0x5e5   :  { %v4622_v50 = vpop.f32.mrb[140].mxu0 }
 0x5e6   :  { %v7903_v36 = vadd.f32 %v4622_v50, %v12597_v28  ;;  %v4624_v17 = vpop.f32.mrb[141].mxu0  ;;  %6267 = vmatpush1.bf16.msra.mxu0 %v4935_v43  ;;  %7787 = vmatpush1.bf16.msra.mxu1 %v4935_v43 }
 0x5e7   :  { %v4625_v9 = vpop.f32.mrb[142].mxu0  ;;  %6268 = vmatprep.subr.bf16.mxu0 %v12543_v20  ;;  %7772 = vmatprep.subr.bf16.mxu1 %v12543_v20  ;;  %v12607_v17 = vld [vmem:[#allocation66_spill] sm:$0xff] }
 0x5e8   :  { %v7904_v0 = vadd.f32 %v4625_v9, %v12598_v44  ;;  %v4627_v62 = vpop.f32.mrb[143].mxu0  ;;  %v4763_v45 = vmax.f32 %v7903_v36, 0.0  ;;  %v8737_v36 = vld [vmem:[%s12429_s7 + $0x100] ss:$16 sps:$4 sm:$0xff]   ;;  %v8738_v44 = vld [vmem:[%s12429_s7 + $0x124] ss:$16 sps:$4 sm:$0xff]  }
 0x5e9   :  { %6030 = vmatmul.mubr.bf16.gmra.mrb[140].mxu1 %v8722_v4  ;;  %v12608_v62 = vld [vmem:[#allocation67_spill] sm:$0xff] }
 0x5ea   :  { %v4764_v54 = vmax.f32 %v7904_v0, 0.0  ;;  %6037 = vmatprep.mubr.bf16.mxu1 %v8723_v26 }
 0x5ec   :  { %v4936_v31 = vpack.c.bf16 %v4764_v54, %v4763_v45 }
 0x5ed   :  { %v4630_v57 = vpop.f32.mrb[144].mxu0 }
 0x5ee   :  { %v7905_v59 = vadd.f32 %v4630_v57, %v12599_v27  ;;  %v4632_v34 = vpop.f32.mrb[145].mxu0  ;;  %6269 = vmatpush1.bf16.msra.mxu0 %v4936_v31  ;;  %7788 = vmatpush1.bf16.msra.mxu1 %v4936_v31 }
 0x5ef   :  { %v4633_v46 = vpop.f32.mrb[146].mxu0  ;;  %6270 = vmatprep.subr.bf16.mxu0 %v12543_v20  ;;  %7773 = vmatprep.subr.bf16.mxu1 %v12543_v20  ;;  %v12609_v34 = vld [vmem:[#allocation68_spill] sm:$0xff] }
 0x5f0   :  { %v7906_v39 = vadd.f32 %v4633_v46, %v12600_v56  ;;  %v4635_v40 = vpop.f32.mrb[147].mxu0  ;;  %v4765_v21 = vmax.f32 %v7905_v59, 0.0  ;;  %v8740_v59 = vld [vmem:[%s12429_s7 + $0x120] ss:$16 sps:$4 sm:$0xff]   ;;  %v8741_v56 = vld [vmem:[%s12429_s7 + $0x144] ss:$16 sps:$4 sm:$0xff]  }
 0x5f1   :  { %6038 = vmatmul.mubr.bf16.gmra.mrb[144].mxu1 %v8725_v18  ;;  %v12610_v40 = vld [vmem:[#allocation69_spill] sm:$0xff] }
 0x5f2   :  { %v4766_v14 = vmax.f32 %v7906_v39, 0.0  ;;  %6045 = vmatprep.mubr.bf16.mxu1 %v8726_v11 }
 0x5f4   :  { %v4937_v2 = vpack.c.bf16 %v4766_v14, %v4765_v21 }
 0x5f5   :  { %v4638_v24 = vpop.f32.mrb[148].mxu0 }
 0x5f6   :  { %v7907_v6 = vadd.f32 %v4638_v24, %v12601_v48  ;;  %v4640_v35 = vpop.f32.mrb[149].mxu0  ;;  %6271 = vmatpush1.bf16.msra.mxu0 %v4937_v2  ;;  %7789 = vmatpush1.bf16.msra.mxu1 %v4937_v2 }
 0x5f7   :  { %v4641_v32 = vpop.f32.mrb[150].mxu0  ;;  %6272 = vmatprep.subr.bf16.mxu0 %v12543_v20  ;;  %7774 = vmatprep.subr.bf16.mxu1 %v12543_v20  ;;  %v12611_v35 = vld [vmem:[#allocation70_spill] sm:$0xff] }
 0x5f8   :  { %v7908_v60 = vadd.f32 %v4641_v32, %v12602_v58  ;;  %v4643_v19 = vpop.f32.mrb[151].mxu0  ;;  %v4767_v49 = vmax.f32 %v7907_v6, 0.0  ;;  %v8743_v6 = vld [vmem:[%s12429_s7 + $0x140] ss:$16 sps:$4 sm:$0xff]   ;;  %v8744_v58 = vld [vmem:[%s12429_s7 + $0x164] ss:$16 sps:$4 sm:$0xff]  }
 0x5f9   :  { %6046 = vmatmul.mubr.bf16.gmra.mrb[148].mxu1 %v8728_v12  ;;  %v12612_v19 = vld [vmem:[#allocation71_spill] sm:$0xff] }
 0x5fa   :  { %v4768_v42 = vmax.f32 %v7908_v60, 0.0  ;;  %6053 = vmatprep.mubr.bf16.mxu1 %v8729_v5 }
 0x5fc   :  { %v4938_v47 = vpack.c.bf16 %v4768_v42, %v4767_v49 }
 0x5fd   :  { %v4646_v38 = vpop.f32.mrb[152].mxu0 }
 0x5fe   :  { %v7909_v8 = vadd.f32 %v4646_v38, %v12603_v61  ;;  %v4648_v16 = vpop.f32.mrb[153].mxu0  ;;  %6273 = vmatpush1.bf16.msra.mxu0 %v4938_v47  ;;  %7790 = vmatpush1.bf16.msra.mxu1 %v4938_v47 }
 0x5ff   :  { %v4649_v33 = vpop.f32.mrb[154].mxu0  ;;  %6274 = vmatprep.subr.bf16.mxu0 %v12543_v20  ;;  %7775 = vmatprep.subr.bf16.mxu1 %v12543_v20  ;;  %v12613_v16 = vld [vmem:[#allocation72_spill] sm:$0xff] }
 0x600   :  { %v7910_v13 = vadd.f32 %v4649_v33, %v12604_v55  ;;  %v4651_v22 = vpop.f32.mrb[155].mxu0  ;;  %v4769_v30 = vmax.f32 %v7909_v8, 0.0  ;;  %v8746_v8 = vld [vmem:[%s12429_s7 + $0x160] ss:$16 sps:$4 sm:$0xff]   ;;  %v8747_v55 = vld [vmem:[%s12429_s7 + $0x184] ss:$16 sps:$4 sm:$0xff]  }
 0x601   :  { %6054 = vmatmul.mubr.bf16.gmra.mrb[152].mxu1 %v8731_v41  ;;  %v12614_v22 = vld [vmem:[#allocation73_spill] sm:$0xff] }
 0x602   :  { %v4770_v25 = vmax.f32 %v7910_v13, 0.0  ;;  %6061 = vmatprep.mubr.bf16.mxu1 %v8732_v3 }
 0x604   :  { %v4939_v7 = vpack.c.bf16 %v4770_v25, %v4769_v30 }
 0x605   :  { %v4654_v1 = vpop.f32.mrb[156].mxu0 }
 0x606   :  { %v7911_v53 = vadd.f32 %v4654_v1, %v12605_v37  ;;  %v4656_v15 = vpop.f32.mrb[157].mxu0  ;;  %6275 = vmatpush1.bf16.msra.mxu0 %v4939_v7  ;;  %7791 = vmatpush1.bf16.msra.mxu1 %v4939_v7 }
 0x607   :  { %v4657_v52 = vpop.f32.mrb[158].mxu0  ;;  %6276 = vmatprep.subr.bf16.mxu0 %v12543_v20  ;;  %7776 = vmatprep.subr.bf16.mxu1 %v12543_v20  ;;  %v12615_v15 = vld [vmem:[#allocation74_spill] sm:$0xff] }
 0x608   :  { %v7912_v23 = vadd.f32 %v4657_v52, %v12606_v29  ;;  %v4659_v63 = vpop.f32.mrb[159].mxu0  ;;  %v4771_v43 = vmax.f32 %v7911_v53, 0.0  ;;  %v8749_v53 = vld [vmem:[%s12429_s7 + $0x180] ss:$16 sps:$4 sm:$0xff]   ;;  %v8750_v29 = vld [vmem:[%s12429_s7 + $0x1a4] ss:$16 sps:$4 sm:$0xff]  }
 0x609   :  { %6062 = vmatmul.mubr.bf16.gmra.mrb[156].mxu1 %v8734_v10  ;;  %v12616_v63 = vld [vmem:[#allocation75_spill] sm:$0xff] }
 0x60a   :  { %v4772_v50 = vmax.f32 %v7912_v23, 0.0  ;;  %6069 = vmatprep.mubr.bf16.mxu1 %v8735_v51 }
 0x60c   :  { %v4940_v4 = vpack.c.bf16 %v4772_v50, %v4771_v43 }
 0x60d   :  { %v4662_v28 = vpop.f32.mrb[160].mxu0 }
 0x60e   :  { %v7913_v26 = vadd.f32 %v4662_v28, %v12607_v17  ;;  %v4664_v9 = vpop.f32.mrb[161].mxu0  ;;  %6277 = vmatpush1.bf16.msra.mxu0 %v4940_v4  ;;  %7792 = vmatpush1.bf16.msra.mxu1 %v4940_v4 }
 0x60f   :  { %v4665_v0 = vpop.f32.mrb[162].mxu0  ;;  %6278 = vmatprep.subr.bf16.mxu0 %v12543_v20  ;;  %7777 = vmatprep.subr.bf16.mxu1 %v12543_v20  ;;  %v12617_v9 = vld [vmem:[#allocation76_spill] sm:$0xff] }
 0x610   :  { %v7914_v45 = vadd.f32 %v4665_v0, %v12608_v62  ;;  %v4667_v54 = vpop.f32.mrb[163].mxu0  ;;  %v4773_v31 = vmax.f32 %v7913_v26, 0.0  ;;  %v8752_v26 = vld [vmem:[%s12429_s7 + $0x1a0] ss:$16 sps:$4 sm:$0xff]   ;;  %v8753_v62 = vld [vmem:[%s12429_s7 + $0x1c4] ss:$16 sps:$4 sm:$0xff]  }
 0x611   :  { %6070 = vmatmul.mubr.bf16.gmra.mrb[160].mxu1 %v8737_v36  ;;  %v12618_v54 = vld [vmem:[#allocation77_spill] sm:$0xff] }
 0x612   :  { %v4774_v57 = vmax.f32 %v7914_v45, 0.0  ;;  %6077 = vmatprep.mubr.bf16.mxu1 %v8738_v44 }
 0x614   :  { %v4941_v18 = vpack.c.bf16 %v4774_v57, %v4773_v31 }
 0x615   :  { %v4670_v27 = vpop.f32.mrb[164].mxu0 }
 0x616   :  { %v7915_v11 = vadd.f32 %v4670_v27, %v12609_v34  ;;  %v4672_v46 = vpop.f32.mrb[165].mxu0  ;;  %6279 = vmatpush1.bf16.msra.mxu0 %v4941_v18  ;;  %7793 = vmatpush1.bf16.msra.mxu1 %v4941_v18 }
 0x617   :  { %v4673_v39 = vpop.f32.mrb[166].mxu0  ;;  %6280 = vmatprep.subr.bf16.mxu0 %v12543_v20  ;;  %7778 = vmatprep.subr.bf16.mxu1 %v12543_v20  ;;  %v12619_v46 = vld [vmem:[#allocation78_spill] sm:$0xff] }
 0x618   :  { %v7916_v21 = vadd.f32 %v4673_v39, %v12610_v40  ;;  %v4675_v14 = vpop.f32.mrb[167].mxu0  ;;  %v4775_v2 = vmax.f32 %v7915_v11, 0.0  ;;  %v8755_v11 = vld [vmem:[%s12429_s7 + $0x1c0] ss:$16 sps:$4 sm:$0xff]   ;;  %v8756_v40 = vld [vmem:[%s12429_s7 + $0x1e4] ss:$16 sps:$4 sm:$0xff]  }
 0x619   :  { %6078 = vmatmul.mubr.bf16.gmra.mrb[164].mxu1 %v8740_v59  ;;  %v12620_v14 = vld [vmem:[#allocation79_spill] sm:$0xff] }
 0x61a   :  { %v4776_v24 = vmax.f32 %v7916_v21, 0.0  ;;  %6085 = vmatprep.mubr.bf16.mxu1 %v8741_v56 }
 0x61c   :  { %v4942_v12 = vpack.c.bf16 %v4776_v24, %v4775_v2 }
 0x61d   :  { %v4678_v48 = vpop.f32.mrb[168].mxu0 }
 0x61e   :  { %v7917_v5 = vadd.f32 %v4678_v48, %v12611_v35  ;;  %v4680_v32 = vpop.f32.mrb[169].mxu0  ;;  %6281 = vmatpush1.bf16.msra.mxu0 %v4942_v12  ;;  %7794 = vmatpush1.bf16.msra.mxu1 %v4942_v12 }
 0x61f   :  { %v4681_v60 = vpop.f32.mrb[170].mxu0  ;;  %6282 = vmatprep.subr.bf16.mxu0 %v12543_v20  ;;  %7779 = vmatprep.subr.bf16.mxu1 %v12543_v20  ;;  %v12621_v32 = vld [vmem:[#allocation80_spill] sm:$0xff] }
 0x620   :  { %v7918_v49 = vadd.f32 %v4681_v60, %v12612_v19  ;;  %v4683_v42 = vpop.f32.mrb[171].mxu0  ;;  %v4777_v47 = vmax.f32 %v7917_v5, 0.0  ;;  %v8758_v5 = vld [vmem:[%s12429_s7 + $0x1e0] ss:$16 sps:$4 sm:$0xff]   ;;  %v8759_v19 = vld [vmem:[%s12429_s7 + $0x204] ss:$16 sps:$4 sm:$0xff]  }
 0x621   :  { %6086 = vmatmul.mubr.bf16.gmra.mrb[168].mxu1 %v8743_v6  ;;  %v12622_v42 = vld [vmem:[#allocation81_spill] sm:$0xff] }
 0x622   :  { %v4778_v38 = vmax.f32 %v7918_v49, 0.0  ;;  %6093 = vmatprep.mubr.bf16.mxu1 %v8744_v58 }
 0x624   :  { %v4943_v41 = vpack.c.bf16 %v4778_v38, %v4777_v47 }
 0x625   :  { %v4686_v61 = vpop.f32.mrb[172].mxu0 }
 0x626   :  { %v7919_v3 = vadd.f32 %v4686_v61, %v12613_v16  ;;  %v4688_v33 = vpop.f32.mrb[173].mxu0  ;;  %6283 = vmatpush1.bf16.msra.mxu0 %v4943_v41  ;;  %7795 = vmatpush1.bf16.msra.mxu1 %v4943_v41  ;;  %v8761_v16 = vld [vmem:[%s12429_s7 + $0x8] ss:$16 sps:$4 sm:$0xff]  }
 0x627   :  { %v4689_v13 = vpop.f32.mrb[174].mxu0  ;;  %6284 = vmatprep.subr.bf16.mxu0 %v12543_v20  ;;  %7780 = vmatprep.subr.bf16.mxu1 %v12543_v20  ;;  %v8767_v33 = vld [vmem:[%s12429_s7 + $0x2c] ss:$16 sps:$4 sm:$0xff]  }
 0x628   :  { %v7920_v30 = vadd.f32 %v4689_v13, %v12614_v22  ;;  %v4691_v25 = vpop.f32.mrb[175].mxu0  ;;  %v4779_v7 = vmax.f32 %v7919_v3, 0.0  ;;  %v8764_v3 = vld [vmem:[%s12429_s7 + $0x200] ss:$16 sps:$4 sm:$0xff]   ;;  %v8770_v13 = vld [vmem:[%s12429_s7 + $0x28] ss:$16 sps:$4 sm:$0xff]  }
 0x629   :  { %6094 = vmatmul.mubr.bf16.gmra.mrb[172].mxu1 %v8746_v8  ;;  %v8771_v22 = vld [vmem:[%s12429_s7 + $0x244] ss:$16 sps:$4 sm:$0xff]   ;;  %v8775_v25 = vld [vmem:[%s12429_s7 + $0x240] ss:$16 sps:$4 sm:$0xff]  }
 0x62a   :  { %v4780_v1 = vmax.f32 %v7920_v30, 0.0  ;;  %6101 = vmatprep.mubr.bf16.mxu1 %v8747_v55  ;;  %v8769_v55 = vld [vmem:[%s12429_s7 + $0x220] ss:$16 sps:$4 sm:$0xff]   ;;  %v8773_v30 = vld [vmem:[%s12429_s7 + $0x4c] ss:$16 sps:$4 sm:$0xff]  }
 0x62c   :  { %v4944_v10 = vpack.c.bf16 %v4780_v1, %v4779_v7  ;;  %v8776_v7 = vld [vmem:[%s12429_s7 + $0x48] ss:$16 sps:$4 sm:$0xff]   ;;  %v8777_v1 = vld [vmem:[%s12429_s7 + $0x264] ss:$16 sps:$4 sm:$0xff]  }
 0x62d   :  { %v4694_v37 = vpop.f32.mrb[176].mxu0 }
 0x62e   :  { %v7921_v51 = vadd.f32 %v4694_v37, %v12615_v15  ;;  %v4696_v52 = vpop.f32.mrb[177].mxu0  ;;  %6285 = vmatpush1.bf16.msra.mxu0 %v4944_v10  ;;  %7796 = vmatpush1.bf16.msra.mxu1 %v4944_v10  ;;  %v8779_v10 = vld [vmem:[%s12429_s7 + $0x6c] ss:$16 sps:$4 sm:$0xff]   ;;  %v8781_v37 = vld [vmem:[%s12429_s7 + $0x260] ss:$16 sps:$4 sm:$0xff]  }
 0x62f   :  { %v4697_v23 = vpop.f32.mrb[178].mxu0  ;;  %6286 = vmatprep.subr.bf16.mxu0 %v12543_v20  ;;  %7781 = vmatprep.subr.bf16.mxu1 %v12543_v20  ;;  %v8783_v15 = vld [vmem:[%s12429_s7 + $0x284] ss:$16 sps:$4 sm:$0xff]   ;;  %v8787_v52 = vld [vmem:[%s12429_s7 + $0x280] ss:$16 sps:$4 sm:$0xff]  }
 0x630   :  { %v7922_v43 = vadd.f32 %v4697_v23, %v12616_v63  ;;  %v4699_v50 = vpop.f32.mrb[179].mxu0  ;;  %v4781_v4 = vmax.f32 %v7921_v51, 0.0  ;;  %v8785_v51 = vld [vmem:[%s12429_s7 + $0x8c] ss:$16 sps:$4 sm:$0xff]   ;;  %v8789_v23 = vld [vmem:[%s12429_s7 + $0x2a4] ss:$16 sps:$4 sm:$0xff]  }
 0x631   :  { %6102 = vmatmul.mubr.bf16.gmra.mrb[176].mxu1 %v8749_v53  ;;  %v8782_v53 = vld [vmem:[%s12429_s7 + $0x68] ss:$16 sps:$4 sm:$0xff]   ;;  %v8791_v63 = vld [vmem:[%s12429_s7 + $0xac] ss:$16 sps:$4 sm:$0xff]  }
 0x632   :  { %v4782_v28 = vmax.f32 %v7922_v43, 0.0  ;;  %6109 = vmatprep.mubr.bf16.mxu1 %v8750_v29  ;;  %v8788_v29 = vld [vmem:[%s12429_s7 + $0x88] ss:$16 sps:$4 sm:$0xff]   ;;  %v8793_v43 = vld [vmem:[%s12429_s7 + $0x2a0] ss:$16 sps:$4 sm:$0xff]  }
 0x633   :  { %v8794_v50 = vld [vmem:[%s12429_s7 + $0xa8] ss:$16 sps:$4 sm:$0xff]  }
 0x634   :  { %v4945_v36 = vpack.c.bf16 %v4782_v28, %v4781_v4  ;;  %v8795_v4 = vld [vmem:[%s12429_s7 + $0x2c4] ss:$16 sps:$4 sm:$0xff]   ;;  %v8797_v28 = vld [vmem:[%s12429_s7 + $0xcc] ss:$16 sps:$4 sm:$0xff]  }
 0x635   :  { %v4702_v17 = vpop.f32.mrb[180].mxu0 }
 0x636   :  { %v7923_v44 = vadd.f32 %v4702_v17, %v12617_v9  ;;  %v4704_v0 = vpop.f32.mrb[181].mxu0  ;;  %6287 = vmatpush1.bf16.msra.mxu0 %v4945_v36  ;;  %7797 = vmatpush1.bf16.msra.mxu1 %v4945_v36  ;;  %v8799_v36 = vld [vmem:[%s12429_s7 + $0x2c0] ss:$16 sps:$4 sm:$0xff]   ;;  %v8800_v17 = vld [vmem:[%s12429_s7 + $0xc8] ss:$16 sps:$4 sm:$0xff]  }
 0x637   :  { %v4705_v45 = vpop.f32.mrb[182].mxu0  ;;  %6288 = vmatprep.subr.bf16.mxu0 %v12543_v20  ;;  %7782 = vmatprep.subr.bf16.mxu1 %v12543_v20  ;;  %v8803_v9 = vld [vmem:[%s12429_s7 + $0xec] ss:$16 sps:$4 sm:$0xff]   ;;  %v8806_v0 = vld [vmem:[%s12429_s7 + $0xe8] ss:$16 sps:$4 sm:$0xff]  }
 0x638   :  { %v7924_v31 = vadd.f32 %v4705_v45, %v12618_v54  ;;  %v4707_v57 = vpop.f32.mrb[183].mxu0  ;;  %v4783_v18 = vmax.f32 %v7923_v44, 0.0  ;;  %v8805_v44 = vld [vmem:[%s12429_s7 + $0x2e0] ss:$16 sps:$4 sm:$0xff]   ;;  %v8809_v45 = vld [vmem:[%s12429_s7 + $0x10c] ss:$16 sps:$4 sm:$0xff]  }
 0x639   :  { %6110 = vmatmul.mubr.bf16.gmra.mrb[180].mxu1 %v8752_v26  ;;  %v8801_v26 = vld [vmem:[%s12429_s7 + $0x2e4] ss:$16 sps:$4 sm:$0xff]   ;;  %v8811_v54 = vld [vmem:[%s12429_s7 + $0x300] ss:$16 sps:$4 sm:$0xff]  }
 0x63a   :  { %v4784_v27 = vmax.f32 %v7924_v31, 0.0  ;;  %6117 = vmatprep.mubr.bf16.mxu1 %v8753_v62  ;;  %v8807_v62 = vld [vmem:[%s12429_s7 + $0x304] ss:$16 sps:$4 sm:$0xff]   ;;  %v8812_v31 = vld [vmem:[%s12429_s7 + $0x108] ss:$16 sps:$4 sm:$0xff]  }
 0x63b   :  { %v8813_v57 = vld [vmem:[%s12429_s7 + $0x324] ss:$16 sps:$4 sm:$0xff]  }
 0x63c   :  { %v4946_v59 = vpack.c.bf16 %v4784_v27, %v4783_v18  ;;  %v8815_v18 = vld [vmem:[%s12429_s7 + $0x12c] ss:$16 sps:$4 sm:$0xff]   ;;  %v8817_v27 = vld [vmem:[%s12429_s7 + $0x320] ss:$16 sps:$4 sm:$0xff]  }
 0x63d   :  { %v4710_v34 = vpop.f32.mrb[184].mxu0 }
 0x63e   :  { %v7925_v56 = vadd.f32 %v4710_v34, %v12619_v46  ;;  %v4712_v39 = vpop.f32.mrb[185].mxu0  ;;  %6289 = vmatpush1.bf16.msra.mxu0 %v4946_v59  ;;  %7798 = vmatpush1.bf16.msra.mxu1 %v4946_v59  ;;  %v8818_v59 = vld [vmem:[%s12429_s7 + $0x128] ss:$16 sps:$4 sm:$0xff]   ;;  %v8819_v34 = vld [vmem:[%s12429_s7 + $0x344] ss:$16 sps:$4 sm:$0xff]  }
 0x63f   :  { %v4713_v21 = vpop.f32.mrb[186].mxu0  ;;  %6290 = vmatprep.subr.bf16.mxu0 %v12543_v20  ;;  %7783 = vmatprep.subr.bf16.mxu1 %v12543_v20  ;;  %v8823_v46 = vld [vmem:[%s12429_s7 + $0x340] ss:$16 sps:$4 sm:$0xff]   ;;  %v8825_v39 = vld [vmem:[%s12429_s7 + $0x364] ss:$16 sps:$4 sm:$0xff]  }
 0x640   :  { %v7926_v2 = vadd.f32 %v4713_v21, %v12620_v14  ;;  %v4715_v24 = vpop.f32.mrb[187].mxu0  ;;  %v4785_v12 = vmax.f32 %v7925_v56, 0.0  ;;  %v8824_v56 = vld [vmem:[%s12429_s7 + $0x148] ss:$16 sps:$4 sm:$0xff]  }
 0x641   :  { %6118 = vmatmul.mubr.bf16.gmra.mrb[184].mxu1 %v8755_v11  ;;  %v8821_v11 = vld [vmem:[%s12429_s7 + $0x14c] ss:$16 sps:$4 sm:$0xff]   ;;  %v8830_v24 = vld [vmem:[%s12429_s7 + $0x168] ss:$16 sps:$4 sm:$0xff]  }
 0x642   :  { %v4786_v48 = vmax.f32 %v7926_v2, 0.0  ;;  %6125 = vmatprep.mubr.bf16.mxu1 %v8756_v40  ;;  %v8827_v40 = vld [vmem:[%s12429_s7 + $0x16c] ss:$16 sps:$4 sm:$0xff]   ;;  %v8829_v2 = vld [vmem:[%s12429_s7 + $0x360] ss:$16 sps:$4 sm:$0xff]  }
 0x644   :  { %v4947_v6 = vpack.c.bf16 %v4786_v48, %v4785_v12  ;;  %v8831_v48 = vld [vmem:[%s12429_s7 + $0x384] ss:$16 sps:$4 sm:$0xff]  }
 0x645   :  { %v4718_v35 = vpop.f32.mrb[188].mxu0 }
 0x646   :  { %v7927_v58 = vadd.f32 %v4718_v35, %v12621_v32  ;;  %v4720_v60 = vpop.f32.mrb[189].mxu0  ;;  %6291 = vmatpush1.bf16.msra.mxu0 %v4947_v6  ;;  %7799 = vmatpush1.bf16.msra.mxu1 %v4947_v6  ;;  %v8833_v6 = vld [vmem:[%s12429_s7 + $0x18c] ss:$16 sps:$4 sm:$0xff]  }
 0x647   :  { %v4721_v49 = vpop.f32.mrb[190].mxu0  ;;  %6292 = vmatprep.subr.bf16.mxu0 %v12543_v20  ;;  %7784 = vmatprep.subr.bf16.mxu1 %v12543_v20  ;;  %v8765_v20 = vld [vmem:[%s12429_s7 + $0x224] ss:$16 sps:$4 sm:$0xff]   ;;  %v8836_v60 = vld [vmem:[%s12429_s7 + $0x188] ss:$16 sps:$4 sm:$0xff]  }
 0x648   :  { %v7928_v47 = vadd.f32 %v4721_v49, %v12622_v42  ;;  %v4723_v38 = vpop.f32.mrb[191].mxu0  ;;  %v4787_v41 = vmax.f32 %v7927_v58, 0.0  ;;  %v8835_v58 = vld [vmem:[%s12429_s7 + $0x380] ss:$16 sps:$4 sm:$0xff]   ;;  %v8837_v49 = vld [vmem:[%s12429_s7 + $0x3a4] ss:$16 sps:$4 sm:$0xff]  }
 0x649   :  { %6126 = vmatmul.mubr.bf16.gmra.mrb[188].mxu1 %v8758_v5  ;;  %v8839_v42 = vld [vmem:[%s12429_s7 + $0x1ac] ss:$16 sps:$4 sm:$0xff]  }
 0x64a   :  { %v4788_v61 = vmax.f32 %v7928_v47, 0.0  ;;  %6133 = vmatprep.mubr.bf16.mxu1 %v8759_v19 }
 0x64c   :  { %v4948_v8 = vpack.c.bf16 %v4788_v61, %v4787_v41  ;;  %v8841_v61 = vld [vmem:[%s12429_s7 + $0x3a0] ss:$16 sps:$4 sm:$0xff]  }
 0x64e   :  { %6293 = vmatpush1.bf16.msra.mxu0 %v4948_v8  ;;  %7800 = vmatpush1.bf16.msra.mxu1 %v4948_v8  ;;  %v8842_v8 = vld [vmem:[%s12429_s7 + $0x1a8] ss:$16 sps:$4 sm:$0xff]  }
 0x651   :  { %6134 = vmatmul.mubr.bf16.gmra.mrb[192].mxu1 %v8764_v3  ;;  %6295 = vmatmul.mubr.bf16.vlgmr.msra.gmra.mrb[192].mxu0 %v8761_v16  ;;  %v8843_v3 = vld [vmem:[%s12429_s7 + $0x3c4] ss:$16 sps:$4 sm:$0xff]  }
 0x652   :  { %6141 = vmatprep.mubr.bf16.mxu1 %v8765_v20  ;;  %6302 = vmatprep.mubr.bf16.mxu0 %v8767_v33  ;;  %v8845_v20 = vld [vmem:[%s12429_s7 + $0x1cc] ss:$16 sps:$4 sm:$0xff]  }
 0x659   :  { %6142 = vmatmul.mubr.bf16.gmra.mrb[196].mxu1 %v8769_v55  ;;  %6303 = vmatmul.mubr.bf16.gmra.mrb[196].mxu0 %v8770_v13 }
 0x65a   :  { %6149 = vmatprep.mubr.bf16.mxu1 %v8771_v22  ;;  %6310 = vmatprep.mubr.bf16.mxu0 %v8773_v30  ;;  %v8847_v22 = vld [vmem:[%s12429_s7 + $0x3c0] ss:$16 sps:$4 sm:$0xff]   ;;  %v8848_v30 = vld [vmem:[%s12429_s7 + $0x1c8] ss:$16 sps:$4 sm:$0xff]  }
 0x661   :  { %6150 = vmatmul.mubr.bf16.gmra.mrb[200].mxu1 %v8775_v25  ;;  %6311 = vmatmul.mubr.bf16.gmra.mrb[200].mxu0 %v8776_v7  ;;  %v8849_v7 = vld [vmem:[%s12429_s7 + $0x3e4] ss:$16 sps:$4 sm:$0xff]  }
 0x662   :  { %6157 = vmatprep.mubr.bf16.mxu1 %v8777_v1  ;;  %6318 = vmatprep.mubr.bf16.mxu0 %v8779_v10  ;;  %v8851_v1 = vld [vmem:[%s12429_s7 + $0x1ec] ss:$16 sps:$4 sm:$0xff]  }
 0x669   :  { %6158 = vmatmul.mubr.bf16.gmra.mrb[204].mxu1 %v8781_v37  ;;  %6319 = vmatmul.mubr.bf16.gmra.mrb[204].mxu0 %v8782_v53  ;;  %v12008_v37 = vpop.permute.xlu1 %5170 }
 0x66a   :  { %6165 = vmatprep.mubr.bf16.mxu1 %v8783_v15  ;;  %6326 = vmatprep.mubr.bf16.mxu0 %v8785_v51  ;;  %v8853_v51 = vld [vmem:[%s12429_s7 + $0x3e0] ss:$16 sps:$4 sm:$0xff]  }
 0x671   :  { %6166 = vmatmul.mubr.bf16.gmra.mrb[208].mxu1 %v8787_v52  ;;  %6327 = vmatmul.mubr.bf16.gmra.mrb[208].mxu0 %v8788_v29  ;;  %v8854_v52 = vld [vmem:[%s12429_s7 + $0x1e8] ss:$16 sps:$4 sm:$0xff]  }
 0x672   :  { %6173 = vmatprep.mubr.bf16.mxu1 %v8789_v23  ;;  %6334 = vmatprep.mubr.bf16.mxu0 %v8791_v63  ;;  %v8857_v23 = vld [vmem:[%s12429_s7 + $0x20c] ss:$16 sps:$4 sm:$0xff]  }
 0x673   :  { %v8860_v63 = vld [vmem:[%s12429_s7 + $0x36c] ss:$16 sps:$4 sm:$0xff]  }
 0x679   :  { %6174 = vmatmul.mubr.bf16.gmra.mrb[212].mxu1 %v8793_v43  ;;  %6335 = vmatmul.mubr.bf16.gmra.mrb[212].mxu0 %v8794_v50  ;;  %v12026_v50 = vpop.permute.xlu1 %5180 }
 0x67a   :  { %6181 = vmatprep.mubr.bf16.mxu1 %v8795_v4  ;;  %6342 = vmatprep.mubr.bf16.mxu0 %v8797_v28  ;;  %v12028_v4 = vpop.permute.xlu0 %5175 }
 0x681   :  { %6182 = vmatmul.mubr.bf16.gmra.mrb[216].mxu1 %v8799_v36  ;;  %6343 = vmatmul.mubr.bf16.gmra.mrb[216].mxu0 %v8800_v17  ;;  %v8855_v17 = vld [vmem:[%s12429_s7 + $0x208] ss:$16 sps:$4 sm:$0xff]  }
 0x682   :  { %6189 = vmatprep.mubr.bf16.mxu1 %v8801_v26  ;;  %6350 = vmatprep.mubr.bf16.mxu0 %v8803_v9  ;;  %v8858_v26 = vld [vmem:[%s12429_s7 + $0x368] ss:$16 sps:$4 sm:$0xff]   ;;  %v12038_v9 = vpop.permute.xlu1 %5190 }
 0x689   :  { %6190 = vmatmul.mubr.bf16.gmra.mrb[220].mxu1 %v8805_v44  ;;  %6351 = vmatmul.mubr.bf16.gmra.mrb[220].mxu0 %v8806_v0  ;;  %v8863_v0 = vld [vmem:[%s12429_s7 + $0x22c] ss:$16 sps:$4 sm:$0xff]  }
 0x68a   :  { %6197 = vmatprep.mubr.bf16.mxu1 %v8807_v62  ;;  %6358 = vmatprep.mubr.bf16.mxu0 %v8809_v45  ;;  %v8864_v62 = vld [vmem:[%s12429_s7 + $0x38c] ss:$16 sps:$4 sm:$0xff]   ;;  %v12048_v45 = vpop.permute.xlu0 %5185 }
 0x691   :  { %6198 = vmatmul.mubr.bf16.gmra.mrb[224].mxu1 %v8811_v54  ;;  %6359 = vmatmul.mubr.bf16.gmra.mrb[224].mxu0 %v8812_v31  ;;  %v12050_v31 = vpop.permute.xlu1 %5200 }
 0x692   :  { %6205 = vmatprep.mubr.bf16.mxu1 %v8813_v57  ;;  %6366 = vmatprep.mubr.bf16.mxu0 %v8815_v18  ;;  %v12054_v18 = vpop.permute.xlu0 %5195 }
 0x699   :  { %6206 = vmatmul.mubr.bf16.gmra.mrb[228].mxu1 %v8817_v27  ;;  %6367 = vmatmul.mubr.bf16.gmra.mrb[228].mxu0 %v8818_v59  ;;  %v8861_v59 = vld [vmem:[%s12429_s7 + $0x228] ss:$16 sps:$4 sm:$0xff]  }
 0x69a   :  { %6213 = vmatprep.mubr.bf16.mxu1 %v8819_v34  ;;  %6374 = vmatprep.mubr.bf16.mxu0 %v8821_v11  ;;  %v8866_v34 = vld [vmem:[%s12429_s7 + $0x388] ss:$16 sps:$4 sm:$0xff]  }
 0x6a1   :  { %6214 = vmatmul.mubr.bf16.gmra.mrb[232].mxu1 %v8823_v46  ;;  %6375 = vmatmul.mubr.bf16.gmra.mrb[232].mxu0 %v8824_v56  ;;  %v8869_v46 = vld [vmem:[%s12429_s7 + $0x24c] ss:$16 sps:$4 sm:$0xff]  }
 0x6a2   :  { %6221 = vmatprep.mubr.bf16.mxu1 %v8825_v39  ;;  %6382 = vmatprep.mubr.bf16.mxu0 %v8827_v40  ;;  %v8870_v56 = vld [vmem:[%s12429_s7 + $0x3ac] ss:$16 sps:$4 sm:$0xff]   ;;  %v12070_v40 = vpop.permute.xlu1 %5210 }
 0x6a4   :  { %v11944_v21 = vpop.f32.mrb[128].mxu1 }
 0x6a5   :  { %v6009_v14 = vpop.f32.mrb[129].mxu1 }
 0x6a6   :  { %v11952_v12 = vpop.f32.mrb[130].mxu1  ;;  %v12072_v14 = vpop.permute.xlu0 %5205 }
 0x6a7   :  { %v6012_v35 = vpop.f32.mrb[131].mxu1 }
 0x6a9   :  { %6222 = vmatmul.mubr.bf16.gmra.mrb[236].mxu1 %v8829_v2  ;;  %6383 = vmatmul.mubr.bf16.gmra.mrb[236].mxu0 %v8830_v24 }
 0x6aa   :  { %6229 = vmatprep.mubr.bf16.mxu1 %v8831_v48  ;;  %6390 = vmatprep.mubr.bf16.mxu0 %v8833_v6  ;;  %v8867_v48 = vld [vmem:[%s12429_s7 + $0x248] ss:$16 sps:$4 sm:$0xff]  }
 0x6ab   :  { %v8872_v6 = vld [vmem:[%s12429_s7 + $0x3a8] ss:$16 sps:$4 sm:$0xff]  }
 0x6ac   :  { %v11960_v5 = vpop.f32.mrb[132].mxu1 }
 0x6ad   :  { %v6017_v32 = vpop.f32.mrb[133].mxu1 }
 0x6ae   :  { %v11968_v19 = vpop.f32.mrb[134].mxu1  ;;  %v8875_v32 = vld [vmem:[%s12429_s7 + $0x26c] ss:$16 sps:$4 sm:$0xff]  }
 0x6af   :  { %v6020_v47 = vpop.f32.mrb[135].mxu1 }
 0x6b1   :  { %6230 = vmatmul.mubr.bf16.gmra.mrb[240].mxu1 %v8835_v58  ;;  %6391 = vmatmul.mubr.bf16.gmra.mrb[240].mxu0 %v8836_v60  ;;  %v8876_v58 = vld [vmem:[%s12429_s7 + $0x3cc] ss:$16 sps:$4 sm:$0xff]  }
 0x6b2   :  { %6237 = vmatprep.mubr.bf16.mxu1 %v8837_v49  ;;  %6398 = vmatprep.mubr.bf16.mxu0 %v8839_v42  ;;  %v12090_v49 = vpop.permute.xlu1 %5220  ;;  %v12092_v42 = vpop.permute.xlu0 %5215 }
 0x6b3   :  { %12623 = vst [vmem:[#allocation3_spill] sm:$0xff] %v12090_v49  ;;  %12624 = vst [vmem:[#allocation5_spill] sm:$0xff] %v12092_v42 }
 0x6b4   :  { %v11976_v38 = vpop.f32.mrb[136].mxu1 }
 0x6b5   :  { %v6025_v41 = vpop.f32.mrb[137].mxu1 }
 0x6b6   :  { %v11984_v16 = vpop.f32.mrb[138].mxu1 }
 0x6b7   :  { %v6028_v33 = vpop.f32.mrb[139].mxu1 }
 0x6b8   :  { %v8881_v33 = vld [vmem:[%s12429_s7 + $0x28c] ss:$16 sps:$4 sm:$0xff]  }
 0x6b9   :  { %6238 = vmatmul.mubr.bf16.gmra.mrb[244].mxu1 %v8841_v61  ;;  %6399 = vmatmul.mubr.bf16.gmra.mrb[244].mxu0 %v8842_v8  ;;  %v8873_v61 = vld [vmem:[%s12429_s7 + $0x268] ss:$16 sps:$4 sm:$0xff]  }
 0x6ba   :  { %6245 = vmatprep.mubr.bf16.mxu1 %v8843_v3  ;;  %6406 = vmatprep.mubr.bf16.mxu0 %v8845_v20  ;;  %v8878_v8 = vld [vmem:[%s12429_s7 + $0x3c8] ss:$16 sps:$4 sm:$0xff]   ;;  %v12102_v3 = vpop.permute.xlu1 %5230 }
 0x6bb   :  { %12625 = vst [vmem:[#allocation4_spill] sm:$0xff] %v12102_v3 }
 0x6bc   :  { %v11992_v55 = vpop.f32.mrb[140].mxu1 }
 0x6bd   :  { %v6033_v13 = vpop.f32.mrb[141].mxu1 }
 0x6be   :  { %v12000_v25 = vpop.f32.mrb[142].mxu1  ;;  %v8882_v13 = vld [vmem:[%s12429_s7 + $0x3ec] ss:$16 sps:$4 sm:$0xff]  }
 0x6bf   :  { %v6036_v10 = vpop.f32.mrb[143].mxu1 }
 0x6c1   :  { %6246 = vmatmul.mubr.bf16.gmra.mrb[248].mxu1 %v8847_v22  ;;  %6407 = vmatmul.mubr.bf16.gmra.mrb[248].mxu0 %v8848_v30  ;;  %v12112_v22 = vpop.permute.xlu0 %5225 }
 0x6c2   :  { %6253 = vmatprep.mubr.bf16.mxu1 %v8849_v7  ;;  %6414 = vmatprep.mubr.bf16.mxu0 %v8851_v1  ;;  %12626 = vst [vmem:[#allocation7_spill] sm:$0xff] %v12112_v22  ;;  %v12114_v7 = vpop.permute.xlu1 %5240 }
 0x6c3   :  { %12627 = vst [vmem:[#allocation6_spill] sm:$0xff] %v12114_v7 }
 0x6c4   :  { %v12010_v53 = vpop.f32.mrb[144].mxu1 }
 0x6c5   :  { %v6041_v15 = vpop.f32.mrb[145].mxu1  ;;  %v12118_v10 = vpop.permute.xlu0 %5235 }
 0x6c6   :  { %v12018_v29 = vpop.f32.mrb[146].mxu1  ;;  %12628 = vst [vmem:[#allocation9_spill] sm:$0xff] %v12118_v10 }
 0x6c7   :  { %v6044_v43 = vpop.f32.mrb[147].mxu1 }
 0x6c9   :  { %6254 = vmatmul.mubr.bf16.gmra.mrb[252].mxu1 %v8853_v51  ;;  %6415 = vmatmul.mubr.bf16.gmra.mrb[252].mxu0 %v8854_v52  ;;  %v8879_v51 = vld [vmem:[%s12429_s7 + $0x288] ss:$16 sps:$4 sm:$0xff]  }
 0x6ca   :  { %6422 = vmatprep.mubr.bf16.mxu0 %v8857_v23  ;;  %6510 = vmatprep.mubr.bf16.mxu1 %v8860_v63  ;;  %v8884_v52 = vld [vmem:[%s12429_s7 + $0x3e8] ss:$16 sps:$4 sm:$0xff]   ;;  %v8887_v63 = vld [vmem:[%s12429_s7 + $0x2ac] ss:$16 sps:$4 sm:$0xff]  }
 0x6cc   :  { %v12030_v28 = vpop.f32.mrb[148].mxu1 }
 0x6cd   :  { %v6049_v36 = vpop.f32.mrb[149].mxu1 }
 0x6ce   :  { %v12040_v44 = vpop.f32.mrb[150].mxu1  ;;  %v12131_v36 = vpop.permute.xlu1 %5250 }
 0x6cf   :  { %v6052_v54 = vpop.f32.mrb[151].mxu1  ;;  %12629 = vst [vmem:[#allocation8_spill] sm:$0xff] %v12131_v36 }
 0x6d1   :  { %6423 = vmatmul.mubr.bf16.gmra.mrb[0].mxu0 %v8855_v17  ;;  %6511 = vmatmul.mubr.bf16.vlgmr.msra.gmra.mrb[236].mxu1 %v8858_v26  ;;  %v12133_v17 = vpop.permute.xlu0 %5245 }
 0x6d2   :  { %6430 = vmatprep.mubr.bf16.mxu0 %v8863_v0  ;;  %6518 = vmatprep.mubr.bf16.mxu1 %v8864_v62  ;;  %12630 = vst [vmem:[#allocation11_spill] sm:$0xff] %v12133_v17  ;;  %v8885_v62 = vld [vmem:[%s12429_s7 + $0x2a8] ss:$16 sps:$4 sm:$0xff]  }
 0x6d4   :  { %v12052_v57 = vpop.f32.mrb[152].mxu1 }
 0x6d5   :  { %v6057_v27 = vpop.f32.mrb[153].mxu1 }
 0x6d6   :  { %v12062_v11 = vpop.f32.mrb[154].mxu1  ;;  %v8890_v27 = vld [vmem:[%s12429_s7 + $0x2cc] ss:$16 sps:$4 sm:$0xff]  }
 0x6d7   :  { %v6060_v39 = vpop.f32.mrb[155].mxu1 }
 0x6d9   :  { %6431 = vmatmul.mubr.bf16.gmra.mrb[4].mxu0 %v8861_v59  ;;  %6519 = vmatmul.mubr.bf16.gmra.mrb[240].mxu1 %v8866_v34  ;;  %v12145_v34 = vpop.permute.xlu1 %5260 }
 0x6da   :  { %6438 = vmatprep.mubr.bf16.mxu0 %v8869_v46  ;;  %6526 = vmatprep.mubr.bf16.mxu1 %v8870_v56  ;;  %12631 = vst [vmem:[#allocation10_spill] sm:$0xff] %v12145_v34  ;;  %v12147_v46 = vpop.permute.xlu0 %5255 }
 0x6db   :  { %12632 = vst [vmem:[#allocation13_spill] sm:$0xff] %v12147_v46 }
 0x6dc   :  { %v12074_v2 = vpop.f32.mrb[156].mxu1 }
 0x6dd   :  { %v6065_v24 = vpop.f32.mrb[157].mxu1 }
 0x6de   :  { %v12082_v35 = vpop.f32.mrb[158].mxu1  ;;  %v8888_v24 = vld [vmem:[%s12429_s7 + $0x2c8] ss:$16 sps:$4 sm:$0xff]  }
 0x6df   :  { %v6068_v60 = vpop.f32.mrb[159].mxu1 }
 0x6e1   :  { %6439 = vmatmul.mubr.bf16.gmra.mrb[8].mxu0 %v8867_v48  ;;  %6527 = vmatmul.mubr.bf16.gmra.mrb[244].mxu1 %v8872_v6  ;;  %v12154_v48 = vpop.permute.xlu1 %5270 }
 0x6e2   :  { %6446 = vmatprep.mubr.bf16.mxu0 %v8875_v32  ;;  %6534 = vmatprep.mubr.bf16.mxu1 %v8876_v58  ;;  %12633 = vst [vmem:[#allocation12_spill] sm:$0xff] %v12154_v48  ;;  %v8893_v32 = vld [vmem:[%s12429_s7 + $0x2ec] ss:$16 sps:$4 sm:$0xff]   ;;  %v12161_v58 = vpop.permute.xlu0 %5265 }
 0x6e3   :  { %12634 = vst [vmem:[#allocation15_spill] sm:$0xff] %v12161_v58 }
 0x6e4   :  { %v12094_v47 = vpop.f32.mrb[160].mxu1 }
 0x6e5   :  { %v6073_v41 = vpop.f32.mrb[161].mxu1 }
 0x6e6   :  { %v12104_v20 = vpop.f32.mrb[162].mxu1  ;;  %v12163_v41 = vpop.permute.xlu1 %5280 }
 0x6e7   :  { %v6076_v30 = vpop.f32.mrb[163].mxu1  ;;  %12635 = vst [vmem:[#allocation14_spill] sm:$0xff] %v12163_v41 }
 0x6e9   :  { %6447 = vmatmul.mubr.bf16.gmra.mrb[12].mxu0 %v8873_v61  ;;  %6535 = vmatmul.mubr.bf16.gmra.mrb[248].mxu1 %v8878_v8  ;;  %v12167_v8 = vpop.permute.xlu0 %5275 }
 0x6ea   :  { %6454 = vmatprep.mubr.bf16.mxu0 %v8881_v33  ;;  %6542 = vmatprep.mubr.bf16.mxu1 %v8882_v13  ;;  %12636 = vst [vmem:[#allocation17_spill] sm:$0xff] %v12167_v8  ;;  %v8891_v13 = vld [vmem:[%s12429_s7 + $0x2e8] ss:$16 sps:$4 sm:$0xff]  }
 0x6ec   :  { %v12116_v1 = vpop.f32.mrb[164].mxu1 }
 0x6ed   :  { %v6081_v15 = vpop.f32.mrb[165].mxu1 }
 0x6ee   :  { %v12126_v23 = vpop.f32.mrb[166].mxu1  ;;  %v8896_v15 = vld [vmem:[%s12429_s7 + $0x30c] ss:$16 sps:$4 sm:$0xff]  }
 0x6ef   :  { %v6084_v43 = vpop.f32.mrb[167].mxu1 }
 0x6f1   :  { %6455 = vmatmul.mubr.bf16.gmra.mrb[16].mxu0 %v8879_v51  ;;  %6543 = vmatmul.mubr.bf16.gmra.mrb[252].mxu1 %v8884_v52  ;;  %v12177_v52 = vpop.permute.xlu1 %5290 }
 0x6f2   :  { %6462 = vmatprep.mubr.bf16.mxu0 %v8887_v63  ;;  %12637 = vst [vmem:[#allocation16_spill] sm:$0xff] %v12177_v52  ;;  %v12179_v63 = vpop.permute.xlu0 %5285 }
 0x6f3   :  { %12638 = vst [vmem:[#allocation19_spill] sm:$0xff] %v12179_v63 }
 0x6f4   :  { %v12135_v26 = vpop.f32.mrb[168].mxu1 }
 0x6f5   :  { %v6089_v0 = vpop.f32.mrb[169].mxu1 }
 0x6f6   :  { %v12140_v54 = vpop.f32.mrb[170].mxu1 }
 0x6f7   :  { %v6092_v59 = vpop.f32.mrb[171].mxu1 }
 0x6f8   :  { %v8899_v59 = vld [vmem:[%s12429_s7 + $0x32c] ss:$16 sps:$4 sm:$0xff]  }
 0x6f9   :  { %6463 = vmatmul.mubr.bf16.gmra.mrb[20].mxu0 %v8885_v62  ;;  %v8894_v62 = vld [vmem:[%s12429_s7 + $0x308] ss:$16 sps:$4 sm:$0xff]  }
 0x6fa   :  { %6470 = vmatprep.mubr.bf16.mxu0 %v8890_v27 }
 0x6fc   :  { %v12149_v56 = vpop.f32.mrb[172].mxu1 }
 0x6fd   :  { %v6097_v39 = vpop.f32.mrb[173].mxu1 }
 0x6fe   :  { %v12156_v6 = vpop.f32.mrb[174].mxu1 }
 0x6ff   :  { %v6100_v60 = vpop.f32.mrb[175].mxu1 }
 0x701   :  { %6471 = vmatmul.mubr.bf16.gmra.mrb[24].mxu0 %v8888_v24  ;;  %v12191_v24 = vpop.permute.xlu1 %5300 }
 0x702   :  { %6478 = vmatprep.mubr.bf16.mxu0 %v8893_v32  ;;  %12639 = vst [vmem:[#allocation18_spill] sm:$0xff] %v12191_v24  ;;  %v12193_v32 = vpop.permute.xlu0 %5295 }
 0x703   :  { %12640 = vst [vmem:[#allocation21_spill] sm:$0xff] %v12193_v32 }
 0x704   :  { %v12165_v61 = vpop.f32.mrb[176].mxu1 }
 0x705   :  { %v6105_v33 = vpop.f32.mrb[177].mxu1 }
 0x706   :  { %v12172_v30 = vpop.f32.mrb[178].mxu1 }
 0x707   :  { %v6108_v51 = vpop.f32.mrb[179].mxu1 }
 0x709   :  { %6479 = vmatmul.mubr.bf16.gmra.mrb[28].mxu0 %v8891_v13  ;;  %v8897_v13 = vld [vmem:[%s12429_s7 + $0x328] ss:$16 sps:$4 sm:$0xff]  }
 0x70a   :  { %6486 = vmatprep.mubr.bf16.mxu0 %v8896_v15  ;;  %v12200_v15 = vpop.permute.xlu1 %5310 }
 0x70b   :  { %12641 = vst [vmem:[#allocation20_spill] sm:$0xff] %v12200_v15  ;;  %v8900_v15 = vld [vmem:[%s12429_s7 + $0x348] ss:$16 sps:$4 sm:$0xff]  }
 0x70c   :  { %v12181_v43 = vpop.f32.mrb[180].mxu1 }
 0x70d   :  { %v6113_v0 = vpop.f32.mrb[181].mxu1 }
 0x70e   :  { %v12186_v27 = vpop.f32.mrb[182].mxu1  ;;  %v8902_v0 = vld [vmem:[%s12429_s7 + $0x34c] ss:$16 sps:$4 sm:$0xff]  }
 0x70f   :  { %v6116_v39 = vpop.f32.mrb[183].mxu1 }
 0x710   :  { %v12207_v39 = vpop.permute.xlu0 %5305 }
 0x711   :  { %6487 = vmatmul.mubr.bf16.gmra.mrb[32].mxu0 %v8894_v62  ;;  %12642 = vst [vmem:[#allocation23_spill] sm:$0xff] %v12207_v39  ;;  %v12209_v62 = vpop.permute.xlu1 %5320 }
 0x712   :  { %6494 = vmatprep.mubr.bf16.mxu0 %v8899_v59  ;;  %12643 = vst [vmem:[#allocation22_spill] sm:$0xff] %v12209_v62 }
 0x714   :  { %v12195_v60 = vpop.f32.mrb[184].mxu1 }
 0x715   :  { %v6121_v33 = vpop.f32.mrb[185].mxu1  ;;  %v12220_v41 = vpop.permute.xlu1 %5330 }
 0x716   :  { %v12202_v51 = vpop.f32.mrb[186].mxu1  ;;  %v12213_v33 = vpop.permute.xlu0 %5315  ;;  %12645 = vst [vmem:[#allocation24_spill] sm:$0xff] %v12220_v41 }
 0x717   :  { %v6124_v24 = vpop.f32.mrb[187].mxu1  ;;  %12644 = vst [vmem:[#allocation25_spill] sm:$0xff] %v12213_v33  ;;  %v12648_v33 = vld [vmem:[#allocation83_spill] sm:$0xff] }
 0x719   :  { %6495 = vmatmul.mubr.bf16.gmra.mrb[36].mxu0 %v8897_v13  ;;  %v12647_v13 = vld [vmem:[#allocation82_spill] sm:$0xff]  ;;  %v6687_v17 = vpop.permute.xlu1 %6686 }
 0x71a   :  { %6502 = vmatprep.mubr.bf16.mxu0 %v8902_v0  ;;  %v12222_v24 = vpop.permute.xlu0 %5325  ;;  %v6008_v0 = vadd.f32 %v11944_v21, %v12647_v13  ;;  %v12649_v21 = vld [vmem:[#allocation84_spill] sm:$0xff] }
 0x71b   :  { %12646 = vst [vmem:[#allocation27_spill] sm:$0xff] %v12222_v24  ;;  %v6016_v13 = vadd.f32 %v11960_v5, %v12649_v21 }
 0x71c   :  { %v12211_v59 = vpop.f32.mrb[188].mxu1 }
 0x71d   :  { %v6129_v32 = vpop.f32.mrb[189].mxu1 }
 0x71e   :  { %v12218_v52 = vpop.f32.mrb[190].mxu1  ;;  %v6011_v32 = vadd.f32 %v11952_v12, %v12648_v33  ;;  %v6682_v7 = vpop.permute.xlu0 %6681 }
 0x71f   :  { %v6132_v63 = vpop.f32.mrb[191].mxu1 }
 0x721   :  { %6503 = vmatmul.mubr.bf16.gmra.mrb[40].mxu0 %v8900_v15 }
 0x722   :  { %v6692_v5 = vpop.permute.xlu0 %6691 }
 0x724   :  { %v12226_v62 = vpop.f32.mrb[192].mxu1  ;;  %v6296_v39 = vpop.f32.mrb[192].mxu0 }
 0x725   :  { %v6297_v8 = vadd.f32 %v6296_v39, %v6008_v0  ;;  %v6137_v48 = vpop.f32.mrb[193].mxu1  ;;  %v6298_v58 = vpop.f32.mrb[193].mxu0 }
 0x726   :  { %v12230_v34 = vpop.f32.mrb[194].mxu1  ;;  %v6299_v63 = vpop.f32.mrb[194].mxu0  ;;  %v12650_v48 = vld [vmem:[#allocation85_spill] sm:$0xff] }
 0x727   :  { %v6551_v15 = vmax.f32 %v6297_v8, 0.0  ;;  %v6300_v46 = vadd.f32 %v6299_v63, %v6011_v32  ;;  %v6140_v41 = vpop.f32.mrb[195].mxu1  ;;  %v6301_v36 = vpop.f32.mrb[195].mxu0  ;;  %v6019_v58 = vadd.f32 %v11968_v19, %v12650_v48 }
 0x729   :  { %v6552_v24 = vmax.f32 %v6300_v46, 0.0  ;;  %v6999_v10 = vmul.f32 %v6682_v7, %v6551_v15  ;;  %v12651_v15 = vld [vmem:[#allocation86_spill] sm:$0xff] }
 0x72a   :  { %v6024_v21 = vadd.f32 %v11976_v38, %v12651_v15  ;;  %v6702_v38 = vpop.permute.xlu0 %6701 }
 0x72b   :  { %v7000_v3 = vmul.f32 %v6687_v17, %v6552_v24  ;;  %v6697_v24 = vpop.permute.xlu1 %6696 }
 0x72c   :  { %v12234_v22 = vpop.f32.mrb[196].mxu1  ;;  %v6304_v12 = vpop.f32.mrb[196].mxu0 }
 0x72d   :  { %v7063_v39 = vadd.f32 %v7000_v3, %v6999_v10  ;;  %v6305_v33 = vadd.f32 %v6304_v12, %v6016_v13  ;;  %v6145_v8 = vpop.f32.mrb[197].mxu1  ;;  %v6306_v0 = vpop.f32.mrb[197].mxu0  ;;  %v12652_v13 = vld [vmem:[#allocation87_spill] sm:$0xff] }
 0x72e   :  { %v12238_v41 = vpop.f32.mrb[198].mxu1  ;;  %v6307_v36 = vpop.f32.mrb[198].mxu0  ;;  %v6027_v12 = vadd.f32 %v11984_v16, %v12652_v13 }
 0x72f   :  { %v6553_v46 = vmax.f32 %v6305_v33, 0.0  ;;  %v6308_v32 = vadd.f32 %v6307_v36, %v6019_v58  ;;  %v6148_v63 = vpop.f32.mrb[199].mxu1  ;;  %v6309_v49 = vpop.f32.mrb[199].mxu0 }
 0x731   :  { %v7001_v7 = vmul.f32 %v6692_v5, %v6553_v46  ;;  %v6554_v17 = vmax.f32 %v6308_v32, 0.0 }
 0x733   :  { %v7064_v42 = vadd.f32 %v7063_v39, %v7001_v7  ;;  %v7002_v19 = vmul.f32 %v6697_v24, %v6554_v17  ;;  %v6707_v7 = vpop.permute.xlu1 %6706  ;;  %v12653_v17 = vld [vmem:[#allocation88_spill] sm:$0xff] }
 0x734   :  { %v12242_v3 = vpop.f32.mrb[200].mxu1  ;;  %v6312_v10 = vpop.f32.mrb[200].mxu0  ;;  %v6032_v24 = vadd.f32 %v11992_v55, %v12653_v17 }
 0x735   :  { %v7065_v48 = vadd.f32 %v7064_v42, %v7002_v19  ;;  %v6313_v33 = vadd.f32 %v6312_v10, %v6024_v21  ;;  %v6153_v58 = vpop.f32.mrb[201].mxu1  ;;  %v6314_v8 = vpop.f32.mrb[201].mxu0  ;;  %v12654_v19 = vld [vmem:[#allocation89_spill] sm:$0xff] }
 0x736   :  { %v12246_v49 = vpop.f32.mrb[202].mxu1  ;;  %v6315_v0 = vpop.f32.mrb[202].mxu0  ;;  %v6035_v10 = vadd.f32 %v12000_v25, %v12654_v19 }
 0x737   :  { %v6555_v36 = vmax.f32 %v6313_v33, 0.0  ;;  %v6316_v46 = vadd.f32 %v6315_v0, %v6027_v12  ;;  %v6156_v32 = vpop.f32.mrb[203].mxu1  ;;  %v6317_v63 = vpop.f32.mrb[203].mxu0 }
 0x738   :  { %v6712_v55 = vpop.permute.xlu0 %6711 }
 0x739   :  { %v7003_v39 = vmul.f32 %v6702_v38, %v6555_v36  ;;  %v6556_v5 = vmax.f32 %v6316_v46, 0.0 }
 0x73b   :  { %v7066_v15 = vadd.f32 %v7065_v48, %v7003_v39  ;;  %v7004_v16 = vmul.f32 %v6707_v7, %v6556_v5  ;;  %v6717_v39 = vpop.permute.xlu1 %6716  ;;  %v12655_v5 = vld [vmem:[#allocation90_spill] sm:$0xff] }
 0x73c   :  { %v12250_v42 = vpop.f32.mrb[204].mxu1  ;;  %v6320_v21 = vpop.f32.mrb[204].mxu0  ;;  %v6040_v7 = vadd.f32 %v12010_v53, %v12655_v5 }
 0x73d   :  { %v7067_v13 = vadd.f32 %v7066_v15, %v7004_v16  ;;  %v6321_v33 = vadd.f32 %v6320_v21, %v6032_v24  ;;  %v6161_v12 = vpop.f32.mrb[205].mxu1  ;;  %v6322_v58 = vpop.f32.mrb[205].mxu0  ;;  %v12656_v16 = vld [vmem:[#allocation91_spill] sm:$0xff] }
 0x73e   :  { %v12254_v8 = vpop.f32.mrb[206].mxu1  ;;  %v6323_v0 = vpop.f32.mrb[206].mxu0  ;;  %v6043_v21 = vadd.f32 %v12018_v29, %v12656_v16 }
 0x73f   :  { %v6557_v36 = vmax.f32 %v6321_v33, 0.0  ;;  %v6324_v46 = vadd.f32 %v6323_v0, %v6035_v10  ;;  %v6164_v32 = vpop.f32.mrb[207].mxu1  ;;  %v6325_v63 = vpop.f32.mrb[207].mxu0 }
 0x740   :  { %v6722_v53 = vpop.permute.xlu0 %6721 }
 0x741   :  { %v7005_v48 = vmul.f32 %v6712_v55, %v6557_v36  ;;  %v6558_v38 = vmax.f32 %v6324_v46, 0.0 }
 0x743   :  { %v7068_v17 = vadd.f32 %v7067_v13, %v7005_v48  ;;  %v7006_v25 = vmul.f32 %v6717_v39, %v6558_v38  ;;  %v6727_v48 = vpop.permute.xlu1 %6726  ;;  %v12657_v38 = vld [vmem:[#allocation92_spill] sm:$0xff] }
 0x744   :  { %v12258_v15 = vpop.f32.mrb[208].mxu1  ;;  %v6328_v24 = vpop.f32.mrb[208].mxu0  ;;  %v6048_v39 = vadd.f32 %v12030_v28, %v12657_v38 }
 0x745   :  { %v7069_v19 = vadd.f32 %v7068_v17, %v7006_v25  ;;  %v6329_v33 = vadd.f32 %v6328_v24, %v6040_v7  ;;  %v6169_v10 = vpop.f32.mrb[209].mxu1  ;;  %v6330_v12 = vpop.f32.mrb[209].mxu0  ;;  %v12658_v25 = vld [vmem:[#allocation93_spill] sm:$0xff] }
 0x746   :  { %v12262_v58 = vpop.f32.mrb[210].mxu1  ;;  %v6331_v0 = vpop.f32.mrb[210].mxu0  ;;  %v6051_v24 = vadd.f32 %v12040_v44, %v12658_v25 }
 0x747   :  { %v6559_v36 = vmax.f32 %v6329_v33, 0.0  ;;  %v6332_v46 = vadd.f32 %v6331_v0, %v6043_v21  ;;  %v6172_v32 = vpop.f32.mrb[211].mxu1  ;;  %v6333_v63 = vpop.f32.mrb[211].mxu0 }
 0x748   :  { %v6732_v28 = vpop.permute.xlu0 %6731 }
 0x749   :  { %v7007_v13 = vmul.f32 %v6722_v53, %v6559_v36  ;;  %v6560_v55 = vmax.f32 %v6332_v46, 0.0 }
 0x74b   :  { %v7070_v5 = vadd.f32 %v7069_v19, %v7007_v13  ;;  %v7008_v29 = vmul.f32 %v6727_v48, %v6560_v55  ;;  %v6737_v13 = vpop.permute.xlu1 %6736  ;;  %v12659_v55 = vld [vmem:[#allocation94_spill] sm:$0xff] }
 0x74c   :  { %v12266_v17 = vpop.f32.mrb[212].mxu1  ;;  %v6336_v7 = vpop.f32.mrb[212].mxu0  ;;  %v6056_v48 = vadd.f32 %v12052_v57, %v12659_v55 }
 0x74d   :  { %v7071_v16 = vadd.f32 %v7070_v5, %v7008_v29  ;;  %v6337_v33 = vadd.f32 %v6336_v7, %v6048_v39  ;;  %v6177_v21 = vpop.f32.mrb[213].mxu1  ;;  %v6338_v10 = vpop.f32.mrb[213].mxu0  ;;  %v12660_v29 = vld [vmem:[#allocation95_spill] sm:$0xff] }
 0x74e   :  { %v12270_v12 = vpop.f32.mrb[214].mxu1  ;;  %v6339_v0 = vpop.f32.mrb[214].mxu0  ;;  %v6059_v7 = vadd.f32 %v12062_v11, %v12660_v29 }
 0x74f   :  { %v6561_v36 = vmax.f32 %v6337_v33, 0.0  ;;  %v6340_v46 = vadd.f32 %v6339_v0, %v6051_v24  ;;  %v6180_v32 = vpop.f32.mrb[215].mxu1  ;;  %v6341_v63 = vpop.f32.mrb[215].mxu0 }
 0x750   :  { %v6742_v57 = vpop.permute.xlu0 %6741 }
 0x751   :  { %v7009_v19 = vmul.f32 %v6732_v28, %v6561_v36  ;;  %v6562_v53 = vmax.f32 %v6340_v46, 0.0 }
 0x753   :  { %v7072_v38 = vadd.f32 %v7071_v16, %v7009_v19  ;;  %v7010_v44 = vmul.f32 %v6737_v13, %v6562_v53  ;;  %v6747_v19 = vpop.permute.xlu1 %6746  ;;  %v12661_v53 = vld [vmem:[#allocation96_spill] sm:$0xff] }
 0x754   :  { %v12274_v5 = vpop.f32.mrb[216].mxu1  ;;  %v6344_v39 = vpop.f32.mrb[216].mxu0  ;;  %v6064_v13 = vadd.f32 %v12074_v2, %v12661_v53 }
 0x755   :  { %v7073_v25 = vadd.f32 %v7072_v38, %v7010_v44  ;;  %v6345_v33 = vadd.f32 %v6344_v39, %v6056_v48  ;;  %v6185_v24 = vpop.f32.mrb[217].mxu1  ;;  %v6346_v21 = vpop.f32.mrb[217].mxu0  ;;  %v12662_v44 = vld [vmem:[#allocation97_spill] sm:$0xff] }
 0x756   :  { %v12278_v10 = vpop.f32.mrb[218].mxu1  ;;  %v6347_v0 = vpop.f32.mrb[218].mxu0  ;;  %v6067_v39 = vadd.f32 %v12082_v35, %v12662_v44 }
 0x757   :  { %v6563_v36 = vmax.f32 %v6345_v33, 0.0  ;;  %v6348_v46 = vadd.f32 %v6347_v0, %v6059_v7  ;;  %v6188_v32 = vpop.f32.mrb[219].mxu1  ;;  %v6349_v63 = vpop.f32.mrb[219].mxu0 }
 0x758   :  { %v6752_v2 = vpop.permute.xlu0 %6751 }
 0x759   :  { %v7011_v16 = vmul.f32 %v6742_v57, %v6563_v36  ;;  %v6564_v28 = vmax.f32 %v6348_v46, 0.0 }
 0x75b   :  { %v7074_v55 = vadd.f32 %v7073_v25, %v7011_v16  ;;  %v7012_v11 = vmul.f32 %v6747_v19, %v6564_v28  ;;  %v6757_v16 = vpop.permute.xlu1 %6756  ;;  %v12663_v28 = vld [vmem:[#allocation98_spill] sm:$0xff] }
 0x75c   :  { %v12282_v38 = vpop.f32.mrb[220].mxu1  ;;  %v6352_v48 = vpop.f32.mrb[220].mxu0  ;;  %v6072_v19 = vadd.f32 %v12094_v47, %v12663_v28 }
 0x75d   :  { %v7075_v29 = vadd.f32 %v7074_v55, %v7012_v11  ;;  %v6353_v33 = vadd.f32 %v6352_v48, %v6064_v13  ;;  %v6193_v7 = vpop.f32.mrb[221].mxu1  ;;  %v6354_v24 = vpop.f32.mrb[221].mxu0  ;;  %v12664_v11 = vld [vmem:[#allocation99_spill] sm:$0xff] }
 0x75e   :  { %v12286_v21 = vpop.f32.mrb[222].mxu1  ;;  %v6355_v0 = vpop.f32.mrb[222].mxu0  ;;  %v6075_v48 = vadd.f32 %v12104_v20, %v12664_v11 }
 0x75f   :  { %v6565_v36 = vmax.f32 %v6353_v33, 0.0  ;;  %v6356_v46 = vadd.f32 %v6355_v0, %v6067_v39  ;;  %v6196_v32 = vpop.f32.mrb[223].mxu1  ;;  %v6357_v63 = vpop.f32.mrb[223].mxu0 }
 0x760   :  { %v6762_v47 = vpop.permute.xlu0 %6761 }
 0x761   :  { %v7013_v25 = vmul.f32 %v6752_v2, %v6565_v36  ;;  %v6566_v57 = vmax.f32 %v6356_v46, 0.0 }
 0x763   :  { %v7076_v53 = vadd.f32 %v7075_v29, %v7013_v25  ;;  %v7014_v35 = vmul.f32 %v6757_v16, %v6566_v57  ;;  %v6767_v25 = vpop.permute.xlu1 %6766  ;;  %v12665_v57 = vld [vmem:[#allocation100_spill] sm:$0xff] }
 0x764   :  { %v12290_v55 = vpop.f32.mrb[224].mxu1  ;;  %v6360_v13 = vpop.f32.mrb[224].mxu0  ;;  %v6080_v16 = vadd.f32 %v12116_v1, %v12665_v57 }
 0x765   :  { %v7077_v44 = vadd.f32 %v7076_v53, %v7014_v35  ;;  %v6361_v33 = vadd.f32 %v6360_v13, %v6072_v19  ;;  %v6201_v39 = vpop.f32.mrb[225].mxu1  ;;  %v6362_v7 = vpop.f32.mrb[225].mxu0  ;;  %v12666_v35 = vld [vmem:[#allocation101_spill] sm:$0xff] }
 0x766   :  { %v12294_v24 = vpop.f32.mrb[226].mxu1  ;;  %v6363_v0 = vpop.f32.mrb[226].mxu0  ;;  %v6083_v13 = vadd.f32 %v12126_v23, %v12666_v35 }
 0x767   :  { %v6567_v36 = vmax.f32 %v6361_v33, 0.0  ;;  %v6364_v46 = vadd.f32 %v6363_v0, %v6075_v48  ;;  %v6204_v32 = vpop.f32.mrb[227].mxu1  ;;  %v6365_v63 = vpop.f32.mrb[227].mxu0 }
 0x768   :  { %v6772_v1 = vpop.permute.xlu0 %6771 }
 0x769   :  { %v7015_v29 = vmul.f32 %v6762_v47, %v6567_v36  ;;  %v6568_v2 = vmax.f32 %v6364_v46, 0.0 }
 0x76b   :  { %v7078_v28 = vadd.f32 %v7077_v44, %v7015_v29  ;;  %v7016_v20 = vmul.f32 %v6767_v25, %v6568_v2  ;;  %v6777_v29 = vpop.permute.xlu1 %6776  ;;  %v12667_v2 = vld [vmem:[#allocation102_spill] sm:$0xff] }
 0x76c   :  { %v12298_v53 = vpop.f32.mrb[228].mxu1  ;;  %v6368_v19 = vpop.f32.mrb[228].mxu0  ;;  %v6088_v25 = vadd.f32 %v12135_v26, %v12667_v2 }
 0x76d   :  { %v7079_v11 = vadd.f32 %v7078_v28, %v7016_v20  ;;  %v6369_v33 = vadd.f32 %v6368_v19, %v6080_v16  ;;  %v6209_v48 = vpop.f32.mrb[229].mxu1  ;;  %v6370_v39 = vpop.f32.mrb[229].mxu0  ;;  %v12668_v20 = vld [vmem:[#allocation103_spill] sm:$0xff] }
 0x76e   :  { %v12302_v7 = vpop.f32.mrb[230].mxu1  ;;  %v6371_v0 = vpop.f32.mrb[230].mxu0  ;;  %v6091_v19 = vadd.f32 %v12140_v54, %v12668_v20 }
 0x76f   :  { %v6569_v36 = vmax.f32 %v6369_v33, 0.0  ;;  %v6372_v46 = vadd.f32 %v6371_v0, %v6083_v13  ;;  %v6212_v32 = vpop.f32.mrb[231].mxu1  ;;  %v6373_v63 = vpop.f32.mrb[231].mxu0 }
 0x770   :  { %v6782_v26 = vpop.permute.xlu0 %6781 }
 0x771   :  { %v7017_v44 = vmul.f32 %v6772_v1, %v6569_v36  ;;  %v6570_v47 = vmax.f32 %v6372_v46, 0.0 }
 0x773   :  { %v7080_v57 = vadd.f32 %v7079_v11, %v7017_v44  ;;  %v7018_v23 = vmul.f32 %v6777_v29, %v6570_v47  ;;  %v6787_v44 = vpop.permute.xlu1 %6786  ;;  %v12669_v47 = vld [vmem:[#allocation104_spill] sm:$0xff] }
 0x774   :  { %v12306_v28 = vpop.f32.mrb[232].mxu1  ;;  %v6376_v16 = vpop.f32.mrb[232].mxu0  ;;  %v6096_v29 = vadd.f32 %v12149_v56, %v12669_v47 }
 0x775   :  { %v7081_v35 = vadd.f32 %v7080_v57, %v7018_v23  ;;  %v6377_v33 = vadd.f32 %v6376_v16, %v6088_v25  ;;  %v6217_v13 = vpop.f32.mrb[233].mxu1  ;;  %v6378_v48 = vpop.f32.mrb[233].mxu0  ;;  %v12670_v25 = vld [vmem:[#allocation105_spill] sm:$0xff] }
 0x776   :  { %v12310_v39 = vpop.f32.mrb[234].mxu1  ;;  %v6379_v0 = vpop.f32.mrb[234].mxu0  ;;  %v6099_v23 = vadd.f32 %v12156_v6, %v12670_v25 }
 0x777   :  { %v6571_v36 = vmax.f32 %v6377_v33, 0.0  ;;  %v6380_v46 = vadd.f32 %v6379_v0, %v6091_v19  ;;  %v6381_v32 = vpop.f32.mrb[235].mxu0  ;;  %v6220_v63 = vpop.f32.mrb[235].mxu1 }
 0x778   :  { %v6792_v32 = vpop.permute.xlu0 %6791  ;;  %v6797_v63 = vpop.permute.xlu1 %6796 }
 0x779   :  { %v7019_v11 = vmul.f32 %v6782_v26, %v6571_v36  ;;  %v6572_v1 = vmax.f32 %v6380_v46, 0.0  ;;  %v12671_v26 = vld [vmem:[#allocation106_spill] sm:$0xff] }
 0x77a   :  { %v6104_v56 = vadd.f32 %v12165_v61, %v12671_v26 }
 0x77b   :  { %v7082_v2 = vadd.f32 %v7081_v35, %v7019_v11  ;;  %v7020_v54 = vmul.f32 %v6787_v44, %v6572_v1  ;;  %v12672_v44 = vld [vmem:[#allocation107_spill] sm:$0xff] }
 0x77c   :  { %v6384_v57 = vpop.f32.mrb[236].mxu0  ;;  %v6107_v6 = vadd.f32 %v12172_v30, %v12672_v44 }
 0x77d   :  { %v7083_v16 = vadd.f32 %v7082_v2, %v7020_v54  ;;  %v6385_v20 = vadd.f32 %v6384_v57, %v6096_v29  ;;  %v6386_v13 = vpop.f32.mrb[237].mxu0 }
 0x77e   :  { %v6387_v33 = vpop.f32.mrb[238].mxu0 }
 0x77f   :  { %v6573_v19 = vmax.f32 %v6385_v20, 0.0  ;;  %v6388_v48 = vadd.f32 %v6387_v33, %v6099_v23  ;;  %v6389_v0 = vpop.f32.mrb[239].mxu0  ;;  %v6802_v20 = vpop.permute.xlu0 %6801 }
 0x781   :  { %v7021_v36 = vmul.f32 %v6792_v32, %v6573_v19  ;;  %v6574_v46 = vmax.f32 %v6388_v48, 0.0  ;;  %v6807_v19 = vpop.permute.xlu1 %6806  ;;  %v12673_v48 = vld [vmem:[#allocation108_spill] sm:$0xff] }
 0x782   :  { %v6112_v61 = vadd.f32 %v12181_v43, %v12673_v48 }
 0x783   :  { %v7084_v35 = vadd.f32 %v7083_v16, %v7021_v36  ;;  %v7022_v11 = vmul.f32 %v6797_v63, %v6574_v46  ;;  %v12674_v36 = vld [vmem:[#allocation109_spill] sm:$0xff]  ;;  %v6812_v44 = vpop.permute.xlu0 %6811 }
 0x784   :  { %v6392_v1 = vpop.f32.mrb[240].mxu0  ;;  %v6115_v30 = vadd.f32 %v12186_v27, %v12674_v36 }
 0x785   :  { %v7085_v47 = vadd.f32 %v7084_v35, %v7022_v11  ;;  %v6393_v29 = vadd.f32 %v6392_v1, %v6104_v56  ;;  %v6394_v2 = vpop.f32.mrb[241].mxu0 }
 0x786   :  { %v6395_v54 = vpop.f32.mrb[242].mxu0  ;;  %v6817_v2 = vpop.permute.xlu1 %6816 }
 0x787   :  { %v6575_v57 = vmax.f32 %v6393_v29, 0.0  ;;  %v6396_v25 = vadd.f32 %v6395_v54, %v6107_v6  ;;  %v6397_v23 = vpop.f32.mrb[243].mxu0  ;;  %v12675_v54 = vld [vmem:[#allocation110_spill] sm:$0xff] }
 0x788   :  { %v6120_v43 = vadd.f32 %v12195_v60, %v12675_v54  ;;  %v12676_v23 = vld [vmem:[#allocation111_spill] sm:$0xff] }
 0x789   :  { %v7023_v13 = vmul.f32 %v6802_v20, %v6575_v57  ;;  %v6576_v33 = vmax.f32 %v6396_v25, 0.0  ;;  %v6123_v27 = vadd.f32 %v12202_v51, %v12676_v23  ;;  %v6131_v51 = vadd.f32 %v12218_v52, %v12008_v37 }
 0x78a   :  { %v6139_v37 = vadd.f32 %v12230_v34, %v12026_v50 }
 0x78b   :  { %v7086_v16 = vadd.f32 %v7085_v47, %v7023_v13  ;;  %v7024_v0 = vmul.f32 %v6807_v19, %v6576_v33 }
 0x78c   :  { %v6400_v32 = vpop.f32.mrb[244].mxu0 }
 0x78d   :  { %v7087_v46 = vadd.f32 %v7086_v16, %v7024_v0  ;;  %v6401_v63 = vadd.f32 %v6400_v32, %v6112_v61  ;;  %v6402_v26 = vpop.f32.mrb[245].mxu0  ;;  %v6822_v0 = vpop.permute.xlu0 %6821 }
 0x78e   :  { %v6403_v56 = vpop.f32.mrb[246].mxu0 }
 0x78f   :  { %v6577_v35 = vmax.f32 %v6401_v63, 0.0  ;;  %v6404_v11 = vadd.f32 %v6403_v56, %v6115_v30  ;;  %v6405_v1 = vpop.f32.mrb[247].mxu0  ;;  %v6827_v30 = vpop.permute.xlu1 %6826  ;;  %v12677_v63 = vld [vmem:[#allocation112_spill] sm:$0xff] }
 0x790   :  { %v6128_v60 = vadd.f32 %v12211_v59, %v12677_v63  ;;  %v6136_v59 = vadd.f32 %v12226_v62, %v12028_v4 }
 0x791   :  { %v7025_v6 = vmul.f32 %v6812_v44, %v6577_v35  ;;  %v6578_v29 = vmax.f32 %v6404_v11, 0.0  ;;  %v6832_v54 = vpop.permute.xlu0 %6831 }
 0x793   :  { %v7088_v47 = vadd.f32 %v7087_v46, %v7025_v6  ;;  %v7026_v57 = vmul.f32 %v6817_v2, %v6578_v29 }
 0x794   :  { %v6408_v25 = vpop.f32.mrb[248].mxu0 }
 0x795   :  { %v7089_v20 = vadd.f32 %v7088_v47, %v7026_v57  ;;  %v6409_v13 = vadd.f32 %v6408_v25, %v6120_v43  ;;  %v6410_v33 = vpop.f32.mrb[249].mxu0  ;;  %v6837_v57 = vpop.permute.xlu1 %6836 }
 0x796   :  { %v6411_v19 = vpop.f32.mrb[250].mxu0  ;;  %v6842_v4 = vpop.permute.xlu0 %6841 }
 0x797   :  { %v6579_v48 = vmax.f32 %v6409_v13, 0.0  ;;  %v6412_v61 = vadd.f32 %v6411_v19, %v6123_v27  ;;  %v6413_v16 = vpop.f32.mrb[251].mxu0 }
 0x799   :  { %v7027_v32 = vmul.f32 %v6822_v0, %v6579_v48  ;;  %v6580_v36 = vmax.f32 %v6412_v61, 0.0  ;;  %v6847_v63 = vpop.permute.xlu1 %6846 }
 0x79b   :  { %v7090_v46 = vadd.f32 %v7089_v20, %v7027_v32  ;;  %v7028_v26 = vmul.f32 %v6827_v30, %v6580_v36 }
 0x79c   :  { %v6416_v56 = vpop.f32.mrb[252].mxu0 }
 0x79d   :  { %v7091_v35 = vadd.f32 %v7090_v46, %v7028_v26  ;;  %v6417_v11 = vadd.f32 %v6416_v56, %v6128_v60  ;;  %v6418_v1 = vpop.f32.mrb[253].mxu0  ;;  %v6144_v60 = vadd.f32 %v12234_v22, %v12048_v45  ;;  %v6147_v56 = vadd.f32 %v12238_v41, %v12038_v9  ;;  %v6852_v45 = vpop.permute.xlu0 %6851 }
 0x79e   :  { %v6419_v44 = vpop.f32.mrb[254].mxu0 }
 0x79f   :  { %v6581_v6 = vmax.f32 %v6417_v11, 0.0  ;;  %v6420_v29 = vadd.f32 %v6419_v44, %v6131_v51  ;;  %v6421_v2 = vpop.f32.mrb[255].mxu0 }
 0x7a1   :  { %v7029_v43 = vmul.f32 %v6832_v54, %v6581_v6  ;;  %v6582_v47 = vmax.f32 %v6420_v29, 0.0 }
 0x7a3   :  { %v7092_v25 = vadd.f32 %v7091_v35, %v7029_v43  ;;  %v7030_v23 = vmul.f32 %v6837_v57, %v6582_v47  ;;  %v6857_v57 = vpop.permute.xlu1 %6856 }
 0x7a4   :  { %v6424_v27 = vpop.f32.mrb[0].mxu0  ;;  %v12334_v20 = vpop.f32.mrb[236].mxu1 }
 0x7a5   :  { %v7093_v52 = vadd.f32 %v7092_v25, %v7030_v23  ;;  %v6425_v13 = vadd.f32 %v6424_v27, %v6136_v59  ;;  %v6426_v33 = vpop.f32.mrb[1].mxu0  ;;  %v6514_v19 = vpop.f32.mrb[237].mxu1  ;;  %v6152_v59 = vadd.f32 %v12242_v3, %v12054_v18  ;;  %v6155_v27 = vadd.f32 %v12246_v49, %v12050_v31 }
 0x7a6   :  { %v6427_v48 = vpop.f32.mrb[2].mxu0  ;;  %v12338_v61 = vpop.f32.mrb[238].mxu1 }
 0x7a7   :  { %v6583_v16 = vmax.f32 %v6425_v13, 0.0  ;;  %v6428_v0 = vadd.f32 %v6427_v48, %v6139_v37  ;;  %v6429_v32 = vpop.f32.mrb[3].mxu0  ;;  %v6517_v36 = vpop.f32.mrb[239].mxu1 }
 0x7a8   :  { %v6862_v18 = vpop.permute.xlu0 %6861 }
 0x7a9   :  { %v7031_v62 = vmul.f32 %v6842_v4, %v6583_v16  ;;  %v6584_v30 = vmax.f32 %v6428_v0, 0.0 }
 0x7ab   :  { %v7094_v46 = vadd.f32 %v7093_v52, %v7031_v62  ;;  %v7032_v50 = vmul.f32 %v6847_v63, %v6584_v30  ;;  %v6867_v62 = vpop.permute.xlu1 %6866  ;;  %v6160_v30 = vadd.f32 %v12250_v42, %v12072_v14 }
 0x7ac   :  { %v6432_v34 = vpop.f32.mrb[4].mxu0  ;;  %v12342_v26 = vpop.f32.mrb[240].mxu1 }
 0x7ad   :  { %v7095_v51 = vadd.f32 %v7094_v46, %v7032_v50  ;;  %v6433_v35 = vadd.f32 %v6432_v34, %v6144_v60  ;;  %v6434_v11 = vpop.f32.mrb[5].mxu0  ;;  %v6522_v1 = vpop.f32.mrb[241].mxu1  ;;  %v6163_v46 = vadd.f32 %v12254_v8, %v12070_v40 }
 0x7ae   :  { %v6435_v44 = vpop.f32.mrb[6].mxu0  ;;  %v12346_v6 = vpop.f32.mrb[242].mxu1 }
 0x7af   :  { %v6585_v29 = vmax.f32 %v6433_v35, 0.0  ;;  %v6436_v2 = vadd.f32 %v6435_v44, %v6147_v56  ;;  %v6437_v54 = vpop.f32.mrb[7].mxu0  ;;  %v6525_v43 = vpop.f32.mrb[243].mxu1 }
 0x7b0   :  { %v6872_v14 = vpop.permute.xlu0 %6871  ;;  %v6877_v43 = vpop.permute.xlu1 %6876 }
 0x7b1   :  { %v7033_v22 = vmul.f32 %v6852_v45, %v6585_v29  ;;  %v6586_v47 = vmax.f32 %v6436_v2, 0.0  ;;  %v12678_v45 = vld [vmem:[#allocation5_spill] sm:$0xff] }
 0x7b3   :  { %v7096_v25 = vadd.f32 %v7095_v51, %v7033_v22  ;;  %v7034_v9 = vmul.f32 %v6857_v57, %v6586_v47  ;;  %v6168_v22 = vadd.f32 %v12258_v15, %v12678_v45  ;;  %v12683_v45 = vld [vmem:[#allocation6_spill] sm:$0xff] }
 0x7b4   :  { %v6440_v41 = vpop.f32.mrb[8].mxu0  ;;  %v12350_v23 = vpop.f32.mrb[244].mxu1 }
 0x7b5   :  { %v7097_v37 = vadd.f32 %v7096_v25, %v7034_v9  ;;  %v6441_v52 = vadd.f32 %v6440_v41, %v6152_v59  ;;  %v6442_v13 = vpop.f32.mrb[9].mxu0  ;;  %v6530_v33 = vpop.f32.mrb[245].mxu1  ;;  %v12679_v59 = vld [vmem:[#allocation3_spill] sm:$0xff] }
 0x7b6   :  { %v6443_v19 = vpop.f32.mrb[10].mxu0  ;;  %v12354_v48 = vpop.f32.mrb[246].mxu1  ;;  %v6171_v25 = vadd.f32 %v12262_v58, %v12679_v59 }
 0x7b7   :  { %v6587_v16 = vmax.f32 %v6441_v52, 0.0  ;;  %v6444_v0 = vadd.f32 %v6443_v19, %v6155_v27  ;;  %v6445_v32 = vpop.f32.mrb[11].mxu0  ;;  %v6533_v36 = vpop.f32.mrb[247].mxu1 }
 0x7b8   :  { %v6882_v15 = vpop.permute.xlu0 %6881 }
 0x7b9   :  { %v7035_v3 = vmul.f32 %v6862_v18, %v6587_v16  ;;  %v6588_v4 = vmax.f32 %v6444_v0, 0.0  ;;  %v6887_v18 = vpop.permute.xlu1 %6886 }
 0x7bb   :  { %v7098_v63 = vadd.f32 %v7097_v37, %v7035_v3  ;;  %v7036_v31 = vmul.f32 %v6867_v62, %v6588_v4  ;;  %v12680_v3 = vld [vmem:[#allocation7_spill] sm:$0xff] }
 0x7bc   :  { %v6448_v49 = vpop.f32.mrb[12].mxu0  ;;  %v12358_v60 = vpop.f32.mrb[248].mxu1  ;;  %v6176_v4 = vadd.f32 %v12266_v17, %v12680_v3 }
 0x7bd   :  { %v7099_v50 = vadd.f32 %v7098_v63, %v7036_v31  ;;  %v6449_v34 = vadd.f32 %v6448_v49, %v6160_v30  ;;  %v6450_v56 = vpop.f32.mrb[13].mxu0  ;;  %v6538_v51 = vpop.f32.mrb[249].mxu1  ;;  %v12681_v63 = vld [vmem:[#allocation4_spill] sm:$0xff] }
 0x7be   :  { %v6451_v35 = vpop.f32.mrb[14].mxu0  ;;  %v12362_v11 = vpop.f32.mrb[250].mxu1  ;;  %v6179_v31 = vadd.f32 %v12270_v12, %v12681_v63  ;;  %v6187_v12 = vadd.f32 %v12278_v10, %v12683_v45 }
 0x7bf   :  { %v6589_v1 = vmax.f32 %v6449_v34, 0.0  ;;  %v6452_v44 = vadd.f32 %v6451_v35, %v6163_v46  ;;  %v6453_v29 = vpop.f32.mrb[15].mxu0  ;;  %v6541_v2 = vpop.f32.mrb[251].mxu1 }
 0x7c0   :  { %v6897_v2 = vpop.permute.xlu1 %6896 }
 0x7c1   :  { %v7037_v42 = vmul.f32 %v6872_v14, %v6589_v1  ;;  %v6590_v54 = vmax.f32 %v6452_v44, 0.0  ;;  %v6892_v1 = vpop.permute.xlu0 %6891  ;;  %v12682_v14 = vld [vmem:[#allocation9_spill] sm:$0xff] }
 0x7c2   :  { %v6184_v17 = vadd.f32 %v12274_v5, %v12682_v14 }
 0x7c3   :  { %v7100_v47 = vadd.f32 %v7099_v50, %v7037_v42  ;;  %v7038_v40 = vmul.f32 %v6877_v43, %v6590_v54 }
 0x7c4   :  { %v6456_v8 = vpop.f32.mrb[16].mxu0  ;;  %v12366_v57 = vpop.f32.mrb[252].mxu1 }
 0x7c5   :  { %v7101_v9 = vadd.f32 %v7100_v47, %v7038_v40  ;;  %v6457_v41 = vadd.f32 %v6456_v8, %v6168_v22  ;;  %v6458_v27 = vpop.f32.mrb[17].mxu0  ;;  %v6546_v37 = vpop.f32.mrb[253].mxu1 }
 0x7c6   :  { %v6459_v52 = vpop.f32.mrb[18].mxu0  ;;  %v12370_v13 = vpop.f32.mrb[254].mxu1 }
 0x7c7   :  { %v6591_v33 = vmax.f32 %v6457_v41, 0.0  ;;  %v6460_v19 = vadd.f32 %v6459_v52, %v6171_v25  ;;  %v6461_v16 = vpop.f32.mrb[19].mxu0  ;;  %v6549_v0 = vpop.f32.mrb[255].mxu1 }
 0x7c8   :  { %v6902_v8 = vpop.permute.xlu0 %6901  ;;  %v6907_v27 = vpop.permute.xlu1 %6906 }
 0x7c9   :  { %v7039_v32 = vmul.f32 %v6882_v15, %v6591_v33  ;;  %v6592_v36 = vmax.f32 %v6460_v19, 0.0  ;;  %v12684_v33 = vld [vmem:[#allocation11_spill] sm:$0xff] }
 0x7ca   :  { %v6192_v5 = vadd.f32 %v12282_v38, %v12684_v33 }
 0x7cb   :  { %v7102_v62 = vadd.f32 %v7101_v9, %v7039_v32  ;;  %v7040_v58 = vmul.f32 %v6887_v18, %v6592_v36  ;;  %v12685_v32 = vld [vmem:[#allocation8_spill] sm:$0xff] }
 0x7cc   :  { %v6464_v30 = vpop.f32.mrb[20].mxu0  ;;  %v6912_v0 = vpop.permute.xlu0 %6911  ;;  %v6195_v10 = vadd.f32 %v12286_v21, %v12685_v32  ;;  %v12690_v32 = vld [vmem:[#allocation17_spill] sm:$0xff] }
 0x7cd   :  { %v7103_v49 = vadd.f32 %v7102_v62, %v7040_v58  ;;  %v6465_v46 = vadd.f32 %v6464_v30, %v6176_v4  ;;  %v6466_v50 = vpop.f32.mrb[21].mxu0  ;;  %v6917_v4 = vpop.permute.xlu1 %6916 }
 0x7ce   :  { %v6467_v34 = vpop.f32.mrb[22].mxu0  ;;  %v12686_v50 = vld [vmem:[#allocation13_spill] sm:$0xff] }
 0x7cf   :  { %v6593_v56 = vmax.f32 %v6465_v46, 0.0  ;;  %v6468_v51 = vadd.f32 %v6467_v34, %v6179_v31  ;;  %v6469_v35 = vpop.f32.mrb[23].mxu0  ;;  %v6200_v38 = vadd.f32 %v12290_v55, %v12686_v50  ;;  %v12693_v50 = vld [vmem:[#allocation16_spill] sm:$0xff] }
 0x7d0   :  { %v6922_v46 = vpop.permute.xlu0 %6921 }
 0x7d1   :  { %v7041_v44 = vmul.f32 %v6892_v1, %v6593_v56  ;;  %v6594_v29 = vmax.f32 %v6468_v51, 0.0  ;;  %v6927_v51 = vpop.permute.xlu1 %6926  ;;  %v12687_v1 = vld [vmem:[#allocation10_spill] sm:$0xff] }
 0x7d2   :  { %v6203_v21 = vadd.f32 %v12294_v24, %v12687_v1 }
 0x7d3   :  { %v7104_v42 = vadd.f32 %v7103_v49, %v7041_v44  ;;  %v7042_v54 = vmul.f32 %v6897_v2, %v6594_v29 }
 0x7d4   :  { %v6472_v43 = vpop.f32.mrb[24].mxu0 }
 0x7d5   :  { %v7105_v22 = vadd.f32 %v7104_v42, %v7042_v54  ;;  %v6473_v47 = vadd.f32 %v6472_v43, %v6184_v17  ;;  %v6474_v40 = vpop.f32.mrb[25].mxu0  ;;  %v6932_v43 = vpop.permute.xlu0 %6931 }
 0x7d6   :  { %v6475_v59 = vpop.f32.mrb[26].mxu0 }
 0x7d7   :  { %v6595_v25 = vmax.f32 %v6473_v47, 0.0  ;;  %v6476_v9 = vadd.f32 %v6475_v59, %v6187_v12  ;;  %v6477_v41 = vpop.f32.mrb[27].mxu0  ;;  %v12688_v47 = vld [vmem:[#allocation15_spill] sm:$0xff] }
 0x7d8   :  { %v6208_v55 = vadd.f32 %v12298_v53, %v12688_v47  ;;  %v6216_v53 = vadd.f32 %v12306_v28, %v12690_v32 }
 0x7d9   :  { %v7043_v37 = vmul.f32 %v6902_v8, %v6595_v25  ;;  %v6596_v52 = vmax.f32 %v6476_v9, 0.0  ;;  %v12689_v25 = vld [vmem:[#allocation12_spill] sm:$0xff] }
 0x7da   :  { %v6211_v24 = vadd.f32 %v12302_v7, %v12689_v25 }
 0x7db   :  { %v7106_v19 = vadd.f32 %v7105_v22, %v7043_v37  ;;  %v7044_v16 = vmul.f32 %v6907_v27, %v6596_v52  ;;  %v6937_v22 = vpop.permute.xlu1 %6936  ;;  %v6942_v37 = vpop.permute.xlu0 %6941 }
 0x7dc   :  { %v6480_v15 = vpop.f32.mrb[28].mxu0 }
 0x7dd   :  { %v7107_v36 = vadd.f32 %v7106_v19, %v7044_v16  ;;  %v6481_v18 = vadd.f32 %v6480_v15, %v6192_v5  ;;  %v6482_v3 = vpop.f32.mrb[29].mxu0 }
 0x7de   :  { %v6483_v62 = vpop.f32.mrb[30].mxu0 }
 0x7df   :  { %v6597_v58 = vmax.f32 %v6481_v18, 0.0  ;;  %v6484_v30 = vadd.f32 %v6483_v62, %v6195_v10  ;;  %v6485_v63 = vpop.f32.mrb[31].mxu0  ;;  %v6947_v16 = vpop.permute.xlu1 %6946  ;;  %v12692_v62 = vld [vmem:[#allocation19_spill] sm:$0xff] }
 0x7e0   :  { %v6952_v18 = vpop.permute.xlu0 %6951 }
 0x7e1   :  { %v7045_v31 = vmul.f32 %v6912_v0, %v6597_v58  ;;  %v6598_v49 = vmax.f32 %v6484_v30, 0.0  ;;  %v8037_v58 = vadd.f32 %v12334_v20, %v12692_v62  ;;  %v12695_v20 = vld [vmem:[#allocation18_spill] sm:$0xff] }
 0x7e3   :  { %v7108_v34 = vadd.f32 %v7107_v36, %v7045_v31  ;;  %v7046_v56 = vmul.f32 %v6917_v4, %v6598_v49  ;;  %v12691_v4 = vld [vmem:[#allocation14_spill] sm:$0xff]  ;;  %v6957_v49 = vpop.permute.xlu1 %6956 }
 0x7e4   :  { %v6488_v35 = vpop.f32.mrb[32].mxu0  ;;  %v6219_v7 = vadd.f32 %v12310_v39, %v12691_v4 }
 0x7e5   :  { %v7109_v44 = vadd.f32 %v7108_v34, %v7046_v56  ;;  %v6489_v29 = vadd.f32 %v6488_v35, %v6200_v38  ;;  %v6490_v2 = vpop.f32.mrb[33].mxu0  ;;  %v8038_v38 = vadd.f32 %v12338_v61, %v12693_v50  ;;  %v12694_v35 = vld [vmem:[#allocation21_spill] sm:$0xff]  ;;  %v12696_v61 = vld [vmem:[#allocation23_spill] sm:$0xff]  ;;  %v7138_v50 = vlaneseq }
 0x7e6   :  { %v6491_v14 = vpop.f32.mrb[34].mxu0  ;;  %v8039_v1 = vadd.f32 %v12342_v26, %v12694_v35  ;;  %v8040_v2 = vadd.f32 %v12346_v6, %v12695_v20 }
 0x7e7   :  { %v6599_v17 = vmax.f32 %v6489_v29, 0.0  ;;  %v6492_v42 = vadd.f32 %v6491_v14, %v6203_v21  ;;  %v6493_v54 = vpop.f32.mrb[35].mxu0  ;;  %v6606_v29 = vmax.f32 %v8038_v38, 0.0 }
 0x7e8   :  { %v6608_v47 = vmax.f32 %v8040_v2, 0.0 }
 0x7e9   :  { %v7047_v45 = vmul.f32 %v6922_v46, %v6599_v17  ;;  %v6600_v12 = vmax.f32 %v6492_v42, 0.0  ;;  %v6967_v42 = vpop.permute.xlu1 %6966 }
 0x7eb   :  { %v7110_v40 = vadd.f32 %v7109_v44, %v7047_v45  ;;  %v7048_v8 = vmul.f32 %v6927_v51, %v6600_v12  ;;  %v6605_v51 = vmax.f32 %v8037_v58, 0.0  ;;  %v6962_v44 = vpop.permute.xlu0 %6961  ;;  %v8041_v45 = vadd.f32 %v12350_v23, %v12696_v61 }
 0x7ec   :  { %v6496_v59 = vpop.f32.mrb[36].mxu0 }
 0x7ed   :  { %v7111_v9 = vadd.f32 %v7110_v40, %v7048_v8  ;;  %v6497_v41 = vadd.f32 %v6496_v59, %v6208_v55  ;;  %v6498_v27 = vpop.f32.mrb[37].mxu0  ;;  %v7053_v54 = vmul.f32 %v6952_v18, %v6605_v51  ;;  %v12697_v55 = vld [vmem:[#allocation20_spill] sm:$0xff]  ;;  %v6609_v25 = vmax.f32 %v8041_v45, 0.0 }
 0x7ee   :  { %v6499_v52 = vpop.f32.mrb[38].mxu0  ;;  %v8042_v26 = vadd.f32 %v12354_v48, %v12697_v55  ;;  %v7056_v27 = vmul.f32 %v6967_v42, %v6608_v47 }
 0x7ef   :  { %v6601_v33 = vmax.f32 %v6497_v41, 0.0  ;;  %v6500_v5 = vadd.f32 %v6499_v52, %v6211_v24  ;;  %v6501_v19 = vpop.f32.mrb[39].mxu0  ;;  %v6972_v8 = vpop.permute.xlu0 %6971  ;;  %v12698_v24 = vld [vmem:[#allocation25_spill] sm:$0xff]  ;;  %v12699_v52 = vld [vmem:[#allocation22_spill] sm:$0xff] }
 0x7f0   :  { %v8043_v6 = vadd.f32 %v12358_v60, %v12698_v24  ;;  %v6977_v41 = vpop.permute.xlu1 %6976  ;;  %v8044_v23 = vadd.f32 %v12362_v11, %v12699_v52 }
 0x7f1   :  { %v7049_v0 = vmul.f32 %v6932_v43, %v6601_v33  ;;  %v6602_v15 = vmax.f32 %v6500_v5, 0.0  ;;  %v6607_v43 = vmax.f32 %v8039_v1, 0.0  ;;  %v7057_v5 = vmul.f32 %v6972_v8, %v6609_v25 }
 0x7f2   :  { %v6611_v19 = vmax.f32 %v8043_v6, 0.0 }
 0x7f3   :  { %v7112_v10 = vadd.f32 %v7111_v9, %v7049_v0  ;;  %v7050_v36 = vmul.f32 %v6937_v22, %v6602_v15  ;;  %v7054_v22 = vmul.f32 %v6957_v49, %v6606_v29  ;;  %v7055_v59 = vmul.f32 %v6962_v44, %v6607_v43  ;;  %v6982_v15 = vpop.permute.xlu0 %6981 }
 0x7f4   :  { %v6504_v3 = vpop.f32.mrb[40].mxu0  ;;  %v6987_v18 = vpop.permute.xlu1 %6986 }
 0x7f5   :  { %v7113_v30 = vadd.f32 %v7112_v10, %v7050_v36  ;;  %v6505_v63 = vadd.f32 %v6504_v3, %v6216_v53  ;;  %v6506_v31 = vpop.f32.mrb[41].mxu0  ;;  %v6612_v53 = vmax.f32 %v8044_v23, 0.0  ;;  %v12701_v10 = vld [vmem:[#allocation24_spill] sm:$0xff]  ;;  %v7059_v3 = vmul.f32 %v6982_v15, %v6611_v19 }
 0x7f6   :  { %v6507_v46 = vpop.f32.mrb[42].mxu0  ;;  %v8046_v60 = vadd.f32 %v12370_v13, %v12701_v10 }
 0x7f7   :  { %v6603_v34 = vmax.f32 %v6505_v63, 0.0  ;;  %v6508_v28 = vadd.f32 %v6507_v46, %v6219_v7  ;;  %v6509_v56 = vpop.f32.mrb[43].mxu0  ;;  %v7060_v62 = vmul.f32 %v6987_v18, %v6612_v53 }
 0x7f8   :  { %v6614_v11 = vmax.f32 %v8046_v60, 0.0  ;;  %v6997_v49 = vpop.permute.xlu1 %6996 }
 0x7f9   :  { %v7051_v21 = vmul.f32 %v6942_v37, %v6603_v34  ;;  %v6604_v39 = vmax.f32 %v6508_v28, 0.0  ;;  %v6610_v37 = vmax.f32 %v8042_v26, 0.0  ;;  %v7139_v28 = vshrl.u32 %v7138_v50, 7 }
 0x7fb   :  { %v7114_v14 = vadd.f32 %v7113_v30, %v7051_v21  ;;  %v7052_v17 = vmul.f32 %v6947_v16, %v6604_v39  ;;  %v12700_v16 = vld [vmem:[#allocation27_spill] sm:$0xff]  ;;  %v7058_v32 = vmul.f32 %v6977_v41, %v6610_v37  ;;  %v6992_v30 = vpop.permute.xlu0 %6991  ;;  %v7140_v51 = vsub.s32 0, %v7139_v28 }
 0x7fc   :  { %v8045_v48 = vadd.f32 %v12366_v57, %v12700_v16  ;;  %v7062_v57 = vmul.f32 %v6997_v49, %v6614_v11 }
 0x7fd   :  { %v7115_v12 = vadd.f32 %v7114_v14, %v7052_v17 }
 0x7fe   :  { %v6613_v4 = vmax.f32 %v8045_v48, 0.0 }
 0x7ff   :  { %v7116_v40 = vadd.f32 %v7115_v12, %v7053_v54  ;;  %v7136_v1 = vpop.permute.xlu0 %7135 }
 0x800   :  { %v7061_v63 = vmul.f32 %v6992_v30, %v6613_v4  ;;  %v7141_v39 = vrot.slane %v7136_v1, %v7140_v51 }
 0x801   :  { %v7117_v9 = vadd.f32 %v7116_v40, %v7054_v22 }
 0x803   :  { %v7118_v33 = vadd.f32 %v7117_v9, %v7055_v59 }
 0x805   :  { %v7119_v0 = vadd.f32 %v7118_v33, %v7056_v27 }
 0x807   :  { %v7120_v36 = vadd.f32 %v7119_v0, %v7057_v5 }
 0x809   :  { %v7121_v7 = vadd.f32 %v7120_v36, %v7058_v32 }
 0x80b   :  { %v7122_v58 = vadd.f32 %v7121_v7, %v7059_v3 }
 0x80d   :  { %v7123_v31 = vadd.f32 %v7122_v58, %v7060_v62 }
 0x80f   :  { %v7124_v46 = vadd.f32 %v7123_v31, %v7061_v63 }
 0x811   :  { %v7125_v38 = vadd.f32 %v7124_v46, %v7062_v57 }
 0x813   :  { %v7126_v34 = vrot.slane %v7125_v38, 4 }
 0x815   :  { %v7127_v56 = vadd.f32 %v7126_v34, %v7125_v38 }
 0x817   :  { %v7128_v13 = vrot.slane %v7127_v56, 2 }
 0x819   :  { %v7129_v35 = vadd.f32 %v7128_v13, %v7127_v56 }
 0x81b   :  { %v7130_v21 = vrot.slane %v7129_v35, 1 }
 0x81d   :  { %v7131_v44 = vadd.f32 %v7130_v21, %v7129_v35 }
 0x81f   :  { %v7142_v29 = vadd.f32 %v7141_v39, %v7131_v44 }
 0x821   :  { %7143 = vst [vmem:[%s12430_s11] sm:$0x1] %v7142_v29 }

</bundles_post_ra>
